<compile_context>
chip_gen: v7x
topology: tpu7x:2x2x1
jax: 0.10.0
libtpu: 0.0.40
codegen_flags: <defaults>
</compile_context>

<pallas_src>
import jax
import jax.numpy as jnp
from jax import lax
from jax.experimental import pallas as pl
from jax.experimental.pallas import tpu as pltpu

EPS = 1e-5
LANE = 128


def _round_up(x, m):
    return (x + m - 1) // m * m


def conv_bn_relu_kernel(xpad_ref, w_ref, g_ref, b_ref, out_ref):
    """One 3x3 'same' conv + training-mode BatchNorm + ReLU.

    Grid = (co, ci):
      co ("parallel"):  128-wide block of output channels
      ci ("arbitrary"): 128-wide block of input channels (conv reduction)

    xpad_ref : (N, H+2, W+2, 128) f32   zero-padded input, ci-th channel block
    w_ref    : (9, 128, 128)      f32   3x3 taps x ci block x co block
    g_ref    : (1, 128)           f32   BN gamma (co block)
    b_ref    : (1, 128)           f32   BN beta  (co block)
    out_ref  : (N*H*W, 128)       f32   lane-dense; raw conv accumulated
                                        across ci, normalized on the last step
    """
    ci = pl.program_id(1)
    n_ci = pl.num_programs(1)

    N, Hp, Wp, C = xpad_ref.shape
    H, W = Hp - 2, Wp - 2
    R = N * H * W

    # In-kernel im2col: load + cast the padded block once, take the 9 shifted
    # interior windows as static value slices, concatenate on the lane axis
    # and run ONE lane-dense MXU contraction with K = 9*C (f32 accumulation).
    xb = xpad_ref[...].astype(jnp.bfloat16)                          # (N,Hp,Wp,C)
    taps = []
    for dy in range(3):
        for dx in range(3):
            taps.append(xb[:, dy:dy + H, dx:dx + W, :])
    a = jnp.concatenate(taps, axis=-1).reshape(R, 9 * C)            # (R, 9C)
    w2d = w_ref[...].astype(jnp.bfloat16).reshape(9 * C, out_ref.shape[-1])

    part = jnp.dot(a, w2d, preferred_element_type=jnp.float32)      # (R, 128)
    # NOTE: conv bias intentionally omitted — cancelled by BN mean subtraction.

    @pl.when(ci == 0)
    def _():
        out_ref[...] = part

    @pl.when(ci > 0)
    def _():
        out_ref[...] = out_ref[...] + part

    # Training-mode BatchNorm (batch statistics over N*H*W) + ReLU, fused as a
    # single f32 scale/shift pass once the channel reduction is complete.
    @pl.when(ci == n_ci - 1)
    def _():
        acc = out_ref[...]
        inv_r = 1.0 / float(R)
        mean = jnp.sum(acc, axis=0, keepdims=True) * inv_r          # (1, 128)
        var = jnp.sum(acc * acc, axis=0, keepdims=True) * inv_r - mean * mean
        scale = g_ref[...] * lax.rsqrt(var + EPS)                   # (1, 128)
        shift = b_ref[...] - mean * scale
        out_ref[...] = jnp.maximum(acc * scale + shift, 0.0)


def _conv_bn_relu(xpad_nhwc, w_taps, gamma, beta):
    """xpad_nhwc: (N, H+2, W+2, Cin_p) f32, Cin_p % 128 == 0.
    w_taps: (9, Cin_p, Cout_p); gamma/beta: (1, Cout_p), Cout_p % 128 == 0.
    Returns the stage output as a lane-dense (N*H*W, Cout_p) f32 array."""
    N, Hp, Wp, Cin_p = xpad_nhwc.shape
    H, W = Hp - 2, Wp - 2
    Cout_p = w_taps.shape[-1]
    R = N * H * W
    n_co = Cout_p // LANE
    n_ci = Cin_p // LANE

    flops = 2 * R * (9 * Cin_p) * Cout_p + 10 * R * Cout_p
    bytes_accessed = 4 * int(xpad_nhwc.size + w_taps.size + gamma.size
                             + beta.size + R * Cout_p)

    return pl.pallas_call(
        conv_bn_relu_kernel,
        out_shape=jax.ShapeDtypeStruct((R, Cout_p), jnp.float32),
        grid=(n_co, n_ci),
        in_specs=[
            pl.BlockSpec((N, Hp, Wp, LANE), lambda co, ci: (0, 0, 0, ci)),
            pl.BlockSpec((9, LANE, LANE), lambda co, ci: (0, ci, co)),
            pl.BlockSpec((1, LANE), lambda co, ci: (0, co)),
            pl.BlockSpec((1, LANE), lambda co, ci: (0, co)),
        ],
        out_specs=pl.BlockSpec((R, LANE), lambda co, ci: (0, co)),
        compiler_params=pltpu.CompilerParams(
            dimension_semantics=("parallel", "arbitrary")),
        cost_estimate=pl.CostEstimate(
            flops=flops, transcendentals=Cout_p,
            bytes_accessed=bytes_accessed),
    )(xpad_nhwc, w_taps, gamma, beta)


def double_conv(x_nchw, params):
    """x_nchw: (N, Cin, H, W) float32. Returns (N, Cout, H, W)."""
    w1, _cb1, g1, b1, w2, _cb2, g2, b2 = params   # conv biases unused (BN cancels them)
    N, Cin, H, W = x_nchw.shape
    Cout = w1.shape[-1]

    Cin_p = _round_up(Cin, LANE)
    Cout_p = _round_up(Cout, LANE)

    def pad_ch(a, axis, target):
        cfg = [(0, 0)] * a.ndim
        cfg[axis] = (0, target - a.shape[axis])
        return jnp.pad(a, cfg)

    # NCHW -> NHWC (channels on the lane axis), channels padded to the lane
    # width, H/W zero-padded by 1 (all XLA-side layout plumbing).
    x = jnp.transpose(x_nchw, (0, 2, 3, 1)).astype(jnp.float32)
    x = pad_ch(x, 3, Cin_p)
    xpad = jnp.pad(x, ((0, 0), (1, 1), (1, 1), (0, 0)))

    w1p = pad_ch(pad_ch(w1, 1, Cin_p), 2, Cout_p)
    w2p = pad_ch(pad_ch(w2, 1, Cout_p), 2, Cout_p)
    g1p, b1p = pad_ch(g1, 1, Cout_p), pad_ch(b1, 1, Cout_p)
    g2p, b2p = pad_ch(g2, 1, Cout_p), pad_ch(b2, 1, Cout_p)
    # (padded gamma/beta are zero => padded channels stay exactly zero)

    # Stage 1: Conv3x3 -> BN -> ReLU
    h = _conv_bn_relu(xpad, w1p, g1p, b1p)                 # (N*H*W, Cout_p)

    # Re-pad the intermediate in XLA instead of a zero-fill/store/reload
    # scratch round trip inside the kernel.
    hpad = jnp.pad(h.reshape(N, H, W, Cout_p),
                   ((0, 0), (1, 1), (1, 1), (0, 0)))

    # Stage 2: Conv3x3 -> BN -> ReLU
    y = _conv_bn_relu(hpad, w2p, g2p, b2p)                 # (N*H*W, Cout_p)
    y = y.reshape(N, H, W, Cout_p)[:, :, :, :Cout]
    return jnp.transpose(y, (0, 3, 1, 2)).astype(x_nchw.dtype)


def init_params(key, in_channels, out_channels):
    """Deterministic synthetic parameters (shapes per DoubleConv.__init__)."""
    ks = jax.random.split(key, 8)
    # conv weights stored as (9, Cin, Cout) == flattened HWIO taps
    w1 = 0.2 * jax.random.normal(ks[0], (9, in_channels, out_channels), jnp.float32)
    cb1 = 0.05 * jax.random.normal(ks[1], (1, out_channels), jnp.float32)
    g1 = 1.0 + 0.1 * jax.random.normal(ks[2], (1, out_channels), jnp.float32)
    b1 = 0.05 * jax.random.normal(ks[3], (1, out_channels), jnp.float32)
    w2 = 0.2 * jax.random.normal(ks[4], (9, out_channels, out_channels), jnp.float32)
    cb2 = 0.05 * jax.random.normal(ks[5], (1, out_channels), jnp.float32)
    g2 = 1.0 + 0.1 * jax.random.normal(ks[6], (1, out_channels), jnp.float32)
    b2 = 0.05 * jax.random.normal(ks[7], (1, out_channels), jnp.float32)
    return (w1, cb1, g1, b1, w2, cb2, g2, b2)


def ref_double_conv(x_nchw, params):
    """Pure-JAX f32 reference mirroring the PyTorch forward (training-mode BN,
    conv biases included)."""
    w1, cb1, g1, b1, w2, cb2, g2, b2 = params

    def conv(x, w_taps, b):
        ci, co = w_taps.shape[1], w_taps.shape[2]
        w_hwio = w_taps.reshape(3, 3, ci, co)
        y = lax.conv_general_dilated(
            x, w_hwio, window_strides=(1, 1), padding="SAME",
            dimension_numbers=("NCHW", "HWIO", "NCHW"))
        return y + b.reshape(1, -1, 1, 1)

    def bn_relu(x, g, beta):
        mean = jnp.mean(x, axis=(0, 2, 3), keepdims=True)
        var = jnp.mean((x - mean) ** 2, axis=(0, 2, 3), keepdims=True)
        y = g.reshape(1, -1, 1, 1) * (x - mean) * lax.rsqrt(var + EPS) \
            + beta.reshape(1, -1, 1, 1)
        return jnp.maximum(y, 0.0)

    h = bn_relu(conv(x_nchw, w1, cb1), g1, b1)
    return bn_relu(conv(h, w2, cb2), g2, b2)


if __name__ == "__main__":
    key = jax.random.PRNGKey(0)
    k_x, k_p = jax.random.split(key)

    N, Cin, H, W = 2, 4, 16, 16
    Cout = 8

    x = jax.random.normal(k_x, (N, Cin, H, W), jnp.float32)
    params = init_params(k_p, Cin, Cout)

    out = jax.block_until_ready(double_conv(x, params))
    ref = jax.block_until_ready(ref_double_conv(x, params))

    assert out.shape == (N, Cout, H, W)
    # Kernel feeds the MXU bf16 operands (f32 accumulation / f32 BN stats),
    # so compare against the f32 reference with a bf16-level tolerance.
    err = float(jnp.max(jnp.abs(out - ref)))
    assert err < 5e-2, f"max abs err {err}"

    print("KERNEL_OK")
</pallas_src>

<mosaic_0001>
module attributes {stable_mosaic.version = 11 : i64} {
  func.func @conv_bn_relu_kernel(%arg0: i32, %arg1: i32, %arg2: memref<2x18x18x128xf32, #tpu.memory_space<vmem>>, %arg3: memref<9x128x128xf32, #tpu.memory_space<vmem>>, %arg4: memref<1x128xf32, #tpu.memory_space<vmem>>, %arg5: memref<1x128xf32, #tpu.memory_space<vmem>>, %arg6: memref<512x128xf32, #tpu.memory_space<vmem>>) attributes {dimension_semantics = [#tpu.dimension_semantics<parallel>, #tpu.dimension_semantics<arbitrary>], iteration_bounds = array<i64: 1, 1>, scalar_prefetch = 0 : i64, scratch_operands = 0 : i64, tpu.core_type = #tpu.core_type<tc>, window_params = [{transform_indices = @transform_0, window_bounds = array<i64: 2, 18, 18, 128>}, {transform_indices = @transform_1, window_bounds = array<i64: 9, 128, 128>}, {transform_indices = @transform_2, window_bounds = array<i64: 1, 128>}, {transform_indices = @transform_3, window_bounds = array<i64: 1, 128>}, {transform_indices = @transform_4, window_bounds = array<i64: 512, 128>}]} {
    %c0 = arith.constant 0 : index
    %c0_0 = arith.constant 0 : index
    %c0_1 = arith.constant 0 : index
    %c0_2 = arith.constant 0 : index
    %0 = vector.load %arg2[%c0, %c0_0, %c0_1, %c0_2] : memref<2x18x18x128xf32, #tpu.memory_space<vmem>>, vector<2x18x18x128xf32>
    %1 = arith.truncf %0 : vector<2x18x18x128xf32> to vector<2x18x18x128xbf16>
    %2 = vector.extract_strided_slice %1 {offsets = [0, 0, 0, 0], sizes = [2, 16, 16, 128], strides = [1, 1, 1, 1]} : vector<2x18x18x128xbf16> to vector<2x16x16x128xbf16>
    %3 = vector.extract_strided_slice %1 {offsets = [0, 0, 1, 0], sizes = [2, 16, 16, 128], strides = [1, 1, 1, 1]} : vector<2x18x18x128xbf16> to vector<2x16x16x128xbf16>
    %4 = vector.extract_strided_slice %1 {offsets = [0, 0, 2, 0], sizes = [2, 16, 16, 128], strides = [1, 1, 1, 1]} : vector<2x18x18x128xbf16> to vector<2x16x16x128xbf16>
    %5 = vector.extract_strided_slice %1 {offsets = [0, 1, 0, 0], sizes = [2, 16, 16, 128], strides = [1, 1, 1, 1]} : vector<2x18x18x128xbf16> to vector<2x16x16x128xbf16>
    %6 = vector.extract_strided_slice %1 {offsets = [0, 1, 1, 0], sizes = [2, 16, 16, 128], strides = [1, 1, 1, 1]} : vector<2x18x18x128xbf16> to vector<2x16x16x128xbf16>
    %7 = vector.extract_strided_slice %1 {offsets = [0, 1, 2, 0], sizes = [2, 16, 16, 128], strides = [1, 1, 1, 1]} : vector<2x18x18x128xbf16> to vector<2x16x16x128xbf16>
    %8 = vector.extract_strided_slice %1 {offsets = [0, 2, 0, 0], sizes = [2, 16, 16, 128], strides = [1, 1, 1, 1]} : vector<2x18x18x128xbf16> to vector<2x16x16x128xbf16>
    %9 = vector.extract_strided_slice %1 {offsets = [0, 2, 1, 0], sizes = [2, 16, 16, 128], strides = [1, 1, 1, 1]} : vector<2x18x18x128xbf16> to vector<2x16x16x128xbf16>
    %10 = vector.extract_strided_slice %1 {offsets = [0, 2, 2, 0], sizes = [2, 16, 16, 128], strides = [1, 1, 1, 1]} : vector<2x18x18x128xbf16> to vector<2x16x16x128xbf16>
    %11 = tpu.concatenate %2, %3, %4, %5, %6, %7, %8, %9, %10 in 3 : vector<2x16x16x128xbf16>, vector<2x16x16x128xbf16>, vector<2x16x16x128xbf16>, vector<2x16x16x128xbf16>, vector<2x16x16x128xbf16>, vector<2x16x16x128xbf16>, vector<2x16x16x128xbf16>, vector<2x16x16x128xbf16>, vector<2x16x16x128xbf16> -> vector<2x16x16x1152xbf16>
    %12 = vector.shape_cast %11 : vector<2x16x16x1152xbf16> to vector<512x1152xbf16>
    %c0_3 = arith.constant 0 : index
    %c0_4 = arith.constant 0 : index
    %c0_5 = arith.constant 0 : index
    %13 = vector.load %arg3[%c0_3, %c0_4, %c0_5] : memref<9x128x128xf32, #tpu.memory_space<vmem>>, vector<9x128x128xf32>
    %14 = arith.truncf %13 : vector<9x128x128xf32> to vector<9x128x128xbf16>
    %15 = vector.shape_cast %14 : vector<9x128x128xbf16> to vector<1152x128xbf16>
    %cst = arith.constant dense<0.000000e+00> : vector<512x128xf32>
    %16 = tpu.matmul %12, %15, %cst {dimension_numbers = #tpu.dot_dimension_numbers<[1], [0], [0], [1], [0, 0, 1, 1], [], []>} : vector<512x1152xbf16>, vector<1152x128xbf16>, vector<512x128xf32> -> vector<512x128xf32>
    %c0_i32 = arith.constant 0 : i32
    %17 = arith.cmpi eq, %arg1, %c0_i32 : i32
    %18 = arith.extui %17 : i1 to i32
    %c0_i32_6 = arith.constant 0 : i32
    %19 = arith.cmpi ne, %18, %c0_i32_6 : i32
    scf.if %19 {
      %c0_11 = arith.constant 0 : index
      %c0_12 = arith.constant 0 : index
      %26 = vector.load %arg6[%c0_11, %c0_12] : memref<512x128xf32, #tpu.memory_space<vmem>>, vector<512x128xf32>
      tpu.vector_store %arg6[%c0_11, %c0_12], %16 {strides = array<i32>} : memref<512x128xf32, #tpu.memory_space<vmem>>, vector<512x128xf32>,
    } else {
    }
    %c0_i32_7 = arith.constant 0 : i32
    %20 = arith.cmpi sgt, %arg1, %c0_i32_7 : i32
    %21 = arith.extui %20 : i1 to i32
    %c0_i32_8 = arith.constant 0 : i32
    %22 = arith.cmpi ne, %21, %c0_i32_8 : i32
    scf.if %22 {
      %c0_11 = arith.constant 0 : index
      %c0_12 = arith.constant 0 : index
      %26 = vector.load %arg6[%c0_11, %c0_12] : memref<512x128xf32, #tpu.memory_space<vmem>>, vector<512x128xf32>
      %27 = arith.addf %26, %16 : vector<512x128xf32>
      %c0_13 = arith.constant 0 : index
      %c0_14 = arith.constant 0 : index
      %28 = vector.load %arg6[%c0_13, %c0_14] : memref<512x128xf32, #tpu.memory_space<vmem>>, vector<512x128xf32>
      tpu.vector_store %arg6[%c0_13, %c0_14], %27 {strides = array<i32>} : memref<512x128xf32, #tpu.memory_space<vmem>>, vector<512x128xf32>,
    } else {
    }
    %c0_i32_9 = arith.constant 0 : i32
    %23 = arith.cmpi eq, %arg1, %c0_i32_9 : i32
    %24 = arith.extui %23 : i1 to i32
    %c0_i32_10 = arith.constant 0 : i32
    %25 = arith.cmpi ne, %24, %c0_i32_10 : i32
    scf.if %25 {
      %c0_11 = arith.constant 0 : index
      %c0_12 = arith.constant 0 : index
      %26 = vector.load %arg6[%c0_11, %c0_12] : memref<512x128xf32, #tpu.memory_space<vmem>>, vector<512x128xf32>
      %cst_13 = arith.constant dense<0.000000e+00> : vector<128xf32>
      %27 = vector.multi_reduction <add>, %26, %cst_13 [0] : vector<512x128xf32> to vector<128xf32>
      %28 = vector.shape_cast %27 : vector<128xf32> to vector<1x128xf32>
      %cst_14 = arith.constant 0.001953125 : f32
      %29 = vector.broadcast %cst_14 : f32 to vector<1x128xf32>
      %30 = arith.mulf %28, %29 : vector<1x128xf32>
      %31 = arith.mulf %26, %26 : vector<512x128xf32>
      %cst_15 = arith.constant dense<0.000000e+00> : vector<128xf32>
      %32 = vector.multi_reduction <add>, %31, %cst_15 [0] : vector<512x128xf32> to vector<128xf32>
      %33 = vector.shape_cast %32 : vector<128xf32> to vector<1x128xf32>
      %cst_16 = arith.constant 0.001953125 : f32
      %34 = vector.broadcast %cst_16 : f32 to vector<1x128xf32>
      %35 = arith.mulf %33, %34 : vector<1x128xf32>
      %36 = arith.mulf %30, %30 : vector<1x128xf32>
      %37 = arith.subf %35, %36 : vector<1x128xf32>
      %c0_17 = arith.constant 0 : index
      %c0_18 = arith.constant 0 : index
      %38 = vector.load %arg4[%c0_17, %c0_18] : memref<1x128xf32, #tpu.memory_space<vmem>>, vector<1x128xf32>
      %cst_19 = arith.constant 9.99999974E-6 : f32
      %39 = vector.broadcast %cst_19 : f32 to vector<1x128xf32>
      %40 = arith.addf %37, %39 : vector<1x128xf32>
      %41 = math.rsqrt %40 : vector<1x128xf32>
      %42 = arith.mulf %38, %41 : vector<1x128xf32>
      %c0_20 = arith.constant 0 : index
      %c0_21 = arith.constant 0 : index
      %43 = vector.load %arg5[%c0_20, %c0_21] : memref<1x128xf32, #tpu.memory_space<vmem>>, vector<1x128xf32>
      %44 = arith.mulf %30, %42 : vector<1x128xf32>
      %45 = arith.subf %43, %44 : vector<1x128xf32>
      %46 = vector.broadcast %42 : vector<1x128xf32> to vector<512x128xf32>
      %47 = arith.mulf %26, %46 : vector<512x128xf32>
      %48 = vector.broadcast %45 : vector<1x128xf32> to vector<512x128xf32>
      %49 = arith.addf %47, %48 : vector<512x128xf32>
      %cst_22 = arith.constant 0.000000e+00 : f32
      %50 = vector.broadcast %cst_22 : f32 to vector<512x128xf32>
      %51 = arith.maximumf %49, %50 : vector<512x128xf32>
      %c0_23 = arith.constant 0 : index
      %c0_24 = arith.constant 0 : index
      %52 = vector.load %arg6[%c0_23, %c0_24] : memref<512x128xf32, #tpu.memory_space<vmem>>, vector<512x128xf32>
      tpu.vector_store %arg6[%c0_23, %c0_24], %51 {strides = array<i32>} : memref<512x128xf32, #tpu.memory_space<vmem>>, vector<512x128xf32>,
    } else {
    }
    return
  }
  func.func @transform_0(%arg0: i32, %arg1: i32) -> (i32, i32, i32, i32) {
    %c0_i32 = arith.constant 0 : i32
    %c0_i32_0 = arith.constant 0 : i32
    %c0_i32_1 = arith.constant 0 : i32
    %c0_i32_2 = arith.constant 0 : i32
    return %c0_i32, %c0_i32_0, %c0_i32_1, %arg1 : i32, i32, i32, i32
  }
  func.func @transform_1(%arg0: i32, %arg1: i32) -> (i32, i32, i32) {
    %c0_i32 = arith.constant 0 : i32
    %c0_i32_0 = arith.constant 0 : i32
    return %c0_i32, %arg1, %arg0 : i32, i32, i32
  }
  func.func @transform_2(%arg0: i32, %arg1: i32) -> (i32, i32) {
    %c0_i32 = arith.constant 0 : i32
    %c0_i32_0 = arith.constant 0 : i32
    return %c0_i32, %arg0 : i32, i32
  }
  func.func @transform_3(%arg0: i32, %arg1: i32) -> (i32, i32) {
    %c0_i32 = arith.constant 0 : i32
    %c0_i32_0 = arith.constant 0 : i32
    return %c0_i32, %arg0 : i32, i32
  }
  func.func @transform_4(%arg0: i32, %arg1: i32) -> (i32, i32) {
    %c0_i32 = arith.constant 0 : i32
    %c0_i32_0 = arith.constant 0 : i32
    return %c0_i32, %arg0 : i32, i32
  }
}

</mosaic_0001>

<bundles_post_ra>
// kernel: tpu_custom_call.1
= control target key start
LH: loop header
LB: loop body
LE: loop exit
PB: predicated region body
PF: predicated region fallthrough
CT: control target
= control target key end

     0   :  { %v6867_v3 = vmov 0   ;;  %vm199_vm0 = vsmask.f32 7424  ;;  %s6862_s0 = inlined_call_operand.vmem [shape: f32[2,18,18,128], index: 0, kind: input, shape index: {}]   ;;  %s6863_s1 = inlined_call_operand.vmem [shape: f32[9,128,128], index: 1, kind: input, shape index: {}]   ;;  %s6864_s2 = inlined_call_operand.vmem [shape: f32[1,128], index: 2, kind: input, shape index: {}]   ;;  %s6865_s3 = inlined_call_operand.vmem [shape: f32[1,128], index: 3, kind: input, shape index: {}]   ;;  %s6866_s4 = inlined_call_operand.hbm [shape: f32[512,128], index: 4, kind: output, shape index: {}]  }
   0x1   :  { %v885_v0 = vld [vmem:[%s6863_s1] sm:$0xff]  ;;  %v886_v1 = vld [vmem:[%s6863_s1 + $0x8] sm:$0xff]  ;;  %1101 = vmatprep.subr.bf16.mxu1 %v6867_v3  ;;  %1390 = vmatprep.subr.bf16.mxu0 %v6867_v3  ;;  %v887_v6 = vld [vmem:[%s6863_s1 + $0x10] sm:$0xff] }
   0x2   :  { %v917_v2 = vld [vmem:[%s6863_s1 + $0x100] sm:$0xff]  ;;  %v1029_v4 = vpack.c.bf16 %v886_v1, %v885_v0  ;;  %v918_v5 = vld [vmem:[%s6863_s1 + $0x108] sm:$0xff]  ;;  %v888_v7 = vld [vmem:[%s6863_s1 + $0x18] sm:$0xff] }
   0x3   :  { %v3925_v8 = vpack.c.bf16 %v918_v5, %v917_v2  ;;  %v919_v9 = vld [vmem:[%s6863_s1 + $0x110] sm:$0xff]  ;;  %v920_v10 = vld [vmem:[%s6863_s1 + $0x118] sm:$0xff]  ;;  %v1030_v11 = vpack.c.bf16 %v888_v7, %v887_v6  ;;  %v889_v13 = vld [vmem:[%s6863_s1 + $0x20] sm:$0xff] }
   0x4   :  { %1102 = vmatpush1.bf16.msra.mxu1 %v1029_v4  ;;  %v3935_v12 = vpack.c.bf16 %v920_v10, %v919_v9  ;;  %v890_v14 = vld [vmem:[%s6863_s1 + $0x28] sm:$0xff]  ;;  %v921_v15 = vld [vmem:[%s6863_s1 + $0x120] sm:$0xff]  ;;  %v891_v19 = vld [vmem:[%s6863_s1 + $0x30] sm:$0xff] }
   0x5   :  { %1391 = vmatpush1.bf16.msra.mxu0 %v3925_v8  ;;  %1103 = vmatprep.subr.bf16.mxu1 %v6867_v3  ;;  %v922_v16 = vld [vmem:[%s6863_s1 + $0x128] sm:$0xff]  ;;  %v1031_v17 = vpack.c.bf16 %v890_v14, %v889_v13  ;;  %v892_v20 = vld [vmem:[%s6863_s1 + $0x38] sm:$0xff]  ;;  %v923_v21 = vld [vmem:[%s6863_s1 + $0x130] sm:$0xff] }
   0x6   :  { %1392 = vmatprep.subr.bf16.mxu0 %v6867_v3  ;;  %v3952_v18 = vpack.c.bf16 %v922_v16, %v921_v15  ;;  %v924_v22 = vld [vmem:[%s6863_s1 + $0x138] sm:$0xff]  ;;  %v1032_v23 = vpack.c.bf16 %v892_v20, %v891_v19  ;;  %v893_v25 = vld [vmem:[%s6863_s1 + $0x40] sm:$0xff]  ;;  %v894_v26 = vld [vmem:[%s6863_s1 + $0x48] sm:$0xff] }
   0x7   :  { %v3969_v24 = vpack.c.bf16 %v924_v22, %v923_v21  ;;  %v925_v27 = vld [vmem:[%s6863_s1 + $0x140] sm:$0xff]  ;;  %v926_v28 = vld [vmem:[%s6863_s1 + $0x148] sm:$0xff]  ;;  %v1033_v29 = vpack.c.bf16 %v894_v26, %v893_v25  ;;  %v895_v31 = vld [vmem:[%s6863_s1 + $0x50] sm:$0xff] }
   0x8   :  { %1104 = vmatpush1.bf16.msra.mxu1 %v1030_v11  ;;  %v3986_v30 = vpack.c.bf16 %v926_v28, %v925_v27  ;;  %v896_v32 = vld [vmem:[%s6863_s1 + $0x58] sm:$0xff]  ;;  %v927_v33 = vld [vmem:[%s6863_s1 + $0x150] sm:$0xff]  ;;  %v897_v37 = vld [vmem:[%s6863_s1 + $0x60] sm:$0xff] }
   0x9   :  { %1393 = vmatpush1.bf16.msra.mxu0 %v3935_v12  ;;  %1105 = vmatprep.subr.bf16.mxu1 %v6867_v3  ;;  %v928_v34 = vld [vmem:[%s6863_s1 + $0x158] sm:$0xff]  ;;  %v1034_v35 = vpack.c.bf16 %v896_v32, %v895_v31  ;;  %v898_v38 = vld [vmem:[%s6863_s1 + $0x68] sm:$0xff]  ;;  %v929_v39 = vld [vmem:[%s6863_s1 + $0x160] sm:$0xff] }
   0xa   :  { %1394 = vmatprep.subr.bf16.mxu0 %v6867_v3  ;;  %v4003_v36 = vpack.c.bf16 %v928_v34, %v927_v33  ;;  %v930_v40 = vld [vmem:[%s6863_s1 + $0x168] sm:$0xff]  ;;  %v19_v41 = vld [vmem:[%s6862_s0] sm:$0xff]  ;;  %v21_v43 = vld [vmem:[%s6862_s0 + $0x10] sm:$0x3]  ;;  %v1035_v47 = vpack.c.bf16 %v898_v38, %v897_v37 }
   0xb   :  { %v20_v42 = vld [vmem:[%s6862_s0 + $0x8] sm:$0xff]  ;;  %v22_v45 = vld [vmem:[%s6862_s0 + $0x18] sm:$0xff]  ;;  %v23_v46 = vld [vmem:[%s6862_s0 + $0x20] sm:$0xff]  ;;  %v4035_v48 = vpack.c.bf16 %v21_v43, %v21_v43  ;;  %v4041_v50 = vpack.c.bf16 %v930_v40, %v929_v39 }
   0xc   :  { %1106 = vmatpush1.bf16.msra.mxu1 %v1031_v17  ;;  %v4027_v44 = vpack.c.bf16 %v20_v42, %v19_v41  ;;  %v4037_v49 = vpack.c.bf16 %v23_v46, %v22_v45  ;;  %v899_v51 = vld [vmem:[%s6863_s1 + $0x70] sm:$0xff]  ;;  %v900_v52 = vld [vmem:[%s6863_s1 + $0x78] sm:$0xff]  ;;  %v901_v62 = vld [vmem:[%s6863_s1 + $0x80] sm:$0xff] }
   0xd   :  { %1395 = vmatpush1.bf16.msra.mxu0 %v3952_v18  ;;  %1107 = vmatprep.subr.bf16.mxu1 %v6867_v3  ;;  %v931_v55 = vld [vmem:[%s6863_s1 + $0x170] sm:$0xff]  ;;  %v932_v56 = vld [vmem:[%s6863_s1 + $0x178] sm:$0xff]  ;;  %v208_v57 = vshll.u32 %v4035_v48, 16  ;;  %v1036_v59 = vpack.c.bf16 %v900_v52, %v899_v51  ;;  %v902_v63 = vld [vmem:[%s6863_s1 + $0x88] sm:$0xff] }
   0xe   :  { %1396 = vmatprep.subr.bf16.mxu0 %v6867_v3  ;;  %v201_v53 = vshrl.u32 %v4027_v44, 16  ;;  %v203_v54 = vshll.u32 %v4027_v44, 16  ;;  %1422 = vmatprep.mubr.bf16.mxu0 %v4037_v49  ;;  %v4062_v61 = vpack.c.bf16 %v932_v56, %v931_v55  ;;  %v933_v1 = vld [vmem:[%s6863_s1 + $0x180] sm:$0xff]  ;;  %v934_v2 = vld [vmem:[%s6863_s1 + $0x188] sm:$0xff]  ;;  %v1037_v5 = vpack.c.bf16 %v902_v63, %v901_v62  ;;  %v903_v7 = vld [vmem:[%s6863_s1 + $0x90] sm:$0xff] }
   0xf   :  { %v210_v60 = vrot.slane %v208_v57, 1  ;;  %v4080_v6 = vpack.c.bf16 %v934_v2, %v933_v1  ;;  %v904_v9 = vld [vmem:[%s6863_s1 + $0x98] sm:$0xff]  ;;  %v935_v10 = vld [vmem:[%s6863_s1 + $0x190] sm:$0xff]  ;;  %v905_v15 = vld [vmem:[%s6863_s1 + $0xa0] sm:$0xff] }
  0x10   :  { %1108 = vmatpush1.bf16.msra.mxu1 %v1032_v23  ;;  %v205_v58 = vrot.slane %v203_v54, 1  ;;  %v936_v11 = vld [vmem:[%s6863_s1 + $0x198] sm:$0xff]  ;;  %v1038_v13 = vpack.c.bf16 %v904_v9, %v903_v7  ;;  %v906_v16 = vld [vmem:[%s6863_s1 + $0xa8] sm:$0xff]  ;;  %v937_v17 = vld [vmem:[%s6863_s1 + $0x1a0] sm:$0xff] }
  0x11   :  { %1397 = vmatpush1.bf16.msra.mxu0 %v3969_v24  ;;  %1109 = vmatprep.subr.bf16.mxu1 %v6867_v3  ;;  %v4097_v14 = vpack.c.bf16 %v936_v11, %v935_v10  ;;  %v938_v19 = vld [vmem:[%s6863_s1 + $0x1a8] sm:$0xff]  ;;  %v1039_v20 = vpack.c.bf16 %v906_v16, %v905_v15  ;;  %v907_v22 = vld [vmem:[%s6863_s1 + $0xb0] sm:$0xff]  ;;  %v908_v23 = vld [vmem:[%s6863_s1 + $0xb8] sm:$0xff] }
  0x12   :  { %1398 = vmatprep.subr.bf16.mxu0 %v6867_v3  ;;  %v206_v0 = vor.u32 %v205_v58, %v201_v53  ;;  %v4114_v21 = vpack.c.bf16 %v938_v19, %v937_v17  ;;  %v939_v25 = vld [vmem:[%s6863_s1 + $0x1b0] sm:$0xff]  ;;  %v940_v26 = vld [vmem:[%s6863_s1 + $0x1b8] sm:$0xff]  ;;  %v1040_v27 = vpack.c.bf16 %v908_v23, %v907_v22  ;;  %v910_v31 = vld [vmem:[%s6863_s1 + $0xc8] sm:$0xff] }
  0x13   :  { %v4131_v28 = vpack.c.bf16 %v940_v26, %v939_v25  ;;  %v941_v32 = vld [vmem:[%s6863_s1 + $0x1c0] sm:$0xff]  ;;  %v942_v33 = vld [vmem:[%s6863_s1 + $0x1c8] sm:$0xff]  ;;  %v911_v37 = vld [vmem:[%s6863_s1 + $0xd0] sm:$0xff] }
  0x14   :  { %1110 = vmatpush1.bf16.msra.mxu1 %v1033_v29  ;;  %v211_v4 = vsel %vm199_vm0, %v206_v0, %v210_v60  ;;  %v909_v29 = vld [vmem:[%s6863_s1 + $0xc0] sm:$0xff]  ;;  %v912_v38 = vld [vmem:[%s6863_s1 + $0xd8] sm:$0xff]  ;;  %v943_v39 = vld [vmem:[%s6863_s1 + $0x1d0] sm:$0xff] }
  0x15   :  { %1399 = vmatpush1.bf16.msra.mxu0 %v3986_v30  ;;  %1111 = vmatprep.subr.bf16.mxu1 %v6867_v3  ;;  %v1041_v34 = vpack.c.bf16 %v910_v31, %v909_v29  ;;  %v944_v40 = vld [vmem:[%s6863_s1 + $0x1d8] sm:$0xff]  ;;  %v24_v41 = vld [vmem:[%s6862_s0 + $0x28] sm:$0x3]  ;;  %v1042_v42 = vpack.c.bf16 %v912_v38, %v911_v37 }
  0x16   :  { %1400 = vmatprep.subr.bf16.mxu0 %v6867_v3  ;;  %1133 = vmatprep.mubr.bf16.mxu1 %v211_v4 }
  0x18   :  { %1112 = vmatpush1.bf16.msra.mxu1 %v1034_v35  ;;  %v4148_v35 = vpack.c.bf16 %v942_v33, %v941_v32 }
  0x19   :  { %1401 = vmatpush1.bf16.msra.mxu0 %v4003_v36  ;;  %1113 = vmatprep.subr.bf16.mxu1 %v6867_v3 }
  0x1a   :  { %1402 = vmatprep.subr.bf16.mxu0 %v6867_v3 }
  0x1c   :  { %1114 = vmatpush1.bf16.msra.mxu1 %v1035_v47 }
  0x1d   :  { %1403 = vmatpush1.bf16.msra.mxu0 %v4041_v50  ;;  %1115 = vmatprep.subr.bf16.mxu1 %v6867_v3 }
  0x1e   :  { %1404 = vmatprep.subr.bf16.mxu0 %v6867_v3 }
  0x20   :  { %1116 = vmatpush1.bf16.msra.mxu1 %v1036_v59 }
  0x21   :  { %1405 = vmatpush1.bf16.msra.mxu0 %v4062_v61  ;;  %1117 = vmatprep.subr.bf16.mxu1 %v6867_v3 }
  0x22   :  { %1406 = vmatprep.subr.bf16.mxu0 %v6867_v3 }
  0x24   :  { %1118 = vmatpush1.bf16.msra.mxu1 %v1037_v5 }
  0x25   :  { %1407 = vmatpush1.bf16.msra.mxu0 %v4080_v6  ;;  %1119 = vmatprep.subr.bf16.mxu1 %v6867_v3 }
  0x26   :  { %1408 = vmatprep.subr.bf16.mxu0 %v6867_v3 }
  0x28   :  { %1120 = vmatpush1.bf16.msra.mxu1 %v1038_v13 }
  0x29   :  { %1409 = vmatpush1.bf16.msra.mxu0 %v4097_v14  ;;  %1121 = vmatprep.subr.bf16.mxu1 %v6867_v3 }
  0x2a   :  { %1410 = vmatprep.subr.bf16.mxu0 %v6867_v3 }
  0x2c   :  { %1122 = vmatpush1.bf16.msra.mxu1 %v1039_v20 }
  0x2d   :  { %1411 = vmatpush1.bf16.msra.mxu0 %v4114_v21  ;;  %1123 = vmatprep.subr.bf16.mxu1 %v6867_v3 }
  0x2e   :  { %1412 = vmatprep.subr.bf16.mxu0 %v6867_v3 }
  0x30   :  { %1124 = vmatpush1.bf16.msra.mxu1 %v1040_v27 }
  0x31   :  { %1413 = vmatpush1.bf16.msra.mxu0 %v4131_v28  ;;  %1125 = vmatprep.subr.bf16.mxu1 %v6867_v3 }
  0x32   :  { %1414 = vmatprep.subr.bf16.mxu0 %v6867_v3 }
  0x34   :  { %1126 = vmatpush1.bf16.msra.mxu1 %v1041_v34 }
  0x35   :  { %9 = vsyncpa [#allocation3], 0  ;;  %1415 = vmatpush1.bf16.msra.mxu0 %v4148_v35  ;;  %1127 = vmatprep.subr.bf16.mxu1 %v6867_v3  ;;  %v4168_v43 = vpack.c.bf16 %v944_v40, %v943_v39  ;;  %v913_v45 = vld [vmem:[%s6863_s1 + $0xe0] sm:$0xff]  ;;  %v914_v46 = vld [vmem:[%s6863_s1 + $0xe8] sm:$0xff]  ;;  %v4183_v52 = vpack.c.bf16 %v24_v41, %v24_v41  ;;  %v215_v53 = vshll.u32 %v4037_v49, 16  ;;  %v213_v0 = vshrl.u32 %v4037_v49, 16 }
  0x36   :  { %v945_v47 = vld [vmem:[%s6863_s1 + $0x1e0] sm:$0xff]  ;;  %1416 = vmatprep.subr.bf16.mxu0 %v6867_v3  ;;  %v946_v51 = vld [vmem:[%s6863_s1 + $0x1e8] sm:$0xff]  ;;  %v25_v54 = vld [vmem:[%s6862_s0 + $0x30] sm:$0xff]  ;;  %v1043_v56 = vpack.c.bf16 %v914_v46, %v913_v45  ;;  %v681_v7 = vrot.slane %v4027_v44, 1  ;;  %v682_v9 = vrot.slane %v4035_v48, 1  ;;  %vm680_vm1 = vcmask 1046528  }
  0x37   :  { %v26_v55 = vld [vmem:[%s6862_s0 + $0x38] sm:$0xff]  ;;  %v4194_v57 = vpack.c.bf16 %v946_v51, %v945_v47  ;;  %v915_v58 = vld [vmem:[%s6863_s1 + $0xf0] sm:$0xff]  ;;  %v217_v1 = vrot.slane %v215_v53, 1  ;;  %v220_v2 = vshll.u32 %v4183_v52, 16  ;;  %v27_v4 = vld [vmem:[%s6862_s0 + $0x40] sm:$0x3] }
  0x38   :  { %1128 = vmatpush1.bf16.msra.mxu1 %v1042_v42  ;;  %v916_v59 = vld [vmem:[%s6863_s1 + $0xf8] sm:$0xff]  ;;  %v947_v60 = vld [vmem:[%s6863_s1 + $0x1f0] sm:$0xff]  ;;  %v4205_v62 = vpack.c.bf16 %v26_v55, %v25_v54  ;;  %v949_v11 = vld [vmem:[%s6863_s1 + $0x200] sm:$0xff]  ;;  %v4228_v15 = vpack.c.bf16 %v27_v4, %v27_v4  ;;  %v683_v22 = vsel %vm680_vm1, %v681_v7, %v682_v9  ;;  %v684_v38 = vrot.slane %v4037_v49, 1 }
  0x39   :  { %1417 = vmatpush1.bf16.msra.mxu0 %v4168_v43  ;;  %1129 = vmatprep.subr.bf16.mxu1 %v6867_v3  ;;  %v948_v63 = vld [vmem:[%s6863_s1 + $0x1f8] sm:$0xff]  ;;  %v1044_v5 = vpack.c.bf16 %v916_v59, %v915_v58  ;;  %v950_v13 = vld [vmem:[%s6863_s1 + $0x208] sm:$0xff]  ;;  %v218_v48 = vor.u32 %v217_v1, %v213_v0  ;;  %v222_v17 = vrot.slane %v220_v2, 1  ;;  %v29_v20 = vld [vmem:[%s6862_s0 + $0x50] sm:$0xff]  ;;  %v685_v39 = vrot.slane %v4183_v52, 1 }
  0x3a   :  { %6941 = vst [vmem:[#allocation5_spill] sm:$0xff] %v4205_v62  ;;  %1418 = vmatprep.subr.bf16.mxu0 %v6867_v3  ;;  %v4220_v10 = vpack.c.bf16 %v948_v63, %v947_v60  ;;  %v227_v16 = vshll.u32 %v4205_v62, 16  ;;  %v28_v19 = vld [vmem:[%s6862_s0 + $0x48] sm:$0xff]  ;;  %v1061_v23 = vpack.c.bf16 %v950_v13, %v949_v11  ;;  %v951_v25 = vld [vmem:[%s6863_s1 + $0x210] sm:$0xff]  ;;  %v952_v26 = vld [vmem:[%s6863_s1 + $0x218] sm:$0xff]  ;;  %v225_v27 = vshrl.u32 %v4205_v62, 16 }
  0x3b   :  { %v232_v31 = vshll.u32 %v4228_v15, 16  ;;  %v4249_v32 = vpack.c.bf16 %v29_v20, %v28_v19  ;;  %v4253_v33 = vsel %vm199_vm0, %v218_v48, %v222_v17  ;;  %v30_v34 = vld [vmem:[%s6862_s0 + $0x58] sm:$0x3]  ;;  %v1062_v37 = vpack.c.bf16 %v952_v26, %v951_v25  ;;  %v953_v40 = vld [vmem:[%s6863_s1 + $0x220] sm:$0xff]  ;;  %v954_v41 = vld [vmem:[%s6863_s1 + $0x228] sm:$0xff] }
  0x3c   :  { %1130 = vmatpush1.bf16.msra.mxu1 %v1043_v56  ;;  %v229_v29 = vrot.slane %v227_v16, 1  ;;  %v4269_v45 = vpack.c.bf16 %v30_v34, %v30_v34  ;;  %v31_v46 = vld [vmem:[%s6862_s0 + $0x60] sm:$0xff]  ;;  %v32_v47 = vld [vmem:[%s6862_s0 + $0x68] sm:$0xff]  ;;  %v4282_v51 = vsel %vm680_vm1, %v684_v38, %v685_v39  ;;  %v1063_v52 = vpack.c.bf16 %v954_v41, %v953_v40  ;;  %v955_v54 = vld [vmem:[%s6863_s1 + $0x230] sm:$0xff] }
  0x3d   :  { %1419 = vmatpush1.bf16.msra.mxu0 %v4194_v57  ;;  %1131 = vmatprep.subr.bf16.mxu1 %v6867_v3  ;;  %6942 = vst [vmem:[#allocation6_spill] sm:$0xff] %v4249_v32  ;;  %v234_v42 = vrot.slane %v232_v31, 1  ;;  %v237_v53 = vshrl.u32 %v4249_v32, 16  ;;  %v956_v55 = vld [vmem:[%s6863_s1 + $0x238] sm:$0xff]  ;;  %v4296_v60 = vpack.c.bf16 %v32_v47, %v31_v46  ;;  %v687_v0 = vrot.slane %v4205_v62, 1  ;;  %v957_v2 = vld [vmem:[%s6863_s1 + $0x240] sm:$0xff] }
  0x3e   :  { %1420 = vmatprep.subr.bf16.mxu0 %v6867_v3  ;;  %v244_v59 = vshll.u32 %v4269_v45, 16  ;;  %v1064_v63 = vpack.c.bf16 %v956_v55, %v955_v54  ;;  %v688_v1 = vrot.slane %v4228_v15, 1  ;;  %v34_v11 = vld [vmem:[%s6862_s0 + $0x78] sm:$0xff]  ;;  %v35_v13 = vld [vmem:[%s6862_s0 + $0x80] sm:$0xff]  ;;  %v959_v17 = vld [vmem:[%s6863_s1 + $0x250] sm:$0xff] }
  0x3f   :  { %6943 = vst [vmem:[#allocation7_spill] sm:$0xff] %v4296_v60  ;;  %v251_v9 = vshll.u32 %v4296_v60, 16  ;;  %v249_v48 = vshrl.u32 %v4296_v60, 16  ;;  %v960_v19 = vld [vmem:[%s6863_s1 + $0x258] sm:$0xff]  ;;  %v36_v25 = vld [vmem:[%s6862_s0 + $0x88] sm:$0x3] }
  0x40   :  { %1132 = vmatpush1.bf16.msra.mxu1 %v1044_v5  ;;  %v246_v5 = vrot.slane %v244_v59, 1  ;;  %v4328_v15 = vsel %vm680_vm1, %v687_v0, %v688_v1  ;;  %v1066_v26 = vpack.c.bf16 %v960_v19, %v959_v17  ;;  %v962_v31 = vld [vmem:[%s6863_s1 + $0x268] sm:$0xff]  ;;  %v4361_v38 = vpack.c.bf16 %v36_v25, %v36_v25  ;;  %v37_v40 = vld [vmem:[%s6862_s0 + $0x90] sm:$0xff]  ;;  %v38_v41 = vld [vmem:[%s6862_s0 + $0x98] sm:$0xff] }
  0x41   :  { %1421 = vmatpush1.bf16.msra.mxu0 %v4220_v10  ;;  %3494 = vmatprep.subr.bf16.mxu1 %v6867_v3  ;;  %6944 = vst [vmem:[#allocation8_spill] sm:$0xff] %v4328_v15  ;;  %v964_v46 = vld [vmem:[%s6863_s1 + $0x278] sm:$0xff]  ;;  %v39_v54 = vld [vmem:[%s6862_s0 + $0xa0] sm:$0x3] }
  0x42   :  { %1679 = vmatprep.subr.bf16.mxu0 %v6867_v3  ;;  %v4407_v1 = vpack.c.bf16 %v39_v54, %v39_v54  ;;  %v42_v19 = vld [vmem:[%s6862_s0 + $0xb8] sm:$0x3]  ;;  %v697_v25 = vrot.slane %v4361_v38, 1 }
  0x43   :  { %1134 = vmatmul.mubr.bf16.vlgmr.msra.gmra.mrb[0].mxu1 %v4027_v44  ;;  %v230_v44 = vor.u32 %v229_v29, %v225_v27  ;;  %v690_v27 = vrot.slane %v4249_v32, 1  ;;  %v691_v29 = vrot.slane %v4269_v45, 1 }
  0x44   :  { %1423 = vmatmul.mubr.bf16.vlgmr.msra.gmra.mrb[0].mxu0 %v683_v22  ;;  %3510 = vmatpush1.bf16.msra.mxu1 %v3925_v8  ;;  %v239_v8 = vshll.u32 %v4249_v32, 16 }
  0x45   :  { %1680 = vmatpush1.bf16.msra.mxu0 %v1061_v23  ;;  %1141 = vmatprep.mubr.bf16.mxu1 %v4253_v33  ;;  %v4293_v56 = vsel %vm199_vm0, %v230_v44, %v234_v42  ;;  %v4341_v23 = vpack.c.bf16 %v35_v13, %v34_v11  ;;  %v4374_v44 = vsel %vm680_vm1, %v690_v27, %v691_v29  ;;  %v967_v11 = vld [vmem:[%s6863_s1 + $0x290] sm:$0xff]  ;;  %v968_v13 = vld [vmem:[%s6863_s1 + $0x298] sm:$0xff] }
  0x46   :  { %1681 = vmatprep.subr.bf16.mxu0 %v6867_v3  ;;  %1430 = vmatprep.mubr.bf16.mxu0 %v4205_v62  ;;  %v241_v58 = vrot.slane %v239_v8, 1  ;;  %6947 = vst [vmem:[#allocation11_spill] sm:$0xff] %v4374_v44  ;;  %v963_v8 = vld [vmem:[%s6863_s1 + $0x270] sm:$0xff] }
  0x47   :  { %3495 = vmatprep.subr.bf16.mxu1 %v6867_v3  ;;  %6946 = vst [vmem:[#allocation10_spill] sm:$0xff] %v4341_v23  ;;  %v263_v39 = vshll.u32 %v4341_v23, 16  ;;  %v261_v45 = vshrl.u32 %v4341_v23, 16  ;;  %v1068_v55 = vpack.c.bf16 %v964_v46, %v963_v8 }
  0x48   :  { %3511 = vmatpush1.bf16.msra.mxu1 %v3935_v12  ;;  %v33_v12 = vld [vmem:[%s6862_s0 + $0x70] sm:$0x3]  ;;  %v242_v4 = vor.u32 %v241_v58, %v237_v53  ;;  %v4387_v53 = vpack.c.bf16 %v38_v41, %v37_v40  ;;  %v693_v58 = vrot.slane %v4296_v60, 1 }
  0x49   :  { %1682 = vmatpush1.bf16.msra.mxu0 %v1062_v37  ;;  %3496 = vmatprep.subr.bf16.mxu1 %v6867_v3  ;;  %v4315_v7 = vpack.c.bf16 %v33_v12, %v33_v12  ;;  %v966_v12 = vld [vmem:[%s6863_s1 + $0x288] sm:$0xff]  ;;  %v971_v41 = vld [vmem:[%s6863_s1 + $0x2b0] sm:$0xff] }
  0x4a   :  { %1683 = vmatprep.subr.bf16.mxu0 %v6867_v3  ;;  %v4338_v20 = vsel %vm199_vm0, %v242_v4, %v246_v5  ;;  %6949 = vst [vmem:[#allocation13_spill] sm:$0xff] %v4387_v53  ;;  %v41_v4 = vld [vmem:[%s6862_s0 + $0xb0] sm:$0xff]  ;;  %v699_v54 = vrot.slane %v4387_v53, 1 }
  0x4b   :  { %1142 = vmatmul.mubr.bf16.gmra.mrb[4].mxu1 %v4037_v49  ;;  %v958_v49 = vld [vmem:[%s6863_s1 + $0x248] sm:$0xff]  ;;  %6945 = vst [vmem:[#allocation9_spill] sm:$0xff] %v4338_v20  ;;  %v256_v22 = vshll.u32 %v4315_v7, 16  ;;  %v694_v59 = vrot.slane %v4315_v7, 1 }
  0x4c   :  { %1431 = vmatmul.mubr.bf16.gmra.mrb[4].mxu0 %v4282_v51  ;;  %1149 = vmatprep.mubr.bf16.mxu1 %v4293_v56  ;;  %v1065_v16 = vpack.c.bf16 %v958_v49, %v957_v2  ;;  %v275_v2 = vshll.u32 %v4387_v53, 16  ;;  %v40_v49 = vld [vmem:[%s6862_s0 + $0xa8] sm:$0xff] }
  0x4d   :  { %1684 = vmatpush1.bf16.msra.mxu0 %v1063_v52  ;;  %1438 = vmatprep.mubr.bf16.mxu0 %v4249_v32  ;;  %v258_v37 = vrot.slane %v256_v22, 1  ;;  %v268_v52 = vshll.u32 %v4361_v38, 16  ;;  %v4420_v5 = vsel %vm680_vm1, %v693_v58, %v694_v59  ;;  %v4433_v17 = vpack.c.bf16 %v41_v4, %v40_v49  ;;  %v974_v58 = vld [vmem:[%s6863_s1 + $0x2c8] sm:$0xff] }
  0x4e   :  { %1685 = vmatprep.subr.bf16.mxu0 %v6867_v3  ;;  %3512 = vmatpush1.bf16.msra.mxu1 %v3952_v18  ;;  %v253_v18 = vrot.slane %v251_v9, 1  ;;  %6950 = vst [vmem:[#allocation14_spill] sm:$0xff] %v4420_v5  ;;  %v273_v9 = vshrl.u32 %v4387_v53, 16  ;;  %v696_v22 = vrot.slane %v4341_v23, 1 }
  0x4f   :  { %3497 = vmatprep.subr.bf16.mxu1 %v6867_v3  ;;  %v270_v0 = vrot.slane %v268_v52, 1  ;;  %6952 = vst [vmem:[#allocation16_spill] sm:$0xff] %v4433_v17  ;;  %v285_v40 = vshrl.u32 %v4433_v17, 16 }
  0x50   :  { %v254_v34 = vor.u32 %v253_v18, %v249_v48  ;;  %v280_v48 = vshll.u32 %v4407_v1, 16  ;;  %v1070_v18 = vpack.c.bf16 %v968_v13, %v967_v11  ;;  %v4466_v38 = vsel %vm680_vm1, %v696_v22, %v697_v25  ;;  %v977_v25 = vld [vmem:[%s6863_s1 + $0x2e0] sm:$0xff] }
  0x51   :  { %1686 = vmatpush1.bf16.msra.mxu0 %v1064_v63  ;;  %6953 = vst [vmem:[#allocation17_spill] sm:$0xff] %v4466_v38 }
  0x52   :  { %1687 = vmatprep.subr.bf16.mxu0 %v6867_v3  ;;  %3513 = vmatpush1.bf16.msra.mxu1 %v3969_v24  ;;  %v961_v24 = vld [vmem:[%s6863_s1 + $0x260] sm:$0xff]  ;;  %v4384_v47 = vsel %vm199_vm0, %v254_v34, %v258_v37  ;;  %v282_v29 = vrot.slane %v280_v48, 1  ;;  %v44_v37 = vld [vmem:[%s6862_s0 + $0xc8] sm:$0xff] }
  0x53   :  { %1150 = vmatmul.mubr.bf16.gmra.mrb[8].mxu1 %v4205_v62  ;;  %3498 = vmatprep.subr.bf16.mxu1 %v6867_v3  ;;  %v1067_v42 = vpack.c.bf16 %v962_v31, %v961_v24  ;;  %6948 = vst [vmem:[#allocation12_spill] sm:$0xff] %v4384_v47  ;;  %v4453_v24 = vpack.c.bf16 %v42_v19, %v42_v19  ;;  %v287_v31 = vshll.u32 %v4433_v17, 16  ;;  %v43_v34 = vld [vmem:[%s6862_s0 + $0xc0] sm:$0xff]  ;;  %v48_v48 = vld [vmem:[%s6862_s0 + $0xe8] sm:$0x3] }
  0x54   :  { %1439 = vmatmul.mubr.bf16.gmra.mrb[8].mxu0 %v4328_v15  ;;  %1157 = vmatprep.mubr.bf16.mxu1 %v4338_v20  ;;  %v4479_v46 = vpack.c.bf16 %v44_v37, %v43_v34  ;;  %v105_v62 = vld [vmem:[%s6862_s0 + $0x2b0] sm:$0x3] }
  0x55   :  { %1688 = vmatpush1.bf16.msra.mxu0 %v1065_v16  ;;  %1446 = vmatprep.mubr.bf16.mxu0 %v4296_v60  ;;  %v292_v8 = vshll.u32 %v4453_v24, 16  ;;  %v703_v22 = vrot.slane %v4453_v24, 1  ;;  %v49_v24 = vld [vmem:[%s6862_s0 + $0xf0] sm:$0xff] }
  0x56   :  { %1689 = vmatprep.subr.bf16.mxu0 %v6867_v3  ;;  %3514 = vmatpush1.bf16.msra.mxu1 %v3986_v30  ;;  %v265_v30 = vrot.slane %v263_v39, 1  ;;  %6955 = vst [vmem:[#allocation19_spill] sm:$0xff] %v4479_v46  ;;  %v297_v4 = vshrl.u32 %v4479_v46, 16 }
  0x57   :  { %3499 = vmatprep.subr.bf16.mxu1 %v6867_v3 }
  0x58   :  { %v266_v63 = vor.u32 %v265_v30, %v261_v45  ;;  %v45_v30 = vld [vmem:[%s6862_s0 + $0xd0] sm:$0x3] }
  0x59   :  { %1690 = vmatpush1.bf16.msra.mxu0 %v1066_v26  ;;  %v970_v26 = vld [vmem:[%s6863_s1 + $0x2a8] sm:$0xff] }
  0x5a   :  { %1691 = vmatprep.subr.bf16.mxu0 %v6867_v3  ;;  %3515 = vmatpush1.bf16.msra.mxu1 %v4003_v36  ;;  %v965_v36 = vld [vmem:[%s6863_s1 + $0x280] sm:$0xff]  ;;  %v4430_v16 = vsel %vm199_vm0, %v266_v63, %v270_v0  ;;  %v299_v63 = vshll.u32 %v4479_v46, 16  ;;  %v46_v0 = vld [vmem:[%s6862_s0 + $0xd8] sm:$0xff] }
  0x5b   :  { %1158 = vmatmul.mubr.bf16.gmra.mrb[12].mxu1 %v4249_v32  ;;  %3500 = vmatprep.subr.bf16.mxu1 %v6867_v3  ;;  %v1069_v7 = vpack.c.bf16 %v966_v12, %v965_v36  ;;  %6951 = vst [vmem:[#allocation15_spill] sm:$0xff] %v4430_v16  ;;  %v294_v36 = vrot.slane %v292_v8, 1  ;;  %v4499_v12 = vpack.c.bf16 %v45_v30, %v45_v30  ;;  %v51_v30 = vld [vmem:[%s6862_s0 + $0x100] sm:$0x3]  ;;  %v102_v32 = vld [vmem:[%s6862_s0 + $0x298] sm:$0x3] }
  0x5c   :  { %1447 = vmatmul.mubr.bf16.gmra.mrb[12].mxu0 %v4374_v44  ;;  %1165 = vmatprep.mubr.bf16.mxu1 %v4384_v47 }
  0x5d   :  { %1692 = vmatpush1.bf16.msra.mxu0 %v1067_v42  ;;  %1454 = vmatprep.mubr.bf16.mxu0 %v4341_v23  ;;  %v972_v42 = vld [vmem:[%s6863_s1 + $0x2b8] sm:$0xff]  ;;  %v304_v13 = vshll.u32 %v4499_v12, 16 }
  0x5e   :  { %1693 = vmatprep.subr.bf16.mxu0 %v6867_v3  ;;  %3516 = vmatpush1.bf16.msra.mxu1 %v4041_v50  ;;  %v277_v50 = vrot.slane %v275_v2, 1  ;;  %v1072_v52 = vpack.c.bf16 %v972_v42, %v971_v41  ;;  %v980_v41 = vld [vmem:[%s6863_s1 + $0x2f8] sm:$0xff] }
  0x5f   :  { %3501 = vmatprep.subr.bf16.mxu1 %v6867_v3 }
  0x60   :  { %v278_v27 = vor.u32 %v277_v50, %v273_v9  ;;  %v976_v9 = vld [vmem:[%s6863_s1 + $0x2d8] sm:$0xff] }
  0x61   :  { %1694 = vmatpush1.bf16.msra.mxu0 %v1068_v55  ;;  %v700_v55 = vrot.slane %v4407_v1, 1  ;;  %v47_v1 = vld [vmem:[%s6862_s0 + $0xe0] sm:$0xff] }
  0x62   :  { %1695 = vmatprep.subr.bf16.mxu0 %v6867_v3  ;;  %3517 = vmatpush1.bf16.msra.mxu1 %v4062_v61  ;;  %v969_v61 = vld [vmem:[%s6863_s1 + $0x2a0] sm:$0xff]  ;;  %v4476_v45 = vsel %vm199_vm0, %v278_v27, %v282_v29  ;;  %v4525_v50 = vpack.c.bf16 %v47_v1, %v46_v0  ;;  %v4545_v27 = vpack.c.bf16 %v48_v48, %v48_v48 }
  0x63   :  { %1166 = vmatmul.mubr.bf16.gmra.mrb[16].mxu1 %v4296_v60  ;;  %3502 = vmatprep.subr.bf16.mxu1 %v6867_v3  ;;  %v1071_v39 = vpack.c.bf16 %v970_v26, %v969_v61  ;;  %6954 = vst [vmem:[#allocation18_spill] sm:$0xff] %v4476_v45  ;;  %v4512_v2 = vsel %vm680_vm1, %v699_v54, %v700_v55  ;;  %v306_v26 = vrot.slane %v304_v13, 1  ;;  %v981_v54 = vld [vmem:[%s6863_s1 + $0x300] sm:$0xff] }
  0x64   :  { %1455 = vmatmul.mubr.bf16.gmra.mrb[16].mxu0 %v4420_v5  ;;  %1173 = vmatprep.mubr.bf16.mxu1 %v4430_v16  ;;  %6956 = vst [vmem:[#allocation20_spill] sm:$0xff] %v4512_v2  ;;  %v311_v29 = vshll.u32 %v4525_v50, 16  ;;  %v316_v8 = vshll.u32 %v4545_v27, 16 }
  0x65   :  { %1696 = vmatpush1.bf16.msra.mxu0 %v1069_v7  ;;  %1462 = vmatprep.mubr.bf16.mxu0 %v4387_v53  ;;  %v975_v7 = vld [vmem:[%s6863_s1 + $0x2d0] sm:$0xff] }
  0x66   :  { %1697 = vmatprep.subr.bf16.mxu0 %v6867_v3  ;;  %3518 = vmatpush1.bf16.msra.mxu1 %v4080_v6  ;;  %v289_v6 = vrot.slane %v287_v31, 1  ;;  %v1074_v19 = vpack.c.bf16 %v976_v9, %v975_v7  ;;  %v50_v31 = vld [vmem:[%s6862_s0 + $0xf8] sm:$0xff]  ;;  %v983_v7 = vld [vmem:[%s6863_s1 + $0x310] sm:$0xff] }
  0x67   :  { %3503 = vmatprep.subr.bf16.mxu1 %v6867_v3 }
  0x68   :  { %v290_v59 = vor.u32 %v289_v6, %v285_v40  ;;  %v979_v40 = vld [vmem:[%s6863_s1 + $0x2f0] sm:$0xff]  ;;  %v313_v6 = vrot.slane %v311_v29, 1 }
  0x69   :  { %1698 = vmatpush1.bf16.msra.mxu0 %v1070_v18  ;;  %v702_v18 = vrot.slane %v4433_v17, 1 }
  0x6a   :  { %1699 = vmatprep.subr.bf16.mxu0 %v6867_v3  ;;  %3519 = vmatpush1.bf16.msra.mxu1 %v4097_v14  ;;  %v973_v14 = vld [vmem:[%s6863_s1 + $0x2c0] sm:$0xff]  ;;  %v4522_v11 = vsel %vm199_vm0, %v290_v59, %v294_v36  ;;  %v53_v36 = vld [vmem:[%s6862_s0 + $0x110] sm:$0xff] }
  0x6b   :  { %1174 = vmatmul.mubr.bf16.gmra.mrb[20].mxu1 %v4341_v23  ;;  %3504 = vmatprep.subr.bf16.mxu1 %v6867_v3  ;;  %v1073_v49 = vpack.c.bf16 %v974_v58, %v973_v14  ;;  %6957 = vst [vmem:[#allocation21_spill] sm:$0xff] %v4522_v11  ;;  %v4558_v34 = vsel %vm680_vm1, %v702_v18, %v703_v22  ;;  %v318_v14 = vrot.slane %v316_v8, 1 }
  0x6c   :  { %1463 = vmatmul.mubr.bf16.gmra.mrb[20].mxu0 %v4466_v38  ;;  %1181 = vmatprep.mubr.bf16.mxu1 %v4476_v45  ;;  %6958 = vst [vmem:[#allocation22_spill] sm:$0xff] %v4558_v34  ;;  %v4589_v58 = vpack.c.bf16 %v51_v30, %v51_v30 }
  0x6d   :  { %1700 = vmatpush1.bf16.msra.mxu0 %v1071_v39  ;;  %1470 = vmatprep.mubr.bf16.mxu0 %v4433_v17  ;;  %v4560_v39 = vpack.c.bf16 %v50_v31, %v49_v24 }
  0x6e   :  { %1701 = vmatprep.subr.bf16.mxu0 %v6867_v3  ;;  %3520 = vmatpush1.bf16.msra.mxu1 %v4114_v21  ;;  %v301_v21 = vrot.slane %v299_v63, 1 }
  0x6f   :  { %3505 = vmatprep.subr.bf16.mxu1 %v6867_v3  ;;  %v323_v59 = vshll.u32 %v4560_v39, 16  ;;  %v321_v0 = vshrl.u32 %v4560_v39, 16 }
  0x70   :  { %v302_v61 = vor.u32 %v301_v21, %v297_v4  ;;  %v328_v4 = vshll.u32 %v4589_v58, 16  ;;  %v54_v21 = vld [vmem:[%s6862_s0 + $0x118] sm:$0x3] }
  0x71   :  { %1702 = vmatpush1.bf16.msra.mxu0 %v1072_v52  ;;  %v1076_v52 = vpack.c.bf16 %v980_v41, %v979_v40  ;;  %v4623_v18 = vpack.c.bf16 %v54_v21, %v54_v21  ;;  %v987_v41 = vld [vmem:[%s6863_s1 + $0x330] sm:$0xff]  ;;  %v992_v21 = vld [vmem:[%s6863_s1 + $0x358] sm:$0xff] }
  0x72   :  { %1703 = vmatprep.subr.bf16.mxu0 %v6867_v3  ;;  %3521 = vmatpush1.bf16.msra.mxu1 %v4131_v28  ;;  %v978_v28 = vld [vmem:[%s6863_s1 + $0x2e8] sm:$0xff]  ;;  %v4569_v42 = vsel %vm199_vm0, %v302_v61, %v306_v26 }
  0x73   :  { %1182 = vmatmul.mubr.bf16.gmra.mrb[24].mxu1 %v4387_v53  ;;  %3506 = vmatprep.subr.bf16.mxu1 %v6867_v3  ;;  %v1075_v37 = vpack.c.bf16 %v978_v28, %v977_v25  ;;  %6959 = vst [vmem:[#allocation23_spill] sm:$0xff] %v4569_v42  ;;  %v985_v25 = vld [vmem:[%s6863_s1 + $0x320] sm:$0xff]  ;;  %v986_v28 = vld [vmem:[%s6863_s1 + $0x328] sm:$0xff]  ;;  %v340_v31 = vshll.u32 %v4623_v18, 16 }
  0x74   :  { %1471 = vmatmul.mubr.bf16.gmra.mrb[24].mxu0 %v4512_v2  ;;  %1189 = vmatprep.mubr.bf16.mxu1 %v4522_v11  ;;  %v1079_v40 = vpack.c.bf16 %v986_v28, %v985_v25  ;;  %v993_v28 = vld [vmem:[%s6863_s1 + $0x360] sm:$0xff] }
  0x75   :  { %1704 = vmatpush1.bf16.msra.mxu0 %v1073_v49  ;;  %1478 = vmatprep.mubr.bf16.mxu0 %v4479_v46  ;;  %v325_v49 = vrot.slane %v323_v59, 1  ;;  %v342_v30 = vrot.slane %v340_v31, 1  ;;  %v990_v59 = vld [vmem:[%s6863_s1 + $0x348] sm:$0xff] }
  0x76   :  { %1705 = vmatprep.subr.bf16.mxu0 %v6867_v3  ;;  %3522 = vmatpush1.bf16.msra.mxu1 %v4148_v35  ;;  %v309_v35 = vshrl.u32 %v4525_v50, 16 }
  0x77   :  { %3507 = vmatprep.subr.bf16.mxu1 %v6867_v3  ;;  %v326_v48 = vor.u32 %v325_v49, %v321_v0  ;;  %v60_v49 = vld [vmem:[%s6862_s0 + $0x148] sm:$0x3] }
  0x78   :  { %v314_v55 = vor.u32 %v313_v6, %v309_v35  ;;  %v988_v35 = vld [vmem:[%s6863_s1 + $0x338] sm:$0xff] }
  0x79   :  { %1706 = vmatpush1.bf16.msra.mxu0 %v1074_v19  ;;  %v330_v19 = vrot.slane %v328_v4, 1 }
  0x7a   :  { %1707 = vmatprep.subr.bf16.mxu0 %v6867_v3  ;;  %3523 = vmatpush1.bf16.msra.mxu1 %v4168_v43  ;;  %v982_v43 = vld [vmem:[%s6863_s1 + $0x308] sm:$0xff]  ;;  %v4603_v1 = vsel %vm199_vm0, %v314_v55, %v318_v14  ;;  %v59_v55 = vld [vmem:[%s6862_s0 + $0x140] sm:$0xff] }
  0x7b   :  { %1190 = vmatmul.mubr.bf16.gmra.mrb[28].mxu1 %v4433_v17  ;;  %3508 = vmatprep.subr.bf16.mxu1 %v6867_v3  ;;  %v1077_v63 = vpack.c.bf16 %v982_v43, %v981_v54  ;;  %6960 = vst [vmem:[#allocation24_spill] sm:$0xff] %v4603_v1  ;;  %v4643_v29 = vsel %vm199_vm0, %v326_v48, %v330_v19  ;;  %v58_v54 = vld [vmem:[%s6862_s0 + $0x138] sm:$0xff]  ;;  %v989_v14 = vld [vmem:[%s6863_s1 + $0x340] sm:$0xff] }
  0x7c   :  { %1479 = vmatmul.mubr.bf16.gmra.mrb[28].mxu0 %v4558_v34  ;;  %1197 = vmatprep.mubr.bf16.mxu1 %v4569_v42  ;;  %6961 = vst [vmem:[#allocation25_spill] sm:$0xff] %v4643_v29  ;;  %v1080_v43 = vpack.c.bf16 %v988_v35, %v987_v41  ;;  %v4684_v4 = vpack.c.bf16 %v59_v55, %v58_v54  ;;  %v63_v35 = vld [vmem:[%s6862_s0 + $0x160] sm:$0x3] }
  0x7d   :  { %1708 = vmatpush1.bf16.msra.mxu0 %v1075_v37  ;;  %1711 = vmatprep.mubr.bf16.mxu0 %v4282_v51  ;;  %v52_v51 = vld [vmem:[%s6862_s0 + $0x108] sm:$0xff]  ;;  %v57_v37 = vld [vmem:[%s6862_s0 + $0x130] sm:$0x3]  ;;  %v4733_v54 = vpack.c.bf16 %v63_v35, %v63_v35 }
  0x7e   :  { %1709 = vmatprep.subr.bf16.mxu0 %v6867_v3  ;;  %3524 = vmatpush1.bf16.msra.mxu1 %v4194_v57  ;;  %v984_v57 = vld [vmem:[%s6863_s1 + $0x318] sm:$0xff]  ;;  %v4612_v9 = vpack.c.bf16 %v53_v36, %v52_v51  ;;  %v4659_v6 = vpack.c.bf16 %v57_v37, %v57_v37  ;;  %v73_v35 = vld [vmem:[%s6862_s0 + $0x1b0] sm:$0xff] }
  0x7f   :  { %3509 = vmatprep.subr.bf16.mxu1 %v6867_v3  ;;  %v1078_v13 = vpack.c.bf16 %v984_v57, %v983_v7  ;;  %v1081_v7 = vpack.c.bf16 %v990_v59, %v989_v14  ;;  %v991_v57 = vld [vmem:[%s6863_s1 + $0x350] sm:$0xff]  ;;  %v64_v59 = vld [vmem:[%s6862_s0 + $0x168] sm:$0xff] }
  0x80   :  { %v335_v22 = vshll.u32 %v4612_v9, 16  ;;  %v333_v61 = vshrl.u32 %v4612_v9, 16  ;;  %v352_v36 = vshll.u32 %v4659_v6, 16  ;;  %v1082_v25 = vpack.c.bf16 %v992_v21, %v991_v57 }
  0x81   :  { %1710 = vmatpush1.bf16.msra.mxu0 %v1076_v52  ;;  %v376_v57 = vshll.u32 %v4733_v54, 16 }
  0x82   :  { %1968 = vmatprep.subr.bf16.mxu0 %v6867_v3  ;;  %3525 = vmatpush1.bf16.msra.mxu1 %v4220_v10  ;;  %v55_v10 = vld [vmem:[%s6862_s0 + $0x120] sm:$0xff]  ;;  %v337_v24 = vrot.slane %v335_v22, 1  ;;  %v354_v19 = vrot.slane %v352_v36, 1  ;;  %v359_v22 = vshll.u32 %v4684_v4, 16  ;;  %v65_v36 = vld [vmem:[%s6862_s0 + $0x170] sm:$0xff] }
  0x83   :  { %1198 = vmatmul.mubr.bf16.gmra.mrb[32].mxu1 %v4479_v46 }
  0x84   :  { %1712 = vmatmul.mubr.bf16.vlgmr.msra.gmra.mrb[0].mxu0 %v4253_v33  ;;  %1205 = vmatprep.mubr.bf16.mxu1 %v4603_v1  ;;  %v56_v33 = vld [vmem:[%s6862_s0 + $0x128] sm:$0xff]  ;;  %v338_v8 = vor.u32 %v337_v24, %v333_v61  ;;  %v357_v24 = vshrl.u32 %v4684_v4, 16 }
  0x85   :  { %1969 = vmatpush1.bf16.msra.mxu0 %v1077_v63  ;;  %1719 = vmatprep.mubr.bf16.mxu0 %v4328_v15  ;;  %v4640_v26 = vpack.c.bf16 %v56_v33, %v55_v10  ;;  %v61_v10 = vld [vmem:[%s6862_s0 + $0x150] sm:$0xff]  ;;  %v62_v33 = vld [vmem:[%s6862_s0 + $0x158] sm:$0xff]  ;;  %v994_v61 = vld [vmem:[%s6863_s1 + $0x368] sm:$0xff] }
  0x86   :  { %1970 = vmatprep.subr.bf16.mxu0 %v6867_v3  ;;  %v4679_v63 = vsel %vm199_vm0, %v338_v8, %v342_v30  ;;  %v4714_v31 = vpack.c.bf16 %v62_v33, %v61_v10  ;;  %v1083_v8 = vpack.c.bf16 %v994_v61, %v993_v28  ;;  %v995_v30 = vld [vmem:[%s6863_s1 + $0x370] sm:$0xff] }
  0x87   :  { %v347_v52 = vshll.u32 %v4640_v26, 16  ;;  %v345_v51 = vshrl.u32 %v4640_v26, 16  ;;  %6962 = vst [vmem:[#allocation26_spill] sm:$0xff] %v4679_v63  ;;  %v999_v33 = vld [vmem:[%s6863_s1 + $0x390] sm:$0xff] }
  0x88   :  { %v371_v14 = vshll.u32 %v4714_v31, 16 }
  0x89   :  { %1971 = vmatpush1.bf16.msra.mxu0 %v1078_v13  ;;  %v349_v0 = vrot.slane %v347_v52, 1  ;;  %v4696_v13 = vpack.c.bf16 %v60_v49, %v60_v49  ;;  %v996_v52 = vld [vmem:[%s6863_s1 + $0x378] sm:$0xff]  ;;  %v998_v49 = vld [vmem:[%s6863_s1 + $0x388] sm:$0xff] }
  0x8a   :  { %1972 = vmatprep.subr.bf16.mxu0 %v6867_v3 }
  0x8b   :  { %1206 = vmatmul.mubr.bf16.gmra.mrb[36].mxu1 %v4525_v50  ;;  %v350_v48 = vor.u32 %v349_v0, %v345_v51  ;;  %v364_v41 = vshll.u32 %v4696_v13, 16  ;;  %v1084_v51 = vpack.c.bf16 %v996_v52, %v995_v30  ;;  %v997_v0 = vld [vmem:[%s6863_s1 + $0x380] sm:$0xff]  ;;  %v1002_v52 = vld [vmem:[%s6863_s1 + $0x3a8] sm:$0xff] }
  0x8c   :  { %1720 = vmatmul.mubr.bf16.gmra.mrb[4].mxu0 %v4293_v56  ;;  %1213 = vmatprep.mubr.bf16.mxu1 %v4643_v29  ;;  %v1085_v10 = vpack.c.bf16 %v998_v49, %v997_v0  ;;  %v1001_v30 = vld [vmem:[%s6863_s1 + $0x3a0] sm:$0xff] }
  0x8d   :  { %1727 = vmatprep.mubr.bf16.mxu0 %v4374_v44  ;;  %1973 = vmatpush1.bf16.msra.mxu0 %v1079_v40  ;;  %v4717_v37 = vsel %vm199_vm0, %v350_v48, %v354_v19  ;;  %v361_v40 = vrot.slane %v359_v22, 1  ;;  %v366_v55 = vrot.slane %v364_v41, 1  ;;  %v373_v48 = vrot.slane %v371_v14, 1  ;;  %v66_v19 = vld [vmem:[%s6862_s0 + $0x178] sm:$0x3] }
  0x8e   :  { %1974 = vmatprep.subr.bf16.mxu0 %v6867_v3  ;;  %6963 = vst [vmem:[#allocation27_spill] sm:$0xff] %v4717_v37  ;;  %v4758_v22 = vpack.c.bf16 %v65_v36, %v64_v59  ;;  %v4770_v28 = vpack.c.bf16 %v66_v19, %v66_v19  ;;  %v1087_v36 = vpack.c.bf16 %v1002_v52, %v1001_v30  ;;  %v75_v0 = vld [vmem:[%s6862_s0 + $0x1c0] sm:$0x3]  ;;  %v705_v19 = vrot.slane %v4479_v46, 1  ;;  %v96_v46 = vld [vmem:[%s6862_s0 + $0x268] sm:$0x3] }
  0x90   :  { %v727_v17 = vrot.slane %v4770_v28, 1 }
  0x91   :  { %1975 = vmatpush1.bf16.msra.mxu0 %v1080_v43  ;;  %v362_v43 = vor.u32 %v361_v40, %v357_v24  ;;  %v378_v24 = vrot.slane %v376_v57, 1  ;;  %v383_v40 = vshll.u32 %v4758_v22, 16  ;;  %v4802_v57 = vpack.c.bf16 %v75_v0, %v75_v0  ;;  %v79_v0 = vld [vmem:[%s6862_s0 + $0x1e0] sm:$0xff] }
  0x92   :  { %1976 = vmatprep.subr.bf16.mxu0 %v6867_v3 }
  0x93   :  { %1214 = vmatmul.mubr.bf16.gmra.mrb[40].mxu1 %v4560_v39  ;;  %v4753_v21 = vsel %vm199_vm0, %v362_v43, %v366_v55  ;;  %v381_v43 = vshrl.u32 %v4758_v22, 16  ;;  %v388_v55 = vshll.u32 %v4770_v28, 16  ;;  %v385_v59 = vrot.slane %v383_v40, 1 }
  0x94   :  { %1728 = vmatmul.mubr.bf16.gmra.mrb[8].mxu0 %v4338_v20  ;;  %1221 = vmatprep.mubr.bf16.mxu1 %v4679_v63  ;;  %6964 = vst [vmem:[#allocation28_spill] sm:$0xff] %v4753_v21 }
  0x95   :  { %1735 = vmatprep.mubr.bf16.mxu0 %v4420_v5  ;;  %1977 = vmatpush1.bf16.msra.mxu0 %v1081_v7  ;;  %v369_v7 = vshrl.u32 %v4714_v31, 16  ;;  %v386_v49 = vor.u32 %v385_v59, %v381_v43  ;;  %v708_v59 = vrot.slane %v4525_v50, 1 }
  0x96   :  { %1978 = vmatprep.subr.bf16.mxu0 %v6867_v3 }
  0x97   :  { %v374_v61 = vor.u32 %v373_v48, %v369_v7  ;;  %v390_v7 = vrot.slane %v388_v55, 1 }
  0x99   :  { %1979 = vmatpush1.bf16.msra.mxu0 %v1082_v25  ;;  %v1000_v25 = vld [vmem:[%s6863_s1 + $0x398] sm:$0xff]  ;;  %v4790_v14 = vsel %vm199_vm0, %v374_v61, %v378_v24  ;;  %v4816_v24 = vsel %vm199_vm0, %v386_v49, %v390_v7  ;;  %v80_v49 = vld [vmem:[%s6862_s0 + $0x1e8] sm:$0xff]  ;;  %v1003_v7 = vld [vmem:[%s6863_s1 + $0x3b0] sm:$0xff] }
  0x9a   :  { %1980 = vmatprep.subr.bf16.mxu0 %v6867_v3  ;;  %v1086_v41 = vpack.c.bf16 %v1000_v25, %v999_v33  ;;  %6965 = vst [vmem:[#allocation29_spill] sm:$0xff] %v4790_v14  ;;  %v76_v33 = vld [vmem:[%s6862_s0 + $0x1c8] sm:$0xff]  ;;  %v77_v25 = vld [vmem:[%s6862_s0 + $0x1d0] sm:$0xff]  ;;  %6966 = vst [vmem:[#allocation30_spill] sm:$0xff] %v4816_v24 }
  0x9b   :  { %1222 = vmatmul.mubr.bf16.gmra.mrb[44].mxu1 %v4612_v9 }
  0x9c   :  { %1736 = vmatmul.mubr.bf16.gmra.mrb[12].mxu0 %v4384_v47  ;;  %1229 = vmatprep.mubr.bf16.mxu1 %v4717_v37 }
  0x9d   :  { %1743 = vmatprep.mubr.bf16.mxu0 %v4466_v38  ;;  %1981 = vmatpush1.bf16.msra.mxu0 %v1083_v8  ;;  %v74_v8 = vld [vmem:[%s6862_s0 + $0x1b8] sm:$0xff]  ;;  %v87_v38 = vld [vmem:[%s6862_s0 + $0x220] sm:$0x3] }
  0x9e   :  { %1982 = vmatprep.subr.bf16.mxu0 %v6867_v3 }
  0xa1   :  { %1983 = vmatpush1.bf16.msra.mxu0 %v1084_v51  ;;  %v4792_v51 = vpack.c.bf16 %v74_v8, %v73_v35  ;;  %v4819_v35 = vpack.c.bf16 %v77_v25, %v76_v33  ;;  %v78_v8 = vld [vmem:[%s6862_s0 + $0x1d8] sm:$0x3] }
  0xa2   :  { %1984 = vmatprep.subr.bf16.mxu0 %v6867_v3  ;;  %v4831_v43 = vpack.c.bf16 %v78_v8, %v78_v8 }
  0xa3   :  { %1230 = vmatmul.mubr.bf16.gmra.mrb[48].mxu1 %v4640_v26  ;;  %v395_v48 = vshll.u32 %v4792_v51, 16  ;;  %v393_v61 = vshrl.u32 %v4792_v51, 16  ;;  %v407_v55 = vshll.u32 %v4819_v35, 16 }
  0xa4   :  { %1744 = vmatmul.mubr.bf16.gmra.mrb[16].mxu0 %v4430_v16  ;;  %1237 = vmatprep.mubr.bf16.mxu1 %v4753_v21  ;;  %v412_v25 = vshll.u32 %v4831_v43, 16 }
  0xa5   :  { %1751 = vmatprep.mubr.bf16.mxu0 %v4512_v2  ;;  %1985 = vmatpush1.bf16.msra.mxu0 %v1085_v10  ;;  %v706_v10 = vrot.slane %v4499_v12, 1  ;;  %v397_v40 = vrot.slane %v395_v48, 1  ;;  %v1004_v48 = vld [vmem:[%s6863_s1 + $0x3b8] sm:$0xff]  ;;  %v409_v33 = vrot.slane %v407_v55, 1 }
  0xa6   :  { %1986 = vmatprep.subr.bf16.mxu0 %v6867_v3 }
  0xa7   :  { %v4822_v12 = vsel %vm680_vm1, %v705_v19, %v706_v10  ;;  %v398_v30 = vor.u32 %v397_v40, %v393_v61  ;;  %v405_v19 = vshrl.u32 %v4819_v35, 16  ;;  %v1088_v10 = vpack.c.bf16 %v1004_v48, %v1003_v7  ;;  %v81_v61 = vld [vmem:[%s6862_s0 + $0x1f0] sm:$0x3] }
  0xa8   :  { %v4854_v40 = vpack.c.bf16 %v80_v49, %v79_v0  ;;  %v4862_v8 = vpack.c.bf16 %v81_v61, %v81_v61  ;;  %v711_v0 = vrot.slane %v4560_v39, 1  ;;  %v83_v49 = vld [vmem:[%s6862_s0 + $0x200] sm:$0xff] }
  0xa9   :  { %1987 = vmatpush1.bf16.msra.mxu0 %v1086_v41  ;;  %v400_v41 = vshll.u32 %v4802_v57, 16  ;;  %v1013_v61 = vld [vmem:[%s6863_s1 + $0x400] sm:$0xff] }
  0xaa   :  { %1988 = vmatprep.subr.bf16.mxu0 %v6867_v3  ;;  %v419_v55 = vshll.u32 %v4854_v40, 16  ;;  %v424_v7 = vshll.u32 %v4862_v8, 16 }
  0xab   :  { %1238 = vmatmul.mubr.bf16.gmra.mrb[52].mxu1 %v4684_v4  ;;  %v402_v52 = vrot.slane %v400_v41, 1 }
  0xac   :  { %1752 = vmatmul.mubr.bf16.gmra.mrb[20].mxu0 %v4476_v45  ;;  %1245 = vmatprep.mubr.bf16.mxu1 %v4790_v14 }
  0xad   :  { %1759 = vmatprep.mubr.bf16.mxu0 %v4558_v34  ;;  %1989 = vmatpush1.bf16.msra.mxu0 %v1087_v36  ;;  %v709_v36 = vrot.slane %v4545_v27, 1  ;;  %v403_v27 = vsel %vm199_vm0, %v398_v30, %v402_v52  ;;  %v410_v30 = vor.u32 %v409_v33, %v405_v19  ;;  %v414_v52 = vrot.slane %v412_v25, 1  ;;  %v84_v33 = vld [vmem:[%s6862_s0 + $0x208] sm:$0x3] }
  0xae   :  { %1990 = vmatprep.subr.bf16.mxu0 %v6867_v3  ;;  %v417_v19 = vshrl.u32 %v4854_v40, 16  ;;  %v426_v25 = vrot.slane %v424_v7, 1  ;;  %v714_v7 = vrot.slane %v4612_v9, 1 }
  0xaf   :  { %v4857_v41 = vsel %vm680_vm1, %v708_v59, %v709_v36  ;;  %v712_v59 = vrot.slane %v4589_v58, 1  ;;  %v82_v36 = vld [vmem:[%s6862_s0 + $0x1f8] sm:$0xff]  ;;  %v4876_v48 = vsel %vm199_vm0, %v410_v30, %v414_v52  ;;  %v1014_v30 = vld [vmem:[%s6863_s1 + $0x408] sm:$0xff] }
  0xb1   :  { %1991 = vmatpush1.bf16.msra.mxu0 %v1088_v10  ;;  %v421_v10 = vrot.slane %v419_v55, 1  ;;  %v4882_v58 = vsel %vm680_vm1, %v711_v0, %v712_v59  ;;  %v4897_v55 = vpack.c.bf16 %v84_v33, %v84_v33  ;;  %v85_v59 = vld [vmem:[%s6862_s0 + $0x210] sm:$0xff] }
  0xb2   :  { %1992 = vmatprep.subr.bf16.mxu0 %v6867_v3  ;;  %v715_v3 = vrot.slane %v4623_v18, 1 }
  0xb3   :  { %1246 = vmatmul.mubr.bf16.gmra.mrb[56].mxu1 %v4714_v31  ;;  %v422_v52 = vor.u32 %v421_v10, %v417_v19  ;;  %v1005_v19 = vld [vmem:[%s6863_s1 + $0x3c0] sm:$0xff]  ;;  %v1006_v10 = vld [vmem:[%s6863_s1 + $0x3c8] sm:$0xff]  ;;  %v436_v18 = vshll.u32 %v4897_v55, 16 }
  0xb4   :  { %1760 = vmatmul.mubr.bf16.gmra.mrb[24].mxu0 %v4522_v11  ;;  %1253 = vmatprep.mubr.bf16.mxu1 %v4816_v24  ;;  %v1089_v34 = vpack.c.bf16 %v1006_v10, %v1005_v19  ;;  %v4928_v5 = vsel %vm680_vm1, %v714_v7, %v715_v3  ;;  %v717_v3 = vrot.slane %v4640_v26, 1  ;;  %v88_v7 = vld [vmem:[%s6862_s0 + $0x228] sm:$0xff]  ;;  %v89_v19 = vld [vmem:[%s6862_s0 + $0x230] sm:$0xff] }
  0xb5   :  { %1767 = vmatprep.mubr.bf16.mxu0 %v4822_v12  ;;  %v97_v11 = vld [vmem:[%s6862_s0 + $0x270] sm:$0xff] }
  0xb6   :  { %1993 = vmatpush1.bf16.msra.mxu0 %v1089_v34  ;;  %v718_v34 = vrot.slane %v4659_v6, 1 }
  0xb8   :  { %v4954_v6 = vsel %vm680_vm1, %v717_v3, %v718_v34 }
  0xbb   :  { %1254 = vmatmul.mubr.bf16.gmra.mrb[60].mxu1 %v4758_v22 }
  0xbc   :  { %1768 = vmatmul.mubr.bf16.gmra.mrb[28].mxu0 %v4569_v42  ;;  %1261 = vmatprep.mubr.bf16.mxu1 %v403_v27  ;;  %v4879_v27 = vpack.c.bf16 %v83_v49, %v82_v36  ;;  %v86_v36 = vld [vmem:[%s6862_s0 + $0x218] sm:$0xff]  ;;  %v4906_v49 = vpack.c.bf16 %v1014_v30, %v1013_v61  ;;  %v4920_v61 = vsel %vm199_vm0, %v422_v52, %v426_v25 }
  0xbd   :  { %1775 = vmatprep.mubr.bf16.mxu0 %v4857_v41  ;;  %v4917_v33 = vpack.c.bf16 %v86_v36, %v85_v59  ;;  %6969 = vst [vmem:[#allocation33_spill] sm:$0xff] %v4920_v61  ;;  %v6970_v59 = vmov 0   ;;  %v4934_v25 = vpack.c.bf16 %v87_v38, %v87_v38  ;;  %v438_v36 = vrot.slane %v436_v18, 1  ;;  %v90_v18 = vld [vmem:[%s6862_s0 + $0x238] sm:$0x3] }
  0xbe   :  { %6967 = vst [vmem:[#allocation31_spill] sm:$0xff] %v4879_v27  ;;  %v431_v0 = vshll.u32 %v4879_v27, 16  ;;  %3414 = vmatprep.subr.bf16.mxu1 %v4906_v49  ;;  %v429_v30 = vshrl.u32 %v4879_v27, 16  ;;  %1994 = vmatprep.subr.bf16.mxu0 %v6970_v59  ;;  %v4969_v3 = vpack.c.bf16 %v90_v18, %v90_v18 }
  0xbf   :  { %6968 = vst [vmem:[#allocation32_spill] sm:$0xff] %v4917_v33  ;;  %v443_v52 = vshll.u32 %v4917_v33, 16  ;;  %v441_v38 = vshrl.u32 %v4917_v33, 16  ;;  %v448_v44 = vshll.u32 %v4934_v25, 16 }
  0xc0   :  { %v433_v2 = vrot.slane %v431_v0, 1 }
  0xc1   :  { %v445_v10 = vrot.slane %v443_v52, 1  ;;  %v450_v15 = vrot.slane %v448_v44, 1  ;;  %v91_v44 = vld [vmem:[%s6862_s0 + $0x240] sm:$0xff] }
  0xc2   :  { %v434_v0 = vor.u32 %v433_v2, %v429_v30  ;;  %v4951_v30 = vpack.c.bf16 %v89_v19, %v88_v7  ;;  %v720_v19 = vrot.slane %v4684_v4, 1 }
  0xc3   :  { %1262 = vmatmul.mubr.bf16.gmra.mrb[64].mxu1 %v4792_v51  ;;  %v446_v52 = vor.u32 %v445_v10, %v441_v38  ;;  %v721_v38 = vrot.slane %v4696_v13, 1  ;;  %v92_v10 = vld [vmem:[%s6862_s0 + $0x248] sm:$0xff] }
  0xc4   :  { %1776 = vmatmul.mubr.bf16.gmra.mrb[32].mxu0 %v4603_v1  ;;  %1269 = vmatprep.mubr.bf16.mxu1 %v4876_v48  ;;  %v4949_v2 = vsel %vm199_vm0, %v434_v0, %v438_v36  ;;  %6972 = vst [vmem:[#allocation35_spill] sm:$0xff] %v4951_v30  ;;  %v1007_v0 = vld [vmem:[%s6863_s1 + $0x3d0] sm:$0xff]  ;;  %v1008_v36 = vld [vmem:[%s6863_s1 + $0x3d8] sm:$0xff]  ;;  %v455_v34 = vshll.u32 %v4951_v30, 16  ;;  %v453_v18 = vshrl.u32 %v4951_v30, 16  ;;  %v4986_v13 = vpack.c.bf16 %v92_v10, %v91_v44 }
  0xc5   :  { %1783 = vmatprep.mubr.bf16.mxu0 %v4882_v58  ;;  %6971 = vst [vmem:[#allocation34_spill] sm:$0xff] %v4949_v2  ;;  %v1090_v7 = vpack.c.bf16 %v1008_v36, %v1007_v0  ;;  %v460_v36 = vshll.u32 %v4969_v3, 16  ;;  %v93_v1 = vld [vmem:[%s6862_s0 + $0x250] sm:$0x3]  ;;  %v723_v44 = vrot.slane %v4714_v31, 1  ;;  %v724_v10 = vrot.slane %v4733_v54, 1 }
  0xc6   :  { %v457_v0 = vrot.slane %v455_v34, 1  ;;  %6974 = vst [vmem:[#allocation37_spill] sm:$0xff] %v4986_v13  ;;  %v4998_v34 = vpack.c.bf16 %v93_v1, %v93_v1  ;;  %v465_v1 = vshrl.u32 %v4986_v13, 16  ;;  %v5025_v54 = vpack.c.bf16 %v96_v46, %v96_v46  ;;  %v68_v46 = vld [vmem:[%s6862_s0 + $0x188] sm:$0xff] }
  0xc7   :  { %1995 = vmatpush1.bf16.msra.mxu0 %v1090_v7  ;;  %v467_v7 = vshll.u32 %v4986_v13, 16  ;;  %v5020_v42 = vsel %vm680_vm1, %v723_v44, %v724_v10  ;;  %v67_v44 = vld [vmem:[%s6862_s0 + $0x180] sm:$0xff] }
  0xc8   :  { %1996 = vmatprep.subr.bf16.mxu0 %v6970_v59  ;;  %v5054_v53 = vpack.c.bf16 %v68_v46, %v67_v44  ;;  %v100_v44 = vld [vmem:[%s6862_s0 + $0x288] sm:$0xff]  ;;  %v101_v46 = vld [vmem:[%s6862_s0 + $0x290] sm:$0xff] }
  0xc9   :  { %v5089_v60 = vpack.c.bf16 %v101_v46, %v100_v44  ;;  %v103_v44 = vld [vmem:[%s6862_s0 + $0x2a0] sm:$0xff]  ;;  %v104_v46 = vld [vmem:[%s6862_s0 + $0x2a8] sm:$0xff] }
  0xcb   :  { %1270 = vmatmul.mubr.bf16.gmra.mrb[68].mxu1 %v4819_v35 }
  0xcc   :  { %1784 = vmatmul.mubr.bf16.gmra.mrb[36].mxu0 %v4643_v29  ;;  %1277 = vmatprep.mubr.bf16.mxu1 %v4920_v61  ;;  %v4989_v29 = vsel %vm680_vm1, %v720_v19, %v721_v38  ;;  %v94_v19 = vld [vmem:[%s6862_s0 + $0x258] sm:$0xff]  ;;  %v95_v38 = vld [vmem:[%s6862_s0 + $0x260] sm:$0xff] }
  0xcd   :  { %1791 = vmatprep.mubr.bf16.mxu0 %v4928_v5 }
  0xd3   :  { %1278 = vmatmul.mubr.bf16.gmra.mrb[72].mxu1 %v4854_v40 }
  0xd4   :  { %1792 = vmatmul.mubr.bf16.gmra.mrb[40].mxu0 %v4679_v63  ;;  %1285 = vmatprep.mubr.bf16.mxu1 %v4949_v2  ;;  %v4981_v63 = vsel %vm199_vm0, %v446_v52, %v450_v15  ;;  %v458_v15 = vor.u32 %v457_v0, %v453_v18  ;;  %v462_v52 = vrot.slane %v460_v36, 1  ;;  %v469_v0 = vrot.slane %v467_v7, 1  ;;  %v1010_v7 = vld [vmem:[%s6863_s1 + $0x3e8] sm:$0xff] }
  0xd5   :  { %1799 = vmatprep.mubr.bf16.mxu0 %v4954_v6  ;;  %6973 = vst [vmem:[#allocation36_spill] sm:$0xff] %v4981_v63  ;;  %v472_v36 = vshll.u32 %v4998_v34, 16 }
  0xd6   :  { %v5012_v18 = vsel %vm199_vm0, %v458_v15, %v462_v52  ;;  %v1009_v52 = vld [vmem:[%s6863_s1 + $0x3e0] sm:$0xff] }
  0xd7   :  { %6975 = vst [vmem:[#allocation38_spill] sm:$0xff] %v5012_v18  ;;  %v1091_v10 = vpack.c.bf16 %v1010_v7, %v1009_v52  ;;  %v484_v7 = vshll.u32 %v5025_v54, 16 }
  0xd9   :  { %1997 = vmatpush1.bf16.msra.mxu0 %v1091_v10  ;;  %v99_v10 = vld [vmem:[%s6862_s0 + $0x280] sm:$0x3] }
  0xda   :  { %1998 = vmatprep.subr.bf16.mxu0 %v6970_v59 }
  0xdb   :  { %1286 = vmatmul.mubr.bf16.gmra.mrb[76].mxu1 %v4879_v27 }
  0xdc   :  { %1800 = vmatmul.mubr.bf16.gmra.mrb[44].mxu0 %v4717_v37  ;;  %1293 = vmatprep.mubr.bf16.mxu1 %v4981_v63  ;;  %v5009_v37 = vpack.c.bf16 %v95_v38, %v94_v19  ;;  %v470_v19 = vor.u32 %v469_v0, %v465_v1  ;;  %v474_v38 = vrot.slane %v472_v36, 1  ;;  %v98_v1 = vld [vmem:[%s6862_s0 + $0x278] sm:$0xff]  ;;  %v69_v0 = vld [vmem:[%s6862_s0 + $0x190] sm:$0x3] }
  0xdd   :  { %1807 = vmatprep.mubr.bf16.mxu0 %v4989_v29  ;;  %v5060_v45 = vpack.c.bf16 %v98_v1, %v97_v11  ;;  %v160_v16 = vpack.c.bf16 %v69_v0, %v69_v0  ;;  %v5073_v11 = vpack.c.bf16 %v99_v10, %v99_v10  ;;  %v810_v0 = vshrl.u32 %v5054_v53, 16 }
  0xde   :  { %v479_v15 = vshll.u32 %v5009_v37, 16  ;;  %v477_v36 = vshrl.u32 %v5009_v37, 16  ;;  %v5058_v28 = vsel %vm199_vm0, %v470_v19, %v474_v38  ;;  %v812_v19 = vshll.u32 %v5054_v53, 16 }
  0xdf   :  { %v840_v38 = vrot.slane %v160_v16, 1 }
  0xe0   :  { %v481_v52 = vrot.slane %v479_v15, 1  ;;  %v486_v15 = vrot.slane %v484_v7, 1  ;;  %v489_v7 = vshrl.u32 %v5060_v45, 16 }
  0xe2   :  { %v482_v59 = vor.u32 %v481_v52, %v477_v36  ;;  %v814_v36 = vrot.slane %v812_v19, 1  ;;  %v817_v52 = vshll.u32 %v160_v16, 16 }
  0xe3   :  { %1294 = vmatmul.mubr.bf16.gmra.mrb[80].mxu1 %v4917_v33 }
  0xe4   :  { %1808 = vmatmul.mubr.bf16.gmra.mrb[48].mxu0 %v4753_v21  ;;  %1301 = vmatprep.mubr.bf16.mxu1 %v5012_v18  ;;  %v726_v21 = vrot.slane %v4758_v22, 1  ;;  %v5084_v1 = vsel %vm199_vm0, %v482_v59, %v486_v15  ;;  %v815_v16 = vor.u32 %v814_v36, %v810_v0  ;;  %v819_v59 = vrot.slane %v817_v52, 1  ;;  %v1011_v15 = vld [vmem:[%s6863_s1 + $0x3f0] sm:$0xff]  ;;  %v1012_v0 = vld [vmem:[%s6863_s1 + $0x3f8] sm:$0xff] }
  0xe5   :  { %1815 = vmatprep.mubr.bf16.mxu0 %v5020_v42  ;;  %v732_v36 = vrot.slane %v4819_v35, 1 }
  0xe6   :  { %v5063_v23 = vsel %vm680_vm1, %v726_v21, %v727_v17  ;;  %v491_v17 = vshll.u32 %v5060_v45, 16  ;;  %v839_v21 = vrot.slane %v5054_v53, 1  ;;  %v5119_v52 = vsel %vm199_vm0, %v815_v16, %v819_v59 }
  0xe7   :  { %6977 = vst [vmem:[#allocation40_spill] sm:$0xff] %v5119_v52  ;;  %v5137_v16 = vpack.c.bf16 %v105_v62, %v105_v62 }
  0xe8   :  { %v493_v10 = vrot.slane %v491_v17, 1  ;;  %v5092_v47 = vsel %vm680_vm1, %v839_v21, %v840_v38  ;;  %v5104_v21 = vpack.c.bf16 %v102_v32, %v102_v32  ;;  %v503_v38 = vshll.u32 %v5089_v60, 16 }
  0xe9   :  { %6976 = vst [vmem:[#allocation39_spill] sm:$0xff] %v5092_v47  ;;  %v1092_v32 = vpack.c.bf16 %v1012_v0, %v1011_v15 }
  0xea   :  { %v494_v19 = vor.u32 %v493_v10, %v489_v7  ;;  %v5121_v7 = vpack.c.bf16 %v104_v46, %v103_v44  ;;  %v508_v20 = vshll.u32 %v5104_v21, 16  ;;  %v106_v44 = vld [vmem:[%s6862_s0 + $0x2b8] sm:$0xff]  ;;  %v107_v46 = vld [vmem:[%s6862_s0 + $0x2c0] sm:$0xff] }
  0xeb   :  { %1302 = vmatmul.mubr.bf16.gmra.mrb[84].mxu1 %v4951_v30  ;;  %1999 = vmatpush1.bf16.msra.mxu0 %v1092_v32 }
  0xec   :  { %1816 = vmatmul.mubr.bf16.gmra.mrb[52].mxu0 %v4790_v14  ;;  %1309 = vmatprep.mubr.bf16.mxu1 %v5058_v28  ;;  %v496_v14 = vshll.u32 %v5073_v11, 16  ;;  %v515_v59 = vshll.u32 %v5121_v7, 16  ;;  %v513_v62 = vshrl.u32 %v5121_v7, 16 }
  0xed   :  { %1823 = vmatprep.mubr.bf16.mxu0 %v5063_v23 }
  0xee   :  { %v498_v17 = vrot.slane %v496_v14, 1  ;;  %v733_v14 = vrot.slane %v4831_v43, 1  ;;  %v517_v0 = vrot.slane %v515_v59, 1 }
  0xf0   :  { %v5124_v10 = vsel %vm199_vm0, %v494_v19, %v498_v17  ;;  %v5132_v43 = vsel %vm680_vm1, %v732_v36, %v733_v14  ;;  %v510_v19 = vrot.slane %v508_v20, 1  ;;  %v735_v17 = vrot.slane %v4854_v40, 1 }
  0xf1   :  { %v520_v36 = vshll.u32 %v5137_v16, 16  ;;  %v5154_v20 = vpack.c.bf16 %v107_v46, %v106_v44  ;;  %v518_v14 = vor.u32 %v517_v0, %v513_v62 }
  0xf3   :  { %1310 = vmatmul.mubr.bf16.gmra.mrb[88].mxu1 %v4986_v13  ;;  %v522_v32 = vrot.slane %v520_v36, 1  ;;  %v525_v46 = vshrl.u32 %v5154_v20, 16 }
  0xf4   :  { %1824 = vmatmul.mubr.bf16.gmra.mrb[56].mxu0 %v4816_v24  ;;  %1317 = vmatprep.mubr.bf16.mxu1 %v5084_v1  ;;  %v505_v24 = vrot.slane %v503_v38, 1  ;;  %v736_v38 = vrot.slane %v4862_v8, 1  ;;  %v108_v8 = vld [vmem:[%s6862_s0 + $0x2c8] sm:$0x3] }
  0xf5   :  { %1831 = vmatprep.mubr.bf16.mxu0 %v5092_v47  ;;  %v501_v47 = vshrl.u32 %v5089_v60, 16  ;;  %v5166_v59 = vpack.c.bf16 %v108_v8, %v108_v8  ;;  %v5178_v44 = vsel %vm199_vm0, %v518_v14, %v522_v32  ;;  %v111_v8 = vld [vmem:[%s6862_s0 + $0x2e0] sm:$0x3] }
  0xf7   :  { %v506_v15 = vor.u32 %v505_v24, %v501_v47  ;;  %v5157_v24 = vsel %vm680_vm1, %v735_v17, %v736_v38  ;;  %v739_v17 = vrot.slane %v4897_v55, 1  ;;  %v109_v38 = vld [vmem:[%s6862_s0 + $0x2d0] sm:$0xff]  ;;  %v532_v0 = vshll.u32 %v5166_v59, 16 }
  0xf8   :  { %6978 = vst [vmem:[#allocation41_spill] sm:$0xff] %v5157_v24 }
  0xf9   :  { %v5152_v47 = vsel %vm199_vm0, %v506_v15, %v510_v19  ;;  %v527_v15 = vshll.u32 %v5154_v20, 16  ;;  %v738_v19 = vrot.slane %v4879_v27, 1  ;;  %v534_v32 = vrot.slane %v532_v0, 1 }
  0xfb   :  { %1318 = vmatmul.mubr.bf16.gmra.mrb[92].mxu1 %v5009_v37  ;;  %v529_v62 = vrot.slane %v527_v15, 1  ;;  %v5185_v55 = vsel %vm680_vm1, %v738_v19, %v739_v17  ;;  %v5194_v15 = vpack.c.bf16 %v111_v8, %v111_v8  ;;  %v112_v19 = vld [vmem:[%s6862_s0 + $0x2e8] sm:$0xff]  ;;  %v113_v17 = vld [vmem:[%s6862_s0 + $0x2f0] sm:$0xff] }
  0xfc   :  { %1832 = vmatmul.mubr.bf16.gmra.mrb[60].mxu0 %v5119_v52  ;;  %1325 = vmatprep.mubr.bf16.mxu1 %v5124_v10  ;;  %6979 = vst [vmem:[#allocation42_spill] sm:$0xff] %v5185_v55  ;;  %v5205_v52 = vpack.c.bf16 %v113_v17, %v112_v19  ;;  %v744_v17 = vrot.slane %v4951_v30, 1 }
  0xfd   :  { %1839 = vmatprep.mubr.bf16.mxu0 %v5132_v43  ;;  %v530_v14 = vor.u32 %v529_v62, %v525_v46  ;;  %v544_v8 = vshll.u32 %v5194_v15, 16 }
  0xff   :  { %v5208_v46 = vsel %vm199_vm0, %v530_v14, %v534_v32  ;;  %v551_v14 = vshll.u32 %v5205_v52, 16 }
 0x103   :  { %1326 = vmatmul.mubr.bf16.gmra.mrb[96].mxu1 %v5060_v45 }
 0x104   :  { %1840 = vmatmul.mubr.bf16.gmra.mrb[64].mxu0 %v4876_v48  ;;  %1333 = vmatprep.mubr.bf16.mxu1 %v5152_v47  ;;  %v110_v48 = vld [vmem:[%s6862_s0 + $0x2d8] sm:$0xff] }
 0x105   :  { %1847 = vmatprep.mubr.bf16.mxu0 %v5157_v24  ;;  %v5182_v36 = vpack.c.bf16 %v110_v48, %v109_v38  ;;  %v741_v48 = vrot.slane %v4917_v33, 1 }
 0x107   :  { %v539_v38 = vshll.u32 %v5182_v36, 16  ;;  %v537_v62 = vshrl.u32 %v5182_v36, 16 }
 0x109   :  { %v541_v0 = vrot.slane %v539_v38, 1  ;;  %v546_v38 = vrot.slane %v544_v8, 1 }
 0x10b   :  { %1334 = vmatmul.mubr.bf16.gmra.mrb[100].mxu1 %v5089_v60  ;;  %v542_v32 = vor.u32 %v541_v0, %v537_v62  ;;  %v549_v62 = vshrl.u32 %v5205_v52, 16  ;;  %v553_v0 = vrot.slane %v551_v14, 1 }
 0x10c   :  { %1848 = vmatmul.mubr.bf16.gmra.mrb[68].mxu0 %v4920_v61  ;;  %1341 = vmatprep.mubr.bf16.mxu1 %v5178_v44  ;;  %v742_v61 = vrot.slane %v4934_v25, 1 }
 0x10d   :  { %1855 = vmatprep.mubr.bf16.mxu0 %v5185_v55  ;;  %v114_v55 = vld [vmem:[%s6862_s0 + $0x2f8] sm:$0x3]  ;;  %v554_v14 = vor.u32 %v553_v0, %v549_v62  ;;  %v119_v62 = vld [vmem:[%s6862_s0 + $0x320] sm:$0xff] }
 0x10e   :  { %v5216_v24 = vsel %vm680_vm1, %v741_v48, %v742_v61  ;;  %v5221_v25 = vpack.c.bf16 %v114_v55, %v114_v55  ;;  %v745_v61 = vrot.slane %v4969_v3, 1  ;;  %v115_v48 = vld [vmem:[%s6862_s0 + $0x300] sm:$0xff]  ;;  %v116_v55 = vld [vmem:[%s6862_s0 + $0x308] sm:$0xff] }
 0x10f   :  { %6980 = vst [vmem:[#allocation43_spill] sm:$0xff] %v5216_v24  ;;  %v5242_v3 = vpack.c.bf16 %v116_v55, %v115_v48  ;;  %v748_v48 = vrot.slane %v4998_v34, 1  ;;  %v118_v55 = vld [vmem:[%s6862_s0 + $0x318] sm:$0xff] }
 0x110   :  { %v556_v8 = vshll.u32 %v5221_v25, 16  ;;  %v5245_v30 = vsel %vm680_vm1, %v744_v17, %v745_v61  ;;  %v747_v61 = vrot.slane %v4986_v13, 1 }
 0x111   :  { %6983 = vst [vmem:[#allocation46_spill] sm:$0xff] %v5245_v30 }
 0x112   :  { %v5277_v13 = vsel %vm680_vm1, %v747_v61, %v748_v48  ;;  %v750_v48 = vrot.slane %v5009_v37, 1 }
 0x113   :  { %1342 = vmatmul.mubr.bf16.gmra.mrb[104].mxu1 %v5121_v7 }
 0x114   :  { %1856 = vmatmul.mubr.bf16.gmra.mrb[72].mxu0 %v4949_v2  ;;  %1349 = vmatprep.mubr.bf16.mxu1 %v5208_v46 }
 0x115   :  { %1863 = vmatprep.mubr.bf16.mxu0 %v5216_v24  ;;  %v5240_v24 = vsel %vm199_vm0, %v542_v32, %v546_v38  ;;  %v563_v38 = vshll.u32 %v5242_v3, 16 }
 0x116   :  { %v5225_v19 = vpop.f32.mrb[0].mxu1 }
 0x117   :  { %6981 = vst [vmem:[#allocation44_spill] sm:$0xff] %v5225_v19  ;;  %v1137_v2 = vpop.f32.mrb[1].mxu1 }
 0x118   :  { %v5235_v33 = vpop.f32.mrb[2].mxu1  ;;  %v117_v2 = vld [vmem:[%s6862_s0 + $0x310] sm:$0x3] }
 0x119   :  { %6982 = vst [vmem:[#allocation45_spill] sm:$0xff] %v5235_v33  ;;  %v1140_v19 = vpop.f32.mrb[3].mxu1  ;;  %v5254_v32 = vpack.c.bf16 %v117_v2, %v117_v2 }
 0x11a   :  { %v558_v19 = vrot.slane %v556_v8, 1 }
 0x11b   :  { %1350 = vmatmul.mubr.bf16.gmra.mrb[108].mxu1 %v5154_v20  ;;  %v568_v34 = vshll.u32 %v5254_v32, 16 }
 0x11c   :  { %1864 = vmatmul.mubr.bf16.gmra.mrb[76].mxu0 %v4981_v63  ;;  %1357 = vmatprep.mubr.bf16.mxu1 %v5240_v24  ;;  %v5270_v2 = vsel %vm199_vm0, %v554_v14, %v558_v19  ;;  %v565_v63 = vrot.slane %v563_v38, 1 }
 0x11d   :  { %1871 = vmatprep.mubr.bf16.mxu0 %v5245_v30  ;;  %v5274_v30 = vpack.c.bf16 %v119_v62, %v118_v55  ;;  %v570_v14 = vrot.slane %v568_v34, 1  ;;  %v751_v55 = vrot.slane %v5025_v54, 1 }
 0x11e   :  { %v5257_v17 = vpop.f32.mrb[4].mxu1 }
 0x11f   :  { %6984 = vst [vmem:[#allocation47_spill] sm:$0xff] %v5257_v17  ;;  %v1145_v0 = vpop.f32.mrb[5].mxu1  ;;  %v561_v17 = vshrl.u32 %v5242_v3, 16  ;;  %v575_v38 = vshll.u32 %v5274_v30, 16 }
 0x120   :  { %v5267_v8 = vpop.f32.mrb[6].mxu1  ;;  %v120_v0 = vld [vmem:[%s6862_s0 + $0x328] sm:$0x3] }
 0x121   :  { %6985 = vst [vmem:[#allocation48_spill] sm:$0xff] %v5267_v8  ;;  %v1148_v33 = vpop.f32.mrb[7].mxu1  ;;  %v5286_v19 = vpack.c.bf16 %v120_v0, %v120_v0  ;;  %v5301_v0 = vsel %vm680_vm1, %v750_v48, %v751_v55 }
 0x122   :  { %v566_v33 = vor.u32 %v565_v63, %v561_v17  ;;  %v573_v63 = vshrl.u32 %v5274_v30, 16  ;;  %v577_v17 = vrot.slane %v575_v38, 1  ;;  %v754_v38 = vrot.slane %v5073_v11, 1 }
 0x123   :  { %1358 = vmatmul.mubr.bf16.gmra.mrb[112].mxu1 %v5182_v36  ;;  %v580_v34 = vshll.u32 %v5286_v19, 16  ;;  %v756_v11 = vrot.slane %v5089_v60, 1 }
 0x124   :  { %1872 = vmatmul.mubr.bf16.gmra.mrb[80].mxu0 %v5012_v18  ;;  %1365 = vmatprep.mubr.bf16.mxu1 %v5270_v2  ;;  %v5296_v27 = vsel %vm199_vm0, %v566_v33, %v570_v14  ;;  %v753_v14 = vrot.slane %v5060_v45, 1 }
 0x125   :  { %1879 = vmatprep.mubr.bf16.mxu0 %v5277_v13  ;;  %v582_v54 = vrot.slane %v580_v34, 1 }
 0x126   :  { %v5289_v61 = vpop.f32.mrb[8].mxu1 }
 0x127   :  { %6986 = vst [vmem:[#allocation49_spill] sm:$0xff] %v5289_v61  ;;  %v1153_v62 = vpop.f32.mrb[9].mxu1  ;;  %v5317_v61 = vsel %vm680_vm1, %v753_v14, %v754_v38 }
 0x128   :  { %v5293_v8 = vpop.f32.mrb[10].mxu1 }
 0x129   :  { %6987 = vst [vmem:[#allocation50_spill] sm:$0xff] %v5293_v8  ;;  %v1156_v18 = vpop.f32.mrb[11].mxu1 }
 0x12a   :  { %v578_v18 = vor.u32 %v577_v17, %v573_v63  ;;  %v757_v17 = vrot.slane %v5104_v21, 1  ;;  %v760_v21 = vrot.slane %v5137_v16, 1  ;;  %v1017_v16 = vld [vmem:[%s6863_s1 + $0x420] sm:$0xff] }
 0x12b   :  { %1366 = vmatmul.mubr.bf16.gmra.mrb[116].mxu1 %v5205_v52 }
 0x12c   :  { %1880 = vmatmul.mubr.bf16.gmra.mrb[84].mxu0 %v5058_v28  ;;  %1373 = vmatprep.mubr.bf16.mxu1 %v5296_v27  ;;  %v5314_v55 = vsel %vm199_vm0, %v578_v18, %v582_v54  ;;  %v5330_v14 = vsel %vm680_vm1, %v756_v11, %v757_v17  ;;  %v1015_v11 = vld [vmem:[%s6863_s1 + $0x410] sm:$0xff]  ;;  %v1016_v17 = vld [vmem:[%s6863_s1 + $0x418] sm:$0xff] }
 0x12d   :  { %1887 = vmatprep.mubr.bf16.mxu0 %v5301_v0 }
 0x12e   :  { %v5307_v33 = vpop.f32.mrb[12].mxu1 }
 0x12f   :  { %6988 = vst [vmem:[#allocation51_spill] sm:$0xff] %v5307_v33  ;;  %v1161_v62 = vpop.f32.mrb[13].mxu1 }
 0x130   :  { %v5311_v8 = vpop.f32.mrb[14].mxu1  ;;  %v759_v62 = vrot.slane %v5121_v7, 1 }
 0x131   :  { %6989 = vst [vmem:[#allocation52_spill] sm:$0xff] %v5311_v8  ;;  %v1164_v48 = vpop.f32.mrb[15].mxu1 }
 0x133   :  { %1374 = vmatmul.mubr.bf16.gmra.mrb[120].mxu1 %v5242_v3 }
 0x134   :  { %1888 = vmatmul.mubr.bf16.gmra.mrb[88].mxu0 %v5084_v1  ;;  %1381 = vmatprep.mubr.bf16.mxu1 %v5314_v55 }
 0x135   :  { %1895 = vmatprep.mubr.bf16.mxu0 %v5317_v61 }
 0x136   :  { %v5323_v63 = vpop.f32.mrb[16].mxu1 }
 0x137   :  { %6990 = vst [vmem:[#allocation53_spill] sm:$0xff] %v5323_v63  ;;  %v1169_v34 = vpop.f32.mrb[17].mxu1 }
 0x138   :  { %v5327_v18 = vpop.f32.mrb[18].mxu1 }
 0x139   :  { %6991 = vst [vmem:[#allocation54_spill] sm:$0xff] %v5327_v18  ;;  %v1172_v54 = vpop.f32.mrb[19].mxu1  ;;  %v5349_v18 = vsel %vm680_vm1, %v759_v62, %v760_v21 }
 0x13b   :  { %1382 = vmatmul.mubr.bf16.gmra.mrb[124].mxu1 %v5274_v30 }
 0x13c   :  { %1896 = vmatmul.mubr.bf16.gmra.mrb[92].mxu0 %v5124_v10  ;;  %1486 = vmatprep.mubr.bf16.mxu1 %v4525_v50 }
 0x13d   :  { %1903 = vmatprep.mubr.bf16.mxu0 %v5330_v14 }
 0x13e   :  { %v5336_v38 = vpop.f32.mrb[20].mxu1 }
 0x13f   :  { %6992 = vst [vmem:[#allocation55_spill] sm:$0xff] %v5336_v38  ;;  %v1177_v48 = vpop.f32.mrb[21].mxu1  ;;  %v1094_v38 = vpack.c.bf16 %v1016_v17, %v1015_v11  ;;  %v762_v11 = vrot.slane %v5154_v20, 1  ;;  %v763_v17 = vrot.slane %v5166_v59, 1  ;;  %v1021_v59 = vld [vmem:[%s6863_s1 + $0x440] sm:$0xff] }
 0x140   :  { %v5346_v34 = vpop.f32.mrb[22].mxu1  ;;  %v1018_v48 = vld [vmem:[%s6863_s1 + $0x428] sm:$0xff] }
 0x141   :  { %6993 = vst [vmem:[#allocation56_spill] sm:$0xff] %v5346_v34  ;;  %v1180_v54 = vpop.f32.mrb[23].mxu1  ;;  %v1095_v62 = vpack.c.bf16 %v1018_v48, %v1017_v16  ;;  %v1019_v34 = vld [vmem:[%s6863_s1 + $0x430] sm:$0xff]  ;;  %v5375_v48 = vsel %vm680_vm1, %v762_v11, %v763_v17  ;;  %v766_v11 = vrot.slane %v5194_v15, 1 }
 0x143   :  { %1487 = vmatmul.mubr.bf16.vlgmr.msra.gmra.mrb[32].mxu1 %v4822_v12 }
 0x144   :  { %1904 = vmatmul.mubr.bf16.gmra.mrb[96].mxu0 %v5152_v47  ;;  %3415 = vmatpush3.bf16.msra.mxu1 %v4906_v49  ;;  %v1020_v49 = vld [vmem:[%s6863_s1 + $0x438] sm:$0xff] }
 0x145   :  { %1494 = vmatprep.mubr.bf16.mxu1 %v4560_v39  ;;  %1911 = vmatprep.mubr.bf16.mxu0 %v5349_v18 }
 0x146   :  { %v5362_v21 = vpop.f32.mrb[24].mxu1  ;;  %3416 = vmatprep.subr.bf16.mxu1 %v1094_v38 }
 0x147   :  { %6994 = vst [vmem:[#allocation57_spill] sm:$0xff] %v5362_v21  ;;  %v1185_v54 = vpop.f32.mrb[25].mxu1  ;;  %v1096_v21 = vpack.c.bf16 %v1020_v49, %v1019_v34  ;;  %v765_v34 = vrot.slane %v5182_v36, 1 }
 0x148   :  { %v5372_v63 = vpop.f32.mrb[26].mxu1  ;;  %3417 = vmatpush3.bf16.msra.mxu1 %v1094_v38  ;;  %v1022_v54 = vld [vmem:[%s6863_s1 + $0x448] sm:$0xff] }
 0x149   :  { %6995 = vst [vmem:[#allocation58_spill] sm:$0xff] %v5372_v63  ;;  %v1188_v16 = vpop.f32.mrb[27].mxu1  ;;  %3418 = vmatprep.subr.bf16.mxu1 %v1095_v62  ;;  %v1097_v17 = vpack.c.bf16 %v1022_v54, %v1021_v59  ;;  %v1024_v63 = vld [vmem:[%s6863_s1 + $0x458] sm:$0xff]  ;;  %v1025_v59 = vld [vmem:[%s6863_s1 + $0x460] sm:$0xff]  ;;  %v1026_v54 = vld [vmem:[%s6863_s1 + $0x468] sm:$0xff] }
 0x14a   :  { %v1023_v16 = vld [vmem:[%s6863_s1 + $0x450] sm:$0xff] }
 0x14b   :  { %1495 = vmatmul.mubr.bf16.gmra.mrb[36].mxu1 %v4857_v41  ;;  %v1098_v15 = vpack.c.bf16 %v1024_v63, %v1023_v16  ;;  %v769_v63 = vrot.slane %v5221_v25, 1  ;;  %v772_v25 = vrot.slane %v5254_v32, 1  ;;  %v774_v16 = vrot.slane %v5274_v30, 1  ;;  %v122_v32 = vld [vmem:[%s6862_s0 + $0x338] sm:$0xff] }
 0x14c   :  { %1912 = vmatmul.mubr.bf16.gmra.mrb[100].mxu0 %v5178_v44  ;;  %1502 = vmatprep.mubr.bf16.mxu1 %v4612_v9 }
 0x14d   :  { %1919 = vmatprep.mubr.bf16.mxu0 %v5375_v48  ;;  %3419 = vmatpush3.bf16.msra.mxu1 %v1095_v62 }
 0x14e   :  { %v5387_v38 = vpop.f32.mrb[28].mxu1  ;;  %3420 = vmatprep.subr.bf16.mxu1 %v1096_v21 }
 0x14f   :  { %6996 = vst [vmem:[#allocation59_spill] sm:$0xff] %v5387_v38  ;;  %v1193_v49 = vpop.f32.mrb[29].mxu1  ;;  %v5400_v38 = vsel %vm680_vm1, %v765_v34, %v766_v11  ;;  %v1099_v34 = vpack.c.bf16 %v1026_v54, %v1025_v59  ;;  %v123_v59 = vld [vmem:[%s6862_s0 + $0x340] sm:$0x3] }
 0x150   :  { %v5397_v8 = vpop.f32.mrb[30].mxu1 }
 0x151   :  { %6997 = vst [vmem:[#allocation60_spill] sm:$0xff] %v5397_v8  ;;  %v1196_v62 = vpop.f32.mrb[31].mxu1  ;;  %3421 = vmatpush3.bf16.msra.mxu1 %v1096_v21  ;;  %v768_v21 = vrot.slane %v5205_v52, 1 }
 0x152   :  { %3422 = vmatprep.subr.bf16.mxu1 %v1097_v17  ;;  %v775_v62 = vrot.slane %v5286_v19, 1  ;;  %v1027_v19 = vld [vmem:[%s6863_s1 + $0x470] sm:$0xff] }
 0x153   :  { %1503 = vmatmul.mubr.bf16.gmra.mrb[40].mxu1 %v4882_v58  ;;  %v5415_v11 = vsel %vm680_vm1, %v768_v21, %v769_v63  ;;  %v196_v63 = vpack.c.bf16 %v123_v59, %v123_v59 }
 0x154   :  { %1920 = vmatmul.mubr.bf16.gmra.mrb[104].mxu0 %v5208_v46  ;;  %1510 = vmatprep.mubr.bf16.mxu1 %v4640_v26  ;;  %v5444_v21 = vsel %vm680_vm1, %v774_v16, %v775_v62 }
 0x155   :  { %1927 = vmatprep.mubr.bf16.mxu0 %v5400_v38  ;;  %3423 = vmatpush3.bf16.msra.mxu1 %v1097_v17  ;;  %v771_v17 = vrot.slane %v5242_v3, 1  ;;  %v843_v62 = vrot.slane %v196_v63, 1  ;;  %v829_v59 = vshll.u32 %v196_v63, 16  ;;  %v729_v63 = vrot.slane %v4792_v51, 1  ;;  %v7002_v51 = vld [vmem:[#allocation12_spill] sm:$0xff] }
 0x156   :  { %3424 = vmatprep.subr.bf16.mxu1 %v1098_v15 }
 0x157   :  { %v5424_v49 = vsel %vm680_vm1, %v771_v17, %v772_v25 }
 0x159   :  { %3425 = vmatpush3.bf16.msra.mxu1 %v1098_v15  ;;  %v121_v15 = vld [vmem:[%s6862_s0 + $0x330] sm:$0xff] }
 0x15a   :  { %3426 = vmatprep.subr.bf16.mxu1 %v1099_v34  ;;  %v5441_v54 = vpack.c.bf16 %v122_v32, %v121_v15 }
 0x15b   :  { %1511 = vmatmul.mubr.bf16.gmra.mrb[44].mxu1 %v4928_v5 }
 0x15c   :  { %1928 = vmatmul.mubr.bf16.gmra.mrb[108].mxu0 %v5240_v24  ;;  %1518 = vmatprep.mubr.bf16.mxu1 %v4684_v4  ;;  %v824_v17 = vshll.u32 %v5441_v54, 16  ;;  %v842_v16 = vrot.slane %v5441_v54, 1  ;;  %v822_v15 = vshrl.u32 %v5441_v54, 16 }
 0x15d   :  { %1935 = vmatprep.mubr.bf16.mxu0 %v5415_v11  ;;  %3427 = vmatpush3.bf16.msra.mxu1 %v1099_v34  ;;  %v1028_v34 = vld [vmem:[%s6863_s1 + $0x478] sm:$0xff] }
 0x15e   :  { %v1100_v25 = vpack.c.bf16 %v1028_v34, %v1027_v19  ;;  %v826_v32 = vrot.slane %v824_v17, 1  ;;  %v5460_v8 = vsel %vm680_vm1, %v842_v16, %v843_v62  ;;  %v831_v34 = vrot.slane %v829_v59, 1  ;;  %v6998_v16 = vld [vmem:[#allocation5_spill] sm:$0xff]  ;;  %v7006_v59 = vld [vmem:[#allocation15_spill] sm:$0xff] }
 0x15f   :  { %v730_v17 = vrot.slane %v4802_v57, 1  ;;  %v6999_v62 = vld [vmem:[#allocation9_spill] sm:$0xff] }
 0x160   :  { %3428 = vmatprep.subr.bf16.mxu1 %v1100_v25  ;;  %v827_v19 = vor.u32 %v826_v32, %v822_v15  ;;  %v7000_v15 = vld [vmem:[#allocation6_spill] sm:$0xff]  ;;  %v7003_v57 = vld [vmem:[#allocation41_spill] sm:$0xff]  ;;  %v7005_v32 = vld [vmem:[#allocation32_spill] sm:$0xff] }
 0x161   :  { %3429 = vmatpush3.bf16.msra.mxu1 %v1100_v25  ;;  %v731_v25 = vsel %vm680_vm1, %v729_v63, %v730_v17  ;;  %v7009_v63 = vld [vmem:[#allocation35_spill] sm:$0xff] }
 0x162   :  { %v5467_v33 = vsel %vm199_vm0, %v827_v19, %v831_v34  ;;  %v7007_v19 = vld [vmem:[#allocation42_spill] sm:$0xff]  ;;  %v7011_v17 = vld [vmem:[#allocation43_spill] sm:$0xff] }
 0x163   :  { %1519 = vmatmul.mubr.bf16.gmra.mrb[48].mxu1 %v4954_v6  ;;  %v7008_v34 = vld [vmem:[#allocation10_spill] sm:$0xff] }
 0x164   :  { %1936 = vmatmul.mubr.bf16.gmra.mrb[112].mxu0 %v5270_v2  ;;  %1526 = vmatprep.mubr.bf16.mxu1 %v4714_v31 }
 0x165   :  { %1943 = vmatprep.mubr.bf16.mxu0 %v5424_v49 }
 0x16b   :  { %1527 = vmatmul.mubr.bf16.gmra.mrb[52].mxu1 %v4989_v29 }
 0x16c   :  { %1944 = vmatmul.mubr.bf16.gmra.mrb[116].mxu0 %v5296_v27  ;;  %1534 = vmatprep.mubr.bf16.mxu1 %v4758_v22 }
 0x16d   :  { %1951 = vmatprep.mubr.bf16.mxu0 %v5444_v21 }
 0x173   :  { %1535 = vmatmul.mubr.bf16.gmra.mrb[56].mxu1 %v5020_v42 }
 0x174   :  { %1952 = vmatmul.mubr.bf16.gmra.mrb[120].mxu0 %v5314_v55  ;;  %1542 = vmatprep.mubr.bf16.mxu1 %v5054_v53 }
 0x175   :  { %1959 = vmatprep.mubr.bf16.mxu0 %v5460_v8 }
 0x17b   :  { %1543 = vmatmul.mubr.bf16.gmra.mrb[60].mxu1 %v5063_v23 }
 0x17c   :  { %1960 = vmatmul.mubr.bf16.gmra.mrb[124].mxu0 %v5467_v33  ;;  %1550 = vmatprep.mubr.bf16.mxu1 %v4819_v35  ;;  %v7001_v35 = vld [vmem:[#allocation31_spill] sm:$0xff] }
 0x17d   :  { %2000 = vmatprep.mubr.bf16.mxu0 %v4293_v56  ;;  %v7004_v56 = vld [vmem:[#allocation7_spill] sm:$0xff] }
 0x183   :  { %1551 = vmatmul.mubr.bf16.gmra.mrb[64].mxu1 %v731_v25  ;;  %v7012_v25 = vld [vmem:[#allocation13_spill] sm:$0xff] }
 0x184   :  { %2001 = vmatmul.mubr.bf16.vlgmr.msra.gmra.mrb[0].mxu0 %v6998_v16  ;;  %1558 = vmatprep.mubr.bf16.mxu1 %v4854_v40  ;;  %v7013_v16 = vld [vmem:[#allocation37_spill] sm:$0xff] }
 0x185   :  { %2008 = vmatprep.mubr.bf16.mxu0 %v6999_v62  ;;  %v7014_v62 = vld [vmem:[#allocation21_spill] sm:$0xff] }
 0x18b   :  { %1559 = vmatmul.mubr.bf16.gmra.mrb[68].mxu1 %v5132_v43  ;;  %v7010_v43 = vld [vmem:[#allocation18_spill] sm:$0xff] }
 0x18c   :  { %2009 = vmatmul.mubr.bf16.gmra.mrb[4].mxu0 %v7000_v15  ;;  %1566 = vmatprep.mubr.bf16.mxu1 %v7001_v35  ;;  %v7015_v15 = vld [vmem:[#allocation46_spill] sm:$0xff] }
 0x18d   :  { %2016 = vmatprep.mubr.bf16.mxu0 %v7002_v51  ;;  %v7016_v51 = vld [vmem:[#allocation16_spill] sm:$0xff] }
 0x193   :  { %1567 = vmatmul.mubr.bf16.gmra.mrb[72].mxu1 %v7003_v57 }
 0x194   :  { %2017 = vmatmul.mubr.bf16.gmra.mrb[8].mxu0 %v7004_v56  ;;  %1574 = vmatprep.mubr.bf16.mxu1 %v7005_v32  ;;  %v7017_v56 = vld [vmem:[#allocation23_spill] sm:$0xff] }
 0x195   :  { %2024 = vmatprep.mubr.bf16.mxu0 %v7006_v59  ;;  %v7018_v59 = vld [vmem:[#allocation19_spill] sm:$0xff] }
 0x19b   :  { %1575 = vmatmul.mubr.bf16.gmra.mrb[76].mxu1 %v7007_v19 }
 0x19c   :  { %2025 = vmatmul.mubr.bf16.gmra.mrb[12].mxu0 %v7008_v34  ;;  %1582 = vmatprep.mubr.bf16.mxu1 %v7009_v63  ;;  %v7019_v34 = vld [vmem:[#allocation24_spill] sm:$0xff] }
 0x19d   :  { %2032 = vmatprep.mubr.bf16.mxu0 %v7010_v43  ;;  %v7020_v43 = vld [vmem:[#allocation25_spill] sm:$0xff] }
 0x1a3   :  { %1583 = vmatmul.mubr.bf16.gmra.mrb[80].mxu1 %v7011_v17 }
 0x1a4   :  { %2033 = vmatmul.mubr.bf16.gmra.mrb[16].mxu0 %v7012_v25  ;;  %1590 = vmatprep.mubr.bf16.mxu1 %v7013_v16  ;;  %v7021_v25 = vld [vmem:[#allocation26_spill] sm:$0xff] }
 0x1a5   :  { %2040 = vmatprep.mubr.bf16.mxu0 %v7014_v62  ;;  %v7022_v62 = vld [vmem:[#allocation27_spill] sm:$0xff] }
 0x1ab   :  { %1591 = vmatmul.mubr.bf16.gmra.mrb[84].mxu1 %v7015_v15 }
 0x1ac   :  { %2041 = vmatmul.mubr.bf16.gmra.mrb[20].mxu0 %v7016_v51  ;;  %1598 = vmatprep.mubr.bf16.mxu1 %v5009_v37 }
 0x1ad   :  { %2048 = vmatprep.mubr.bf16.mxu0 %v7017_v56  ;;  %v7025_v56 = vld [vmem:[#allocation30_spill] sm:$0xff] }
 0x1b3   :  { %1599 = vmatmul.mubr.bf16.gmra.mrb[88].mxu1 %v5277_v13 }
 0x1b4   :  { %2049 = vmatmul.mubr.bf16.gmra.mrb[24].mxu0 %v7018_v59  ;;  %1606 = vmatprep.mubr.bf16.mxu1 %v5060_v45 }
 0x1b5   :  { %2056 = vmatprep.mubr.bf16.mxu0 %v7019_v34 }
 0x1bb   :  { %1607 = vmatmul.mubr.bf16.gmra.mrb[92].mxu1 %v5301_v0 }
 0x1bc   :  { %2057 = vmatmul.mubr.bf16.gmra.mrb[28].mxu0 %v4525_v50  ;;  %1614 = vmatprep.mubr.bf16.mxu1 %v5089_v60  ;;  %v7023_v50 = vld [vmem:[#allocation28_spill] sm:$0xff] }
 0x1bd   :  { %2064 = vmatprep.mubr.bf16.mxu0 %v7020_v43 }
 0x1c3   :  { %1615 = vmatmul.mubr.bf16.gmra.mrb[96].mxu1 %v5317_v61 }
 0x1c4   :  { %2065 = vmatmul.mubr.bf16.gmra.mrb[32].mxu0 %v4560_v39  ;;  %1622 = vmatprep.mubr.bf16.mxu1 %v5121_v7  ;;  %v7024_v39 = vld [vmem:[#allocation29_spill] sm:$0xff] }
 0x1c5   :  { %2072 = vmatprep.mubr.bf16.mxu0 %v7021_v25 }
 0x1cb   :  { %1623 = vmatmul.mubr.bf16.gmra.mrb[100].mxu1 %v5330_v14 }
 0x1cc   :  { %2073 = vmatmul.mubr.bf16.gmra.mrb[36].mxu0 %v4612_v9  ;;  %1630 = vmatprep.mubr.bf16.mxu1 %v5154_v20  ;;  %v70_v9 = vld [vmem:[%s6862_s0 + $0x198] sm:$0xff] }
 0x1cd   :  { %2080 = vmatprep.mubr.bf16.mxu0 %v7022_v62 }
 0x1d3   :  { %1631 = vmatmul.mubr.bf16.gmra.mrb[104].mxu1 %v5349_v18 }
 0x1d4   :  { %2081 = vmatmul.mubr.bf16.gmra.mrb[40].mxu0 %v4640_v26  ;;  %1638 = vmatprep.mubr.bf16.mxu1 %v5182_v36  ;;  %v71_v26 = vld [vmem:[%s6862_s0 + $0x1a0] sm:$0xff] }
 0x1d5   :  { %2088 = vmatprep.mubr.bf16.mxu0 %v7023_v50  ;;  %v5529_v51 = vpack.c.bf16 %v71_v26, %v70_v9  ;;  %v7028_v26 = vld [vmem:[#allocation33_spill] sm:$0xff] }
 0x1d7   :  { %v850_v34 = vshll.u32 %v5529_v51, 16  ;;  %v848_v43 = vshrl.u32 %v5529_v51, 16 }
 0x1d9   :  { %v852_v25 = vrot.slane %v850_v34, 1  ;;  %v7031_v34 = vld [vmem:[#allocation34_spill] sm:$0xff] }
 0x1db   :  { %1639 = vmatmul.mubr.bf16.gmra.mrb[108].mxu1 %v5375_v48  ;;  %v853_v50 = vor.u32 %v852_v25, %v848_v43  ;;  %v7033_v43 = vld [vmem:[#allocation20_spill] sm:$0xff] }
 0x1dc   :  { %2089 = vmatmul.mubr.bf16.gmra.mrb[44].mxu0 %v4684_v4  ;;  %1646 = vmatprep.mubr.bf16.mxu1 %v5205_v52  ;;  %v72_v4 = vld [vmem:[%s6862_s0 + $0x1a8] sm:$0x3]  ;;  %v7034_v25 = vld [vmem:[#allocation36_spill] sm:$0xff] }
 0x1dd   :  { %2096 = vmatprep.mubr.bf16.mxu0 %v7024_v39  ;;  %v5538_v59 = vpack.c.bf16 %v72_v4, %v72_v4  ;;  %v7029_v4 = vld [vmem:[#allocation11_spill] sm:$0xff] }
 0x1df   :  { %v855_v62 = vshll.u32 %v5538_v59, 16 }
 0x1e1   :  { %v857_v39 = vrot.slane %v855_v62, 1  ;;  %v7035_v62 = vld [vmem:[#allocation22_spill] sm:$0xff] }
 0x1e3   :  { %1647 = vmatmul.mubr.bf16.gmra.mrb[112].mxu1 %v5400_v38  ;;  %v858_v9 = vsel %vm199_vm0, %v853_v50, %v857_v39 }
 0x1e4   :  { %2097 = vmatmul.mubr.bf16.gmra.mrb[48].mxu0 %v4714_v31  ;;  %1654 = vmatprep.mubr.bf16.mxu1 %v5242_v3  ;;  %v7026_v31 = vld [vmem:[#allocation40_spill] sm:$0xff] }
 0x1e5   :  { %2104 = vmatprep.mubr.bf16.mxu0 %v7025_v56  ;;  %v7030_v56 = vld [vmem:[#allocation14_spill] sm:$0xff] }
 0x1eb   :  { %1655 = vmatmul.mubr.bf16.gmra.mrb[116].mxu1 %v5415_v11 }
 0x1ec   :  { %2105 = vmatmul.mubr.bf16.gmra.mrb[52].mxu0 %v4758_v22  ;;  %1662 = vmatprep.mubr.bf16.mxu1 %v5274_v30  ;;  %v7027_v22 = vld [vmem:[#allocation8_spill] sm:$0xff] }
 0x1ed   :  { %2112 = vmatprep.mubr.bf16.mxu0 %v7026_v31  ;;  %v7036_v31 = vld [vmem:[#allocation38_spill] sm:$0xff] }
 0x1f3   :  { %1663 = vmatmul.mubr.bf16.gmra.mrb[120].mxu1 %v5424_v49 }
 0x1f4   :  { %2113 = vmatmul.mubr.bf16.gmra.mrb[56].mxu0 %v5054_v53  ;;  %1670 = vmatprep.mubr.bf16.mxu1 %v5441_v54  ;;  %v7032_v53 = vld [vmem:[#allocation17_spill] sm:$0xff] }
 0x1f5   :  { %2120 = vmatprep.mubr.bf16.mxu0 %v858_v9 }
 0x1fb   :  { %1671 = vmatmul.mubr.bf16.gmra.mrb[124].mxu1 %v5444_v21 }
 0x1fc   :  { %2121 = vmatmul.mubr.bf16.gmra.mrb[60].mxu0 %v5529_v51  ;;  %3430 = vmatprep.mubr.bf16.mxu1 %v7027_v22 }
 0x1fd   :  { %2128 = vmatprep.mubr.bf16.mxu0 %v7028_v26  ;;  %v7037_v26 = vld [vmem:[#allocation39_spill] sm:$0xff] }
 0x203   :  { %3431 = vmatmul.mubr.bf16.vlgmr.msra.gmra.mrb[128].mxu1 %v7029_v4 }
 0x204   :  { %2129 = vmatmul.mubr.bf16.gmra.mrb[64].mxu0 %v4854_v40  ;;  %3434 = vmatprep.mubr.bf16.mxu1 %v7030_v56 }
 0x205   :  { %2136 = vmatprep.mubr.bf16.mxu0 %v7031_v34 }
 0x20b   :  { %3435 = vmatmul.mubr.bf16.gmra.mrb[132].mxu1 %v7032_v53  ;;  %v7038_v53 = vld [vmem:[#allocation44_spill] sm:$0xff] }
 0x20c   :  { %2137 = vmatmul.mubr.bf16.gmra.mrb[68].mxu0 %v7001_v35  ;;  %3438 = vmatprep.mubr.bf16.mxu1 %v7033_v43 }
 0x20d   :  { %2144 = vmatprep.mubr.bf16.mxu0 %v7034_v25 }
 0x213   :  { %3439 = vmatmul.mubr.bf16.gmra.mrb[136].mxu1 %v7035_v62 }
 0x214   :  { %2145 = vmatmul.mubr.bf16.gmra.mrb[72].mxu0 %v7005_v32  ;;  %3442 = vmatprep.mubr.bf16.mxu1 %v4822_v12 }
 0x215   :  { %2152 = vmatprep.mubr.bf16.mxu0 %v7036_v31 }
 0x216   :  { %v5567_v40 = vpop.f32.mrb[32].mxu1 }
 0x217   :  { %v1490_v50 = vpop.f32.mrb[33].mxu1 }
 0x218   :  { %v5569_v39 = vpop.f32.mrb[34].mxu1  ;;  %v7039_v50 = vld [vmem:[#allocation45_spill] sm:$0xff] }
 0x219   :  { %v1493_v9 = vpop.f32.mrb[35].mxu1 }
 0x21b   :  { %3443 = vmatmul.mubr.bf16.gmra.mrb[140].mxu1 %v4857_v41 }
 0x21c   :  { %2153 = vmatmul.mubr.bf16.gmra.mrb[76].mxu0 %v7009_v63  ;;  %3446 = vmatprep.mubr.bf16.mxu1 %v4882_v58 }
 0x21d   :  { %2160 = vmatprep.mubr.bf16.mxu0 %v5058_v28 }
 0x21e   :  { %v5575_v35 = vpop.f32.mrb[36].mxu1 }
 0x21f   :  { %v1498_v32 = vpop.f32.mrb[37].mxu1 }
 0x220   :  { %v5577_v12 = vpop.f32.mrb[38].mxu1  ;;  %v124_v32 = vld [vmem:[%s6862_s0 + $0x348] sm:$0xff] }
 0x221   :  { %v1501_v22 = vpop.f32.mrb[39].mxu1 }
 0x222   :  { %v125_v22 = vld [vmem:[%s6862_s0 + $0x350] sm:$0xff] }
 0x223   :  { %3447 = vmatmul.mubr.bf16.gmra.mrb[144].mxu1 %v4928_v5 }
 0x224   :  { %2161 = vmatmul.mubr.bf16.gmra.mrb[80].mxu0 %v7013_v16  ;;  %3450 = vmatprep.mubr.bf16.mxu1 %v4954_v6 }
 0x225   :  { %2168 = vmatprep.mubr.bf16.mxu0 %v5084_v1 }
 0x226   :  { %v5583_v41 = vpop.f32.mrb[40].mxu1 }
 0x227   :  { %v1506_v63 = vpop.f32.mrb[41].mxu1 }
 0x228   :  { %v5585_v58 = vpop.f32.mrb[42].mxu1  ;;  %v7040_v63 = vld [vmem:[#allocation47_spill] sm:$0xff] }
 0x229   :  { %v1509_v28 = vpop.f32.mrb[43].mxu1 }
 0x22b   :  { %3451 = vmatmul.mubr.bf16.gmra.mrb[148].mxu1 %v4989_v29  ;;  %v877_v29 = vrot.slane %v5529_v51, 1 }
 0x22c   :  { %2169 = vmatmul.mubr.bf16.gmra.mrb[84].mxu0 %v5009_v37  ;;  %3454 = vmatprep.mubr.bf16.mxu1 %v5020_v42  ;;  %v878_v37 = vrot.slane %v5538_v59, 1 }
 0x22d   :  { %2176 = vmatprep.mubr.bf16.mxu0 %v5124_v10 }
 0x22e   :  { %v5591_v5 = vpop.f32.mrb[44].mxu1  ;;  %v879_v56 = vsel %vm680_vm1, %v877_v29, %v878_v37  ;;  %v197_v29 = vpack.c.bf16 %v125_v22, %v124_v32  ;;  %v126_v37 = vld [vmem:[%s6862_s0 + $0x358] sm:$0x3] }
 0x22f   :  { %v1514_v16 = vpop.f32.mrb[45].mxu1 }
 0x230   :  { %v5593_v6 = vpop.f32.mrb[46].mxu1  ;;  %v7041_v16 = vld [vmem:[#allocation48_spill] sm:$0xff] }
 0x231   :  { %v1517_v1 = vpop.f32.mrb[47].mxu1 }
 0x233   :  { %3455 = vmatmul.mubr.bf16.gmra.mrb[152].mxu1 %v5063_v23 }
 0x234   :  { %2177 = vmatmul.mubr.bf16.gmra.mrb[88].mxu0 %v5060_v45  ;;  %3458 = vmatprep.mubr.bf16.mxu1 %v7037_v26 }
 0x235   :  { %2184 = vmatprep.mubr.bf16.mxu0 %v5152_v47 }
 0x236   :  { %v5601_v42 = vpop.f32.mrb[48].mxu1 }
 0x237   :  { %v1522_v10 = vpop.f32.mrb[49].mxu1 }
 0x238   :  { %v5603_v4 = vpop.f32.mrb[50].mxu1 }
 0x239   :  { %v1525_v34 = vpop.f32.mrb[51].mxu1 }
 0x23a   :  { %v862_v34 = vshll.u32 %v197_v29, 16 }
 0x23b   :  { %3459 = vmatmul.mubr.bf16.gmra.mrb[156].mxu1 %v879_v56  ;;  %v198_v56 = vpack.c.bf16 %v126_v37, %v126_v37 }
 0x23c   :  { %2185 = vmatmul.mubr.bf16.gmra.mrb[92].mxu0 %v5089_v60  ;;  %3462 = vmatprep.mubr.bf16.mxu1 %v7003_v57 }
 0x23d   :  { %2192 = vmatprep.mubr.bf16.mxu0 %v5178_v44 }
 0x23e   :  { %v5609_v23 = vpop.f32.mrb[52].mxu1 }
 0x23f   :  { %v1530_v45 = vpop.f32.mrb[53].mxu1 }
 0x240   :  { %v5611_v51 = vpop.f32.mrb[54].mxu1 }
 0x241   :  { %v1533_v47 = vpop.f32.mrb[55].mxu1 }
 0x243   :  { %3463 = vmatmul.mubr.bf16.gmra.mrb[160].mxu1 %v7007_v19 }
 0x244   :  { %2193 = vmatmul.mubr.bf16.gmra.mrb[96].mxu0 %v5121_v7  ;;  %3466 = vmatprep.mubr.bf16.mxu1 %v7011_v17 }
 0x245   :  { %2200 = vmatprep.mubr.bf16.mxu0 %v5208_v46 }
 0x246   :  { %v5617_v59 = vpop.f32.mrb[56].mxu1 }
 0x247   :  { %v1538_v60 = vpop.f32.mrb[57].mxu1 }
 0x248   :  { %v5619_v57 = vpop.f32.mrb[58].mxu1  ;;  %v7042_v60 = vld [vmem:[#allocation49_spill] sm:$0xff] }
 0x249   :  { %v1541_v44 = vpop.f32.mrb[59].mxu1 }
 0x24b   :  { %3467 = vmatmul.mubr.bf16.gmra.mrb[164].mxu1 %v7015_v15 }
 0x24c   :  { %2201 = vmatmul.mubr.bf16.gmra.mrb[100].mxu0 %v5154_v20  ;;  %3470 = vmatprep.mubr.bf16.mxu1 %v5277_v13 }
 0x24d   :  { %2208 = vmatprep.mubr.bf16.mxu0 %v5240_v24 }
 0x24e   :  { %v5625_v19 = vpop.f32.mrb[60].mxu1 }
 0x24f   :  { %v1546_v7 = vpop.f32.mrb[61].mxu1 }
 0x250   :  { %v5627_v17 = vpop.f32.mrb[62].mxu1 }
 0x251   :  { %v1549_v46 = vpop.f32.mrb[63].mxu1 }
 0x253   :  { %3471 = vmatmul.mubr.bf16.gmra.mrb[168].mxu1 %v5301_v0 }
 0x254   :  { %2209 = vmatmul.mubr.bf16.gmra.mrb[104].mxu0 %v5182_v36  ;;  %3474 = vmatprep.mubr.bf16.mxu1 %v5317_v61 }
 0x255   :  { %2216 = vmatprep.mubr.bf16.mxu0 %v5270_v2 }
 0x256   :  { %v5633_v15 = vpop.f32.mrb[64].mxu1 }
 0x257   :  { %v2002_v20 = vpop.f32.mrb[0].mxu0  ;;  %v1554_v13 = vpop.f32.mrb[65].mxu1 }
 0x258   :  { %v5636_v24 = vadd.f32 %v2002_v20, %v7038_v53  ;;  %v2004_v43 = vpop.f32.mrb[1].mxu0  ;;  %v5638_v25 = vpop.f32.mrb[66].mxu1  ;;  %v7043_v13 = vld [vmem:[#allocation50_spill] sm:$0xff]  ;;  %v860_v53 = vshrl.u32 %v197_v29, 16 }
 0x259   :  { %v2005_v62 = vpop.f32.mrb[2].mxu0  ;;  %v1557_v31 = vpop.f32.mrb[67].mxu1  ;;  %v867_v43 = vshll.u32 %v198_v56, 16 }
 0x25a   :  { %v5641_v0 = vadd.f32 %v2005_v62, %v7039_v50  ;;  %v2007_v36 = vpop.f32.mrb[3].mxu0 }
 0x25b   :  { %3475 = vmatmul.mubr.bf16.gmra.mrb[172].mxu1 %v5330_v14  ;;  %v869_v50 = vrot.slane %v867_v43, 1 }
 0x25c   :  { %2217 = vmatmul.mubr.bf16.gmra.mrb[108].mxu0 %v5205_v52  ;;  %3478 = vmatprep.mubr.bf16.mxu1 %v5349_v18 }
 0x25d   :  { %2224 = vmatprep.mubr.bf16.mxu0 %v5296_v27 }
 0x25e   :  { %v5647_v2 = vpop.f32.mrb[68].mxu1 }
 0x25f   :  { %v2010_v61 = vpop.f32.mrb[4].mxu0  ;;  %v1562_v9 = vpop.f32.mrb[69].mxu1 }
 0x260   :  { %v5656_v14 = vadd.f32 %v2010_v61, %v7040_v63  ;;  %v2012_v52 = vpop.f32.mrb[5].mxu0  ;;  %v5658_v28 = vpop.f32.mrb[70].mxu1  ;;  %v7044_v9 = vld [vmem:[#allocation51_spill] sm:$0xff] }
 0x261   :  { %v2013_v18 = vpop.f32.mrb[6].mxu0  ;;  %v1565_v27 = vpop.f32.mrb[71].mxu1 }
 0x262   :  { %v5661_v1 = vadd.f32 %v2013_v18, %v7041_v16  ;;  %v2015_v26 = vpop.f32.mrb[7].mxu0  ;;  %v7045_v18 = vld [vmem:[#allocation52_spill] sm:$0xff]  ;;  %v880_v27 = vrot.slane %v197_v29, 1  ;;  %v881_v16 = vrot.slane %v198_v56, 1 }
 0x263   :  { %3479 = vmatmul.mubr.bf16.gmra.mrb[176].mxu1 %v5375_v48 }
 0x264   :  { %2225 = vmatmul.mubr.bf16.gmra.mrb[112].mxu0 %v5242_v3  ;;  %3482 = vmatprep.mubr.bf16.mxu1 %v5400_v38 }
 0x265   :  { %2232 = vmatprep.mubr.bf16.mxu0 %v5314_v55  ;;  %v864_v55 = vrot.slane %v862_v34, 1 }
 0x266   :  { %v5670_v10 = vpop.f32.mrb[72].mxu1 }
 0x267   :  { %v2018_v45 = vpop.f32.mrb[8].mxu0  ;;  %v1570_v47 = vpop.f32.mrb[73].mxu1  ;;  %v865_v31 = vor.u32 %v864_v55, %v860_v53  ;;  %v7048_v55 = vld [vmem:[#allocation55_spill] sm:$0xff] }
 0x268   :  { %v5673_v44 = vadd.f32 %v2018_v45, %v7042_v60  ;;  %v2020_v48 = vpop.f32.mrb[9].mxu0  ;;  %v5675_v7 = vpop.f32.mrb[74].mxu1  ;;  %v7046_v45 = vld [vmem:[#allocation53_spill] sm:$0xff] }
 0x269   :  { %v2021_v46 = vpop.f32.mrb[10].mxu0  ;;  %v1573_v20 = vpop.f32.mrb[75].mxu1 }
 0x26a   :  { %v5678_v3 = vadd.f32 %v2021_v46, %v7043_v13  ;;  %v2023_v38 = vpop.f32.mrb[11].mxu0  ;;  %v882_v46 = vsel %vm680_vm1, %v880_v27, %v881_v16 }
 0x26b   :  { %3483 = vmatmul.mubr.bf16.gmra.mrb[180].mxu1 %v5415_v11 }
 0x26c   :  { %2233 = vmatmul.mubr.bf16.gmra.mrb[116].mxu0 %v5274_v30  ;;  %3486 = vmatprep.mubr.bf16.mxu1 %v5424_v49 }
 0x26d   :  { %2240 = vmatprep.mubr.bf16.mxu0 %v5467_v33  ;;  %v870_v33 = vsel %vm199_vm0, %v865_v31, %v869_v50 }
 0x26e   :  { %v5684_v62 = vpop.f32.mrb[76].mxu1 }
 0x26f   :  { %v2026_v36 = vpop.f32.mrb[12].mxu0  ;;  %v1578_v61 = vpop.f32.mrb[77].mxu1 }
 0x270   :  { %v5687_v32 = vadd.f32 %v2026_v36, %v7044_v9  ;;  %v2028_v22 = vpop.f32.mrb[13].mxu0  ;;  %v5689_v63 = vpop.f32.mrb[78].mxu1  ;;  %v7049_v9 = vld [vmem:[#allocation56_spill] sm:$0xff] }
 0x271   :  { %v2029_v52 = vpop.f32.mrb[14].mxu0  ;;  %v1581_v11 = vpop.f32.mrb[79].mxu1 }
 0x272   :  { %v5692_v30 = vadd.f32 %v2029_v52, %v7045_v18  ;;  %v2031_v49 = vpop.f32.mrb[15].mxu0 }
 0x273   :  { %3487 = vmatmul.mubr.bf16.gmra.mrb[184].mxu1 %v5444_v21  ;;  %v7050_v49 = vld [vmem:[#allocation57_spill] sm:$0xff] }
 0x274   :  { %2241 = vmatmul.mubr.bf16.gmra.mrb[120].mxu0 %v5441_v54  ;;  %3490 = vmatprep.mubr.bf16.mxu1 %v5460_v8  ;;  %v7047_v54 = vld [vmem:[#allocation54_spill] sm:$0xff] }
 0x275   :  { %2248 = vmatprep.mubr.bf16.mxu0 %v870_v33 }
 0x276   :  { %v5698_v26 = vpop.f32.mrb[80].mxu1 }
 0x277   :  { %v2034_v37 = vpop.f32.mrb[16].mxu0  ;;  %v1586_v34 = vpop.f32.mrb[81].mxu1 }
 0x278   :  { %v5701_v47 = vadd.f32 %v2034_v37, %v7046_v45  ;;  %v2036_v60 = vpop.f32.mrb[17].mxu0  ;;  %v5703_v48 = vpop.f32.mrb[82].mxu1  ;;  %v7051_v45 = vld [vmem:[#allocation58_spill] sm:$0xff] }
 0x279   :  { %v2037_v21 = vpop.f32.mrb[18].mxu0  ;;  %v1589_v20 = vpop.f32.mrb[83].mxu1 }
 0x27a   :  { %v5707_v13 = vadd.f32 %v2037_v21, %v7047_v54  ;;  %v2039_v8 = vpop.f32.mrb[19].mxu0 }
 0x27b   :  { %3491 = vmatmul.mubr.bf16.gmra.mrb[188].mxu1 %v882_v46  ;;  %v7052_v8 = vld [vmem:[#allocation59_spill] sm:$0xff] }
 0x27c   :  { %2249 = vmatmul.mubr.bf16.gmra.mrb[124].mxu0 %v197_v29 }
 0x27e   :  { %v5709_v56 = vpop.f32.mrb[84].mxu1 }
 0x27f   :  { %v2042_v38 = vpop.f32.mrb[20].mxu0  ;;  %v1594_v53 = vpop.f32.mrb[85].mxu1 }
 0x280   :  { %v5712_v43 = vadd.f32 %v2042_v38, %v7048_v55  ;;  %v2044_v31 = vpop.f32.mrb[21].mxu0  ;;  %v5714_v50 = vpop.f32.mrb[86].mxu1 }
 0x281   :  { %v2045_v36 = vpop.f32.mrb[22].mxu0  ;;  %v1597_v61 = vpop.f32.mrb[87].mxu1 }
 0x282   :  { %v5717_v22 = vadd.f32 %v2045_v36, %v7049_v9  ;;  %v2047_v52 = vpop.f32.mrb[23].mxu0  ;;  %v7053_v61 = vld [vmem:[#allocation60_spill] sm:$0xff] }
 0x286   :  { %v5719_v11 = vpop.f32.mrb[88].mxu1 }
 0x287   :  { %v2050_v18 = vpop.f32.mrb[24].mxu0  ;;  %v1602_v29 = vpop.f32.mrb[89].mxu1 }
 0x288   :  { %v5722_v33 = vadd.f32 %v2050_v18, %v7050_v49  ;;  %v2052_v27 = vpop.f32.mrb[25].mxu0  ;;  %v5724_v16 = vpop.f32.mrb[90].mxu1 }
 0x289   :  { %v2053_v37 = vpop.f32.mrb[26].mxu0  ;;  %v1605_v34 = vpop.f32.mrb[91].mxu1 }
 0x28a   :  { %v5727_v60 = vadd.f32 %v2053_v37, %v7051_v45  ;;  %v2055_v46 = vpop.f32.mrb[27].mxu0 }
 0x28e   :  { %v5729_v21 = vpop.f32.mrb[92].mxu1 }
 0x28f   :  { %v2058_v20 = vpop.f32.mrb[28].mxu0  ;;  %v1610_v54 = vpop.f32.mrb[93].mxu1 }
 0x290   :  { %v5732_v38 = vadd.f32 %v2058_v20, %v7052_v8  ;;  %v2060_v53 = vpop.f32.mrb[29].mxu0  ;;  %v5734_v55 = vpop.f32.mrb[94].mxu1 }
 0x291   :  { %v2061_v31 = vpop.f32.mrb[30].mxu0  ;;  %v1613_v36 = vpop.f32.mrb[95].mxu1 }
 0x292   :  { %v5737_v9 = vadd.f32 %v2061_v31, %v7053_v61  ;;  %v2063_v52 = vpop.f32.mrb[31].mxu0 }
 0x296   :  { %v5739_v18 = vpop.f32.mrb[96].mxu1 }
 0x297   :  { %v2066_v29 = vpop.f32.mrb[32].mxu0  ;;  %v1618_v49 = vpop.f32.mrb[97].mxu1 }
 0x298   :  { %v5742_v27 = vadd.f32 %v2066_v29, %v5567_v40  ;;  %v2068_v37 = vpop.f32.mrb[33].mxu0  ;;  %v5744_v34 = vpop.f32.mrb[98].mxu1 }
 0x299   :  { %v2069_v45 = vpop.f32.mrb[34].mxu0  ;;  %v1621_v46 = vpop.f32.mrb[99].mxu1 }
 0x29a   :  { %v5747_v20 = vadd.f32 %v2069_v45, %v5569_v39  ;;  %v2071_v54 = vpop.f32.mrb[35].mxu0 }
 0x29e   :  { %v5749_v8 = vpop.f32.mrb[100].mxu1 }
 0x29f   :  { %7054 = vst [vmem:[#allocation5_spill] sm:$0xff] %v5749_v8  ;;  %v2074_v53 = vpop.f32.mrb[36].mxu0  ;;  %v1626_v31 = vpop.f32.mrb[101].mxu1 }
 0x2a0   :  { %v5752_v36 = vadd.f32 %v2074_v53, %v5575_v35  ;;  %v2076_v61 = vpop.f32.mrb[37].mxu0  ;;  %v5754_v52 = vpop.f32.mrb[102].mxu1 }
 0x2a1   :  { %7055 = vst [vmem:[#allocation9_spill] sm:$0xff] %v5754_v52  ;;  %v2077_v40 = vpop.f32.mrb[38].mxu0  ;;  %v1629_v29 = vpop.f32.mrb[103].mxu1 }
 0x2a2   :  { %v5757_v49 = vadd.f32 %v2077_v40, %v5577_v12  ;;  %v2079_v37 = vpop.f32.mrb[39].mxu0 }
 0x2a6   :  { %v5759_v46 = vpop.f32.mrb[104].mxu1 }
 0x2a7   :  { %7056 = vst [vmem:[#allocation6_spill] sm:$0xff] %v5759_v46  ;;  %v2082_v39 = vpop.f32.mrb[40].mxu0  ;;  %v1634_v45 = vpop.f32.mrb[105].mxu1 }
 0x2a8   :  { %v5762_v54 = vadd.f32 %v2082_v39, %v5583_v41  ;;  %v2084_v31 = vpop.f32.mrb[41].mxu0  ;;  %v5764_v8 = vpop.f32.mrb[106].mxu1 }
 0x2a9   :  { %7057 = vst [vmem:[#allocation31_spill] sm:$0xff] %v5764_v8  ;;  %v2085_v35 = vpop.f32.mrb[42].mxu0  ;;  %v1637_v53 = vpop.f32.mrb[107].mxu1 }
 0x2aa   :  { %v5767_v61 = vadd.f32 %v2085_v35, %v5585_v58  ;;  %v2087_v29 = vpop.f32.mrb[43].mxu0 }
 0x2ae   :  { %v5769_v52 = vpop.f32.mrb[108].mxu1 }
 0x2af   :  { %7058 = vst [vmem:[#allocation12_spill] sm:$0xff] %v5769_v52  ;;  %v2090_v12 = vpop.f32.mrb[44].mxu0  ;;  %v1642_v40 = vpop.f32.mrb[109].mxu1 }
 0x2b0   :  { %v5772_v37 = vadd.f32 %v2090_v12, %v5591_v5  ;;  %v2092_v45 = vpop.f32.mrb[45].mxu0  ;;  %v5774_v46 = vpop.f32.mrb[110].mxu1 }
 0x2b1   :  { %7059 = vst [vmem:[#allocation41_spill] sm:$0xff] %v5774_v46  ;;  %v2093_v41 = vpop.f32.mrb[46].mxu0  ;;  %v1645_v39 = vpop.f32.mrb[111].mxu1 }
 0x2b2   :  { %v5777_v31 = vadd.f32 %v2093_v41, %v5593_v6  ;;  %v2095_v53 = vpop.f32.mrb[47].mxu0 }
 0x2b6   :  { %v5779_v8 = vpop.f32.mrb[112].mxu1 }
 0x2b7   :  { %7060 = vst [vmem:[#allocation7_spill] sm:$0xff] %v5779_v8  ;;  %v2098_v58 = vpop.f32.mrb[48].mxu0  ;;  %v1650_v35 = vpop.f32.mrb[113].mxu1 }
 0x2b8   :  { %v5782_v29 = vadd.f32 %v2098_v58, %v5601_v42  ;;  %v2100_v40 = vpop.f32.mrb[49].mxu0  ;;  %v5784_v52 = vpop.f32.mrb[114].mxu1 }
 0x2b9   :  { %7061 = vst [vmem:[#allocation32_spill] sm:$0xff] %v5784_v52  ;;  %v2101_v5 = vpop.f32.mrb[50].mxu0  ;;  %v1653_v12 = vpop.f32.mrb[115].mxu1 }
 0x2ba   :  { %v5787_v45 = vadd.f32 %v2101_v5, %v5603_v4  ;;  %v2103_v39 = vpop.f32.mrb[51].mxu0 }
 0x2be   :  { %v5789_v46 = vpop.f32.mrb[116].mxu1 }
 0x2bf   :  { %7062 = vst [vmem:[#allocation15_spill] sm:$0xff] %v5789_v46  ;;  %v2106_v6 = vpop.f32.mrb[52].mxu0  ;;  %v1658_v41 = vpop.f32.mrb[117].mxu1 }
 0x2c0   :  { %v5792_v53 = vadd.f32 %v2106_v6, %v5609_v23  ;;  %v2108_v35 = vpop.f32.mrb[53].mxu0  ;;  %v5794_v8 = vpop.f32.mrb[118].mxu1 }
 0x2c1   :  { %7063 = vst [vmem:[#allocation42_spill] sm:$0xff] %v5794_v8  ;;  %v2109_v42 = vpop.f32.mrb[54].mxu0  ;;  %v1661_v58 = vpop.f32.mrb[119].mxu1 }
 0x2c2   :  { %v5797_v40 = vadd.f32 %v2109_v42, %v5611_v51  ;;  %v2111_v12 = vpop.f32.mrb[55].mxu0 }
 0x2c6   :  { %v5799_v52 = vpop.f32.mrb[120].mxu1 }
 0x2c7   :  { %7064 = vst [vmem:[#allocation10_spill] sm:$0xff] %v5799_v52  ;;  %v2114_v4 = vpop.f32.mrb[56].mxu0  ;;  %v1666_v5 = vpop.f32.mrb[121].mxu1 }
 0x2c8   :  { %v5802_v39 = vadd.f32 %v2114_v4, %v5617_v59  ;;  %v2116_v41 = vpop.f32.mrb[57].mxu0  ;;  %v5804_v46 = vpop.f32.mrb[122].mxu1 }
 0x2c9   :  { %7065 = vst [vmem:[#allocation35_spill] sm:$0xff] %v5804_v46  ;;  %v2117_v23 = vpop.f32.mrb[58].mxu0  ;;  %v1669_v6 = vpop.f32.mrb[123].mxu1 }
 0x2ca   :  { %v5807_v35 = vadd.f32 %v2117_v23, %v5619_v57  ;;  %v2119_v58 = vpop.f32.mrb[59].mxu0 }
 0x2ce   :  { %v5809_v8 = vpop.f32.mrb[124].mxu1 }
 0x2cf   :  { %7066 = vst [vmem:[#allocation18_spill] sm:$0xff] %v5809_v8  ;;  %v2122_v51 = vpop.f32.mrb[60].mxu0  ;;  %v1674_v42 = vpop.f32.mrb[125].mxu1 }
 0x2d0   :  { %v5812_v12 = vadd.f32 %v2122_v51, %v5625_v19  ;;  %v2124_v5 = vpop.f32.mrb[61].mxu0  ;;  %v5814_v52 = vpop.f32.mrb[126].mxu1 }
 0x2d1   :  { %7067 = vst [vmem:[#allocation43_spill] sm:$0xff] %v5814_v52  ;;  %v2125_v59 = vpop.f32.mrb[62].mxu0  ;;  %v1677_v4 = vpop.f32.mrb[127].mxu1 }
 0x2d2   :  { %v5817_v41 = vadd.f32 %v2125_v59, %v5627_v17  ;;  %v2127_v6 = vpop.f32.mrb[63].mxu0 }
 0x2d6   :  { %v3432_v46 = vpop.f32.mrb[128].mxu1 }
 0x2d7   :  { %v2130_v57 = vpop.f32.mrb[64].mxu0  ;;  %v5820_v23 = vadd.f32 %v5656_v14, %v3432_v46  ;;  %v2291_v58 = vpop.f32.mrb[129].mxu1 }
 0x2d8   :  { %v5823_v42 = vadd.f32 %v2130_v57, %v5633_v15  ;;  %v2132_v19 = vpop.f32.mrb[65].mxu0  ;;  %v5826_v51 = vadd.f32 %v5636_v24, %v2291_v58  ;;  %v3433_v5 = vpop.f32.mrb[130].mxu1 }
 0x2d9   :  { %7068 = vst [vmem:[#allocation13_spill] sm:$0xff] %v5820_v23  ;;  %v2133_v52 = vpop.f32.mrb[66].mxu0  ;;  %v5829_v4 = vadd.f32 %v5661_v1, %v3433_v5  ;;  %v2294_v17 = vpop.f32.mrb[131].mxu1  ;;  %v2949_v1 = vmul.f32 %v5820_v23, %v5820_v23 }
 0x2da   :  { %7069 = vst [vmem:[#allocation37_spill] sm:$0xff] %v5826_v51  ;;  %v5832_v59 = vadd.f32 %v2133_v52, %v5638_v25  ;;  %v2135_v6 = vpop.f32.mrb[67].mxu0  ;;  %v5835_v14 = vadd.f32 %v5641_v0, %v2294_v17  ;;  %v2947_v15 = vmul.f32 %v5826_v51, %v5826_v51 }
 0x2db   :  { %v2950_v0 = vmul.f32 %v5829_v4, %v5829_v4 }
 0x2dc   :  { %7070 = vst [vmem:[#allocation21_spill] sm:$0xff] %v5832_v59  ;;  %7071 = vst [vmem:[#allocation46_spill] sm:$0xff] %v5835_v14  ;;  %v2877_v24 = vadd.f32 %v5835_v14, %v5826_v51  ;;  %v2948_v46 = vmul.f32 %v5835_v14, %v5835_v14 }
 0x2de   :  { %v2878_v57 = vadd.f32 %v2877_v24, %v5820_v23  ;;  %v3011_v25 = vadd.f32 %v2948_v46, %v2947_v15  ;;  %v3436_v52 = vpop.f32.mrb[132].mxu1 }
 0x2df   :  { %v2138_v58 = vpop.f32.mrb[68].mxu0  ;;  %v5849_v19 = vadd.f32 %v5687_v32, %v3436_v52  ;;  %v2307_v5 = vpop.f32.mrb[133].mxu1 }
 0x2e0   :  { %v2879_v17 = vadd.f32 %v2878_v57, %v5829_v4  ;;  %v3012_v6 = vadd.f32 %v3011_v25, %v2949_v1  ;;  %v5853_v14 = vadd.f32 %v2138_v58, %v5647_v2  ;;  %v2140_v51 = vpop.f32.mrb[69].mxu0  ;;  %v5856_v8 = vadd.f32 %v5673_v44, %v2307_v5  ;;  %v3437_v15 = vpop.f32.mrb[134].mxu1 }
 0x2e1   :  { %v2141_v24 = vpop.f32.mrb[70].mxu0  ;;  %v5859_v46 = vadd.f32 %v5692_v30, %v3437_v15  ;;  %v2310_v23 = vpop.f32.mrb[135].mxu1 }
 0x2e2   :  { %v3013_v59 = vadd.f32 %v3012_v6, %v2950_v0  ;;  %v2880_v32 = vadd.f32 %v2879_v17, %v5856_v8  ;;  %v2951_v57 = vmul.f32 %v5856_v8, %v5856_v8  ;;  %v5865_v1 = vadd.f32 %v2141_v24, %v5658_v28  ;;  %v2143_v2 = vpop.f32.mrb[71].mxu0 }
 0x2e3   :  { %v5868_v51 = vadd.f32 %v5678_v3, %v2310_v23  ;;  %v2953_v0 = vmul.f32 %v5849_v19, %v5849_v19  ;;  %v2954_v24 = vmul.f32 %v5859_v46, %v5859_v46 }
 0x2e4   :  { %v3014_v44 = vadd.f32 %v3013_v59, %v2951_v57 }
 0x2e5   :  { %v2881_v25 = vadd.f32 %v2880_v32, %v5868_v51  ;;  %v2952_v30 = vmul.f32 %v5868_v51, %v5868_v51 }
 0x2e6   :  { %v3440_v52 = vpop.f32.mrb[136].mxu1 }
 0x2e7   :  { %v2882_v58 = vadd.f32 %v2881_v25, %v5849_v19  ;;  %v3015_v5 = vadd.f32 %v3014_v44, %v2952_v30  ;;  %v2146_v17 = vpop.f32.mrb[72].mxu0  ;;  %v5877_v28 = vadd.f32 %v5712_v43, %v3440_v52  ;;  %v2323_v6 = vpop.f32.mrb[137].mxu1 }
 0x2e8   :  { %v5880_v3 = vadd.f32 %v2146_v17, %v5670_v10  ;;  %v2148_v23 = vpop.f32.mrb[73].mxu0  ;;  %v5883_v59 = vadd.f32 %v5701_v47, %v2323_v6  ;;  %v3441_v15 = vpop.f32.mrb[138].mxu1 }
 0x2e9   :  { %v3016_v32 = vadd.f32 %v3015_v5, %v2953_v0  ;;  %v2883_v57 = vadd.f32 %v2882_v58, %v5859_v46  ;;  %v2149_v2 = vpop.f32.mrb[74].mxu0  ;;  %v5889_v44 = vadd.f32 %v5717_v22, %v3441_v15  ;;  %v2326_v43 = vpop.f32.mrb[139].mxu1  ;;  %v2957_v6 = vmul.f32 %v5877_v28, %v5877_v28 }
 0x2ea   :  { %v2955_v10 = vmul.f32 %v5883_v59, %v5883_v59  ;;  %v5894_v25 = vadd.f32 %v2149_v2, %v5675_v7  ;;  %v2151_v47 = vpop.f32.mrb[75].mxu0  ;;  %v5897_v30 = vadd.f32 %v5707_v13, %v2326_v43 }
 0x2eb   :  { %v2884_v52 = vadd.f32 %v2883_v57, %v5883_v59  ;;  %v3017_v0 = vadd.f32 %v3016_v32, %v2954_v24 }
 0x2ec   :  { %v2956_v58 = vmul.f32 %v5897_v30, %v5897_v30 }
 0x2ed   :  { %v3018_v5 = vadd.f32 %v3017_v0, %v2955_v10  ;;  %v2885_v22 = vadd.f32 %v2884_v52, %v5897_v30  ;;  %v2958_v10 = vmul.f32 %v5889_v44, %v5889_v44 }
 0x2ee   :  { %v3444_v17 = vpop.f32.mrb[140].mxu1 }
 0x2ef   :  { %v2886_v7 = vadd.f32 %v2885_v22, %v5877_v28  ;;  %v3019_v23 = vadd.f32 %v3018_v5, %v2956_v58  ;;  %v2154_v15 = vpop.f32.mrb[76].mxu0  ;;  %v5907_v13 = vadd.f32 %v5732_v38, %v3444_v17  ;;  %v2339_v2 = vpop.f32.mrb[141].mxu1 }
 0x2f0   :  { %v5910_v24 = vadd.f32 %v2154_v15, %v5684_v62  ;;  %v2156_v32 = vpop.f32.mrb[77].mxu0  ;;  %v5913_v57 = vadd.f32 %v5722_v33, %v2339_v2  ;;  %v3445_v43 = vpop.f32.mrb[142].mxu1 }
 0x2f1   :  { %v3020_v47 = vadd.f32 %v3019_v23, %v2957_v6  ;;  %v2887_v52 = vadd.f32 %v2886_v7, %v5889_v44  ;;  %v2157_v0 = vpop.f32.mrb[78].mxu0  ;;  %v5919_v58 = vadd.f32 %v5737_v9, %v3445_v43  ;;  %v2342_v38 = vpop.f32.mrb[143].mxu1  ;;  %v2961_v2 = vmul.f32 %v5907_v13, %v5907_v13 }
 0x2f2   :  { %v2959_v62 = vmul.f32 %v5913_v57, %v5913_v57  ;;  %v5924_v5 = vadd.f32 %v2157_v0, %v5689_v63  ;;  %v2159_v33 = vpop.f32.mrb[79].mxu0  ;;  %v5927_v22 = vadd.f32 %v5727_v60, %v2342_v38 }
 0x2f3   :  { %v2888_v17 = vadd.f32 %v2887_v52, %v5913_v57  ;;  %v3021_v6 = vadd.f32 %v3020_v47, %v2958_v10 }
 0x2f4   :  { %v2960_v7 = vmul.f32 %v5927_v22, %v5927_v22 }
 0x2f5   :  { %v3022_v23 = vadd.f32 %v3021_v6, %v2959_v62  ;;  %v2889_v9 = vadd.f32 %v2888_v17, %v5927_v22  ;;  %v2962_v62 = vmul.f32 %v5919_v58, %v5919_v58 }
 0x2f6   :  { %v3448_v15 = vpop.f32.mrb[144].mxu1 }
 0x2f7   :  { %v2890_v63 = vadd.f32 %v2889_v9, %v5907_v13  ;;  %v3023_v32 = vadd.f32 %v3022_v23, %v2960_v7  ;;  %v2162_v43 = vpop.f32.mrb[80].mxu0  ;;  %v5937_v60 = vadd.f32 %v5752_v36, %v3448_v15  ;;  %v2355_v0 = vpop.f32.mrb[145].mxu1 }
 0x2f8   :  { %v5940_v10 = vadd.f32 %v2162_v43, %v5698_v26  ;;  %v2164_v47 = vpop.f32.mrb[81].mxu0  ;;  %v5943_v52 = vadd.f32 %v5742_v27, %v2355_v0  ;;  %v3449_v38 = vpop.f32.mrb[146].mxu1 }
 0x2f9   :  { %v3024_v33 = vadd.f32 %v3023_v32, %v2961_v2  ;;  %v2891_v17 = vadd.f32 %v2890_v63, %v5919_v58  ;;  %v2165_v6 = vpop.f32.mrb[82].mxu0  ;;  %v5949_v7 = vadd.f32 %v5757_v49, %v3449_v38  ;;  %v2358_v36 = vpop.f32.mrb[147].mxu1  ;;  %v2965_v0 = vmul.f32 %v5937_v60, %v5937_v60 }
 0x2fa   :  { %v2963_v26 = vmul.f32 %v5943_v52, %v5943_v52  ;;  %v5954_v23 = vadd.f32 %v2165_v6, %v5703_v48  ;;  %v2167_v27 = vpop.f32.mrb[83].mxu0  ;;  %v5957_v9 = vadd.f32 %v5747_v20, %v2358_v36 }
 0x2fb   :  { %v2892_v15 = vadd.f32 %v2891_v17, %v5943_v52  ;;  %v3025_v2 = vadd.f32 %v3024_v33, %v2962_v62 }
 0x2fc   :  { %v2964_v63 = vmul.f32 %v5957_v9, %v5957_v9 }
 0x2fd   :  { %v3026_v32 = vadd.f32 %v3025_v2, %v2963_v26  ;;  %v2893_v49 = vadd.f32 %v2892_v15, %v5957_v9  ;;  %v2966_v26 = vmul.f32 %v5949_v7, %v5949_v7 }
 0x2fe   :  { %v3452_v43 = vpop.f32.mrb[148].mxu1 }
 0x2ff   :  { %v2894_v48 = vadd.f32 %v2893_v49, %v5937_v60  ;;  %v3027_v47 = vadd.f32 %v3026_v32, %v2964_v63  ;;  %v2170_v38 = vpop.f32.mrb[84].mxu0  ;;  %v5967_v20 = vadd.f32 %v5772_v37, %v3452_v43  ;;  %v2371_v6 = vpop.f32.mrb[149].mxu1 }
 0x300   :  { %v5970_v62 = vadd.f32 %v2170_v38, %v5709_v56  ;;  %v2172_v33 = vpop.f32.mrb[85].mxu0  ;;  %v5973_v17 = vadd.f32 %v5762_v54, %v2371_v6  ;;  %v3453_v36 = vpop.f32.mrb[150].mxu1 }
 0x301   :  { %v3028_v27 = vadd.f32 %v3027_v47, %v2965_v0  ;;  %v2895_v15 = vadd.f32 %v2894_v48, %v5949_v7  ;;  %v2173_v2 = vpop.f32.mrb[86].mxu0  ;;  %v5979_v63 = vadd.f32 %v5777_v31, %v3453_v36  ;;  %v2374_v37 = vpop.f32.mrb[151].mxu1  ;;  %v2969_v6 = vmul.f32 %v5967_v20, %v5967_v20 }
 0x302   :  { %v2967_v56 = vmul.f32 %v5973_v17, %v5973_v17  ;;  %v5984_v32 = vadd.f32 %v2173_v2, %v5714_v50  ;;  %v2175_v54 = vpop.f32.mrb[87].mxu0  ;;  %v5987_v49 = vadd.f32 %v5767_v61, %v2374_v37 }
 0x303   :  { %v2896_v43 = vadd.f32 %v2895_v15, %v5973_v17  ;;  %v3029_v0 = vadd.f32 %v3028_v27, %v2966_v26 }
 0x304   :  { %v2968_v48 = vmul.f32 %v5987_v49, %v5987_v49 }
 0x305   :  { %v3030_v47 = vadd.f32 %v3029_v0, %v2967_v56  ;;  %v2897_v31 = vadd.f32 %v2896_v43, %v5987_v49  ;;  %v2970_v56 = vmul.f32 %v5979_v63, %v5979_v63 }
 0x306   :  { %v3456_v38 = vpop.f32.mrb[152].mxu1 }
 0x307   :  { %v2898_v50 = vadd.f32 %v2897_v31, %v5967_v20  ;;  %v3031_v33 = vadd.f32 %v3030_v47, %v2968_v48  ;;  %v2178_v36 = vpop.f32.mrb[88].mxu0  ;;  %v5997_v61 = vadd.f32 %v5792_v53, %v3456_v38  ;;  %v2387_v2 = vpop.f32.mrb[153].mxu1 }
 0x308   :  { %v6000_v26 = vadd.f32 %v2178_v36, %v5719_v11  ;;  %v2180_v27 = vpop.f32.mrb[89].mxu0  ;;  %v6003_v15 = vadd.f32 %v5782_v29, %v2387_v2  ;;  %v3457_v37 = vpop.f32.mrb[154].mxu1 }
 0x309   :  { %v3032_v54 = vadd.f32 %v3031_v33, %v2969_v6  ;;  %v2899_v43 = vadd.f32 %v2898_v50, %v5979_v63  ;;  %v2181_v0 = vpop.f32.mrb[90].mxu0  ;;  %v6009_v48 = vadd.f32 %v5797_v40, %v3457_v37  ;;  %v2390_v53 = vpop.f32.mrb[155].mxu1  ;;  %v2973_v2 = vmul.f32 %v5997_v61, %v5997_v61 }
 0x30a   :  { %v2971_v11 = vmul.f32 %v6003_v15, %v6003_v15  ;;  %v6014_v47 = vadd.f32 %v2181_v0, %v5724_v16  ;;  %v2183_v29 = vpop.f32.mrb[91].mxu0  ;;  %v6017_v31 = vadd.f32 %v5787_v45, %v2390_v53 }
 0x30b   :  { %v2900_v38 = vadd.f32 %v2899_v43, %v6003_v15  ;;  %v3033_v6 = vadd.f32 %v3032_v54, %v2970_v56 }
 0x30c   :  { %v2972_v50 = vmul.f32 %v6017_v31, %v6017_v31 }
 0x30d   :  { %v3034_v33 = vadd.f32 %v3033_v6, %v2971_v11  ;;  %v2901_v40 = vadd.f32 %v2900_v38, %v6017_v31  ;;  %v2974_v11 = vmul.f32 %v6009_v48, %v6009_v48 }
 0x30e   :  { %v3460_v36 = vpop.f32.mrb[156].mxu1 }
 0x30f   :  { %v2902_v16 = vadd.f32 %v2901_v40, %v5997_v61  ;;  %v3035_v27 = vadd.f32 %v3034_v33, %v2972_v50  ;;  %v2186_v37 = vpop.f32.mrb[92].mxu0  ;;  %v6027_v45 = vadd.f32 %v5812_v12, %v3460_v36  ;;  %v2403_v0 = vpop.f32.mrb[157].mxu1 }
 0x310   :  { %v6030_v56 = vadd.f32 %v2186_v37, %v5729_v21  ;;  %v2188_v54 = vpop.f32.mrb[93].mxu0  ;;  %v6033_v43 = vadd.f32 %v5802_v39, %v2403_v0  ;;  %v3461_v53 = vpop.f32.mrb[158].mxu1 }
 0x311   :  { %v3036_v29 = vadd.f32 %v3035_v27, %v2973_v2  ;;  %v2903_v38 = vadd.f32 %v2902_v16, %v6009_v48  ;;  %v2189_v6 = vpop.f32.mrb[94].mxu0  ;;  %v6039_v50 = vadd.f32 %v5817_v41, %v3461_v53  ;;  %v2406_v12 = vpop.f32.mrb[159].mxu1  ;;  %v2977_v0 = vmul.f32 %v6027_v45, %v6027_v45 }
 0x312   :  { %v2975_v21 = vmul.f32 %v6033_v43, %v6033_v43  ;;  %v6044_v33 = vadd.f32 %v2189_v6, %v5734_v55  ;;  %v2191_v39 = vpop.f32.mrb[95].mxu0  ;;  %v6047_v40 = vadd.f32 %v5807_v35, %v2406_v12 }
 0x313   :  { %v2904_v36 = vadd.f32 %v2903_v38, %v6033_v43  ;;  %v3037_v2 = vadd.f32 %v3036_v29, %v2974_v11 }
 0x314   :  { %v2976_v16 = vmul.f32 %v6047_v40, %v6047_v40 }
 0x315   :  { %v3038_v27 = vadd.f32 %v3037_v2, %v2975_v21  ;;  %v2905_v41 = vadd.f32 %v2904_v36, %v6047_v40  ;;  %v2978_v21 = vmul.f32 %v6039_v50, %v6039_v50 }
 0x316   :  { %v3464_v37 = vpop.f32.mrb[160].mxu1 }
 0x317   :  { %v2906_v55 = vadd.f32 %v2905_v41, %v6027_v45  ;;  %v3039_v54 = vadd.f32 %v3038_v27, %v2976_v16  ;;  %v2194_v53 = vpop.f32.mrb[96].mxu0  ;;  %v6057_v35 = vadd.f32 %v5853_v14, %v3464_v37  ;;  %v2419_v6 = vpop.f32.mrb[161].mxu1  ;;  %v7073_v41 = vld [vmem:[#allocation21_spill] sm:$0xff] }
 0x318   :  { %v6060_v11 = vadd.f32 %v2194_v53, %v5739_v18  ;;  %v2196_v29 = vpop.f32.mrb[97].mxu0  ;;  %v6063_v38 = vadd.f32 %v5823_v42, %v2419_v6  ;;  %v3465_v12 = vpop.f32.mrb[162].mxu1 }
 0x319   :  { %v3040_v39 = vadd.f32 %v3039_v54, %v2977_v0  ;;  %v2907_v36 = vadd.f32 %v2906_v55, %v6039_v50  ;;  %v2197_v2 = vpop.f32.mrb[98].mxu0  ;;  %v6069_v16 = vadd.f32 %v5865_v1, %v3465_v12  ;;  %v2422_v14 = vpop.f32.mrb[163].mxu1  ;;  %v2981_v29 = vmul.f32 %v6057_v35, %v6057_v35 }
 0x31a   :  { %v2979_v18 = vmul.f32 %v6063_v38, %v6063_v38  ;;  %v6074_v27 = vadd.f32 %v2197_v2, %v5744_v34  ;;  %v2199_v42 = vpop.f32.mrb[99].mxu0  ;;  %v6077_v37 = vadd.f32 %v7073_v41, %v2422_v14 }
 0x31b   :  { %7072 = vst [vmem:[#allocation16_spill] sm:$0xff] %v6069_v16  ;;  %v2908_v53 = vadd.f32 %v2907_v36, %v6063_v38  ;;  %v3041_v0 = vadd.f32 %v3040_v39, %v2978_v21  ;;  %v7074_v36 = vld [vmem:[#allocation5_spill] sm:$0xff] }
 0x31c   :  { %v2980_v55 = vmul.f32 %v6077_v37, %v6077_v37 }
 0x31d   :  { %v3042_v54 = vadd.f32 %v3041_v0, %v2979_v18  ;;  %v2909_v1 = vadd.f32 %v2908_v53, %v6077_v37  ;;  %v2982_v53 = vmul.f32 %v6069_v16, %v6069_v16 }
 0x31e   :  { %v3468_v6 = vpop.f32.mrb[164].mxu1 }
 0x31f   :  { %v2910_v34 = vadd.f32 %v2909_v1, %v6057_v35  ;;  %v3043_v12 = vadd.f32 %v3042_v54, %v2980_v55  ;;  %v2202_v2 = vpop.f32.mrb[100].mxu0  ;;  %v6087_v14 = vadd.f32 %v5910_v24, %v3468_v6  ;;  %v2435_v42 = vpop.f32.mrb[165].mxu1 }
 0x320   :  { %v6090_v21 = vadd.f32 %v2202_v2, %v7074_v36  ;;  %v2204_v39 = vpop.f32.mrb[101].mxu0  ;;  %v6093_v18 = vadd.f32 %v5880_v3, %v2435_v42  ;;  %v3469_v41 = vpop.f32.mrb[166].mxu1  ;;  %v7076_v2 = vld [vmem:[#allocation9_spill] sm:$0xff] }
 0x321   :  { %v3044_v0 = vadd.f32 %v3043_v12, %v2981_v29  ;;  %v2911_v1 = vadd.f32 %v2910_v34, %v6069_v16  ;;  %v2205_v55 = vpop.f32.mrb[102].mxu0  ;;  %v6099_v54 = vadd.f32 %v5924_v5, %v3469_v41  ;;  %v2438_v24 = vpop.f32.mrb[167].mxu1  ;;  %v2985_v16 = vmul.f32 %v6087_v14, %v6087_v14 }
 0x322   :  { %v2983_v6 = vmul.f32 %v6093_v18, %v6093_v18  ;;  %v6104_v36 = vadd.f32 %v2205_v55, %v7076_v2  ;;  %v2207_v3 = vpop.f32.mrb[103].mxu0  ;;  %v6107_v42 = vadd.f32 %v5894_v25, %v2438_v24 }
 0x323   :  { %7075 = vst [vmem:[#allocation23_spill] sm:$0xff] %v6099_v54  ;;  %v2912_v39 = vadd.f32 %v2911_v1, %v6093_v18  ;;  %v3045_v29 = vadd.f32 %v3044_v0, %v2982_v53  ;;  %v7078_v1 = vld [vmem:[#allocation6_spill] sm:$0xff] }
 0x324   :  { %7077 = vst [vmem:[#allocation19_spill] sm:$0xff] %v6107_v42  ;;  %v2984_v34 = vmul.f32 %v6107_v42, %v6107_v42 }
 0x325   :  { %v3046_v12 = vadd.f32 %v3045_v29, %v2983_v6  ;;  %v2913_v5 = vadd.f32 %v2912_v39, %v6107_v42  ;;  %v2986_v29 = vmul.f32 %v6099_v54, %v6099_v54 }
 0x326   :  { %v3472_v41 = vpop.f32.mrb[168].mxu1 }
 0x327   :  { %v2914_v55 = vadd.f32 %v2913_v5, %v6087_v14  ;;  %v3047_v2 = vadd.f32 %v3046_v12, %v2984_v34  ;;  %v2210_v3 = vpop.f32.mrb[104].mxu0  ;;  %v6117_v25 = vadd.f32 %v5970_v62, %v3472_v41  ;;  %v2451_v24 = vpop.f32.mrb[169].mxu1 }
 0x328   :  { %v6120_v53 = vadd.f32 %v2210_v3, %v7078_v1  ;;  %v2212_v0 = vpop.f32.mrb[105].mxu0  ;;  %v6123_v6 = vadd.f32 %v5940_v10, %v2451_v24  ;;  %v3473_v39 = vpop.f32.mrb[170].mxu1  ;;  %v7081_v3 = vld [vmem:[#allocation31_spill] sm:$0xff] }
 0x329   :  { %v3048_v42 = vadd.f32 %v3047_v2, %v2985_v16  ;;  %v2915_v5 = vadd.f32 %v2914_v55, %v6099_v54  ;;  %v2213_v34 = vpop.f32.mrb[106].mxu0  ;;  %v6129_v12 = vadd.f32 %v5984_v32, %v3473_v39  ;;  %v2454_v62 = vpop.f32.mrb[171].mxu1  ;;  %v2989_v54 = vmul.f32 %v6117_v25, %v6117_v25 }
 0x32a   :  { %7079 = vst [vmem:[#allocation24_spill] sm:$0xff] %v6123_v6  ;;  %v2987_v41 = vmul.f32 %v6123_v6, %v6123_v6  ;;  %v6134_v1 = vadd.f32 %v2213_v34, %v7081_v3  ;;  %v2215_v10 = vpop.f32.mrb[107].mxu0  ;;  %v6137_v24 = vadd.f32 %v5954_v23, %v2454_v62 }
 0x32b   :  { %7080 = vst [vmem:[#allocation25_spill] sm:$0xff] %v6129_v12  ;;  %v2916_v0 = vadd.f32 %v2915_v5, %v6123_v6  ;;  %v3049_v16 = vadd.f32 %v3048_v42, %v2986_v29  ;;  %v7083_v5 = vld [vmem:[#allocation12_spill] sm:$0xff] }
 0x32c   :  { %7082 = vst [vmem:[#allocation26_spill] sm:$0xff] %v6137_v24  ;;  %v2988_v55 = vmul.f32 %v6137_v24, %v6137_v24 }
 0x32d   :  { %v3050_v2 = vadd.f32 %v3049_v16, %v2987_v41  ;;  %v2917_v32 = vadd.f32 %v2916_v0, %v6137_v24  ;;  %v2990_v0 = vmul.f32 %v6129_v12, %v6129_v12 }
 0x32e   :  { %v3476_v39 = vpop.f32.mrb[172].mxu1 }
 0x32f   :  { %v2918_v34 = vadd.f32 %v2917_v32, %v6117_v25  ;;  %v3051_v3 = vadd.f32 %v3050_v2, %v2988_v55  ;;  %v2218_v10 = vpop.f32.mrb[108].mxu0  ;;  %v6147_v23 = vadd.f32 %v6030_v56, %v3476_v39  ;;  %v2467_v62 = vpop.f32.mrb[173].mxu1  ;;  %v7085_v39 = vld [vmem:[#allocation41_spill] sm:$0xff] }
 0x330   :  { %v3580_v42 = vadd.f32 %v2218_v10, %v7083_v5  ;;  %v2220_v29 = vpop.f32.mrb[109].mxu0  ;;  %v6151_v6 = vadd.f32 %v6000_v26, %v2467_v62  ;;  %v3477_v41 = vpop.f32.mrb[174].mxu1 }
 0x331   :  { %v3052_v16 = vadd.f32 %v3051_v3, %v2989_v54  ;;  %v2919_v24 = vadd.f32 %v2918_v34, %v6129_v12  ;;  %v2221_v32 = vpop.f32.mrb[110].mxu0  ;;  %v6157_v55 = vadd.f32 %v6044_v33, %v3477_v41  ;;  %v2470_v56 = vpop.f32.mrb[175].mxu1  ;;  %v2993_v41 = vmul.f32 %v6147_v23, %v6147_v23 }
 0x332   :  { %v2991_v2 = vmul.f32 %v6151_v6, %v6151_v6  ;;  %v3581_v10 = vadd.f32 %v2221_v32, %v7085_v39  ;;  %v2223_v5 = vpop.f32.mrb[111].mxu0  ;;  %v6163_v26 = vadd.f32 %v6014_v47, %v2470_v56 }
 0x333   :  { %7084 = vst [vmem:[#allocation27_spill] sm:$0xff] %v6157_v55  ;;  %v2920_v62 = vadd.f32 %v2919_v24, %v6151_v6  ;;  %v3053_v29 = vadd.f32 %v3052_v16, %v2990_v0  ;;  %v7087_v24 = vld [vmem:[#allocation7_spill] sm:$0xff] }
 0x334   :  { %7086 = vst [vmem:[#allocation28_spill] sm:$0xff] %v6163_v26  ;;  %v2992_v54 = vmul.f32 %v6163_v26, %v6163_v26 }
 0x335   :  { %v3054_v34 = vadd.f32 %v3053_v29, %v2991_v2  ;;  %v2921_v33 = vadd.f32 %v2920_v62, %v6163_v26  ;;  %v2994_v62 = vmul.f32 %v6157_v55, %v6157_v55 }
 0x336   :  { %v3480_v3 = vpop.f32.mrb[176].mxu1 }
 0x337   :  { %v2922_v12 = vadd.f32 %v2921_v33, %v6147_v23  ;;  %v3055_v32 = vadd.f32 %v3054_v34, %v2992_v54  ;;  %v2226_v39 = vpop.f32.mrb[112].mxu0  ;;  %v6173_v47 = vadd.f32 %v6090_v21, %v3480_v3  ;;  %v2483_v56 = vpop.f32.mrb[177].mxu1  ;;  %v7090_v3 = vld [vmem:[#allocation32_spill] sm:$0xff] }
 0x338   :  { %v3582_v0 = vadd.f32 %v2226_v39, %v7087_v24  ;;  %v2228_v16 = vpop.f32.mrb[113].mxu0  ;;  %v6177_v5 = vadd.f32 %v6060_v11, %v2483_v56  ;;  %v3481_v2 = vpop.f32.mrb[178].mxu1 }
 0x339   :  { %v3056_v29 = vadd.f32 %v3055_v32, %v2993_v41  ;;  %v2923_v26 = vadd.f32 %v2922_v12, %v6157_v55  ;;  %v2229_v33 = vpop.f32.mrb[114].mxu0  ;;  %v6183_v54 = vadd.f32 %v6104_v36, %v3481_v2  ;;  %v2486_v21 = vpop.f32.mrb[179].mxu1  ;;  %v2997_v2 = vmul.f32 %v6173_v47, %v6173_v47 }
 0x33a   :  { %7088 = vst [vmem:[#allocation29_spill] sm:$0xff] %v6177_v5  ;;  %v2995_v34 = vmul.f32 %v6177_v5, %v6177_v5  ;;  %v3583_v39 = vadd.f32 %v2229_v33, %v7090_v3  ;;  %v2231_v24 = vpop.f32.mrb[115].mxu0  ;;  %v6189_v11 = vadd.f32 %v6074_v27, %v2486_v21  ;;  %v7093_v21 = vld [vmem:[#allocation15_spill] sm:$0xff] }
 0x33b   :  { %7089 = vst [vmem:[#allocation30_spill] sm:$0xff] %v6183_v54  ;;  %v2924_v56 = vadd.f32 %v2923_v26, %v6177_v5  ;;  %v3057_v16 = vadd.f32 %v3056_v29, %v2994_v62 }
 0x33c   :  { %7091 = vst [vmem:[#allocation40_spill] sm:$0xff] %v6189_v11  ;;  %v2996_v12 = vmul.f32 %v6189_v11, %v6189_v11 }
 0x33d   :  { %v3058_v41 = vadd.f32 %v3057_v16, %v2995_v34  ;;  %v2925_v36 = vadd.f32 %v2924_v56, %v6189_v11  ;;  %v2998_v56 = vmul.f32 %v6183_v54, %v6183_v54 }
 0x33e   :  { %v3484_v32 = vpop.f32.mrb[180].mxu1 }
 0x33f   :  { %v2926_v55 = vadd.f32 %v2925_v36, %v6173_v47  ;;  %v3059_v33 = vadd.f32 %v3058_v41, %v2996_v12  ;;  %v2234_v3 = vpop.f32.mrb[116].mxu0  ;;  %v6198_v24 = vadd.f32 %v3580_v42, %v3484_v32  ;;  %v2499_v27 = vpop.f32.mrb[181].mxu1  ;;  %v7096_v41 = vld [vmem:[#allocation42_spill] sm:$0xff] }
 0x340   :  { %v3584_v26 = vadd.f32 %v2234_v3, %v7093_v21  ;;  %v2236_v62 = vpop.f32.mrb[117].mxu0  ;;  %v6202_v29 = vadd.f32 %v6120_v53, %v2499_v27  ;;  %v3485_v34 = vpop.f32.mrb[182].mxu1 }
 0x341   :  { %7092 = vst [vmem:[#allocation8_spill] sm:$0xff] %v6198_v24  ;;  %v3060_v16 = vadd.f32 %v3059_v33, %v2997_v2  ;;  %v2927_v11 = vadd.f32 %v2926_v55, %v6183_v54  ;;  %v2237_v5 = vpop.f32.mrb[118].mxu0  ;;  %v6207_v36 = vadd.f32 %v3581_v10, %v3485_v34  ;;  %v2502_v12 = vpop.f32.mrb[183].mxu1  ;;  %v3001_v62 = vmul.f32 %v6198_v24, %v6198_v24 }
 0x342   :  { %7094 = vst [vmem:[#allocation33_spill] sm:$0xff] %v6202_v29  ;;  %v2999_v42 = vmul.f32 %v6202_v29, %v6202_v29  ;;  %v3585_v32 = vadd.f32 %v2237_v5, %v7096_v41  ;;  %v2239_v3 = vpop.f32.mrb[119].mxu0  ;;  %v6213_v53 = vadd.f32 %v6134_v1, %v2502_v12  ;;  %v7099_v12 = vld [vmem:[#allocation10_spill] sm:$0xff] }
 0x343   :  { %7095 = vst [vmem:[#allocation11_spill] sm:$0xff] %v6207_v36  ;;  %v2928_v27 = vadd.f32 %v2927_v11, %v6202_v29  ;;  %v3061_v21 = vadd.f32 %v3060_v16, %v2998_v56 }
 0x344   :  { %7097 = vst [vmem:[#allocation14_spill] sm:$0xff] %v6213_v53  ;;  %v3000_v2 = vmul.f32 %v6213_v53, %v6213_v53 }
 0x345   :  { %v3062_v55 = vadd.f32 %v3061_v21, %v2999_v42  ;;  %v2929_v10 = vadd.f32 %v2928_v27, %v6213_v53  ;;  %v3002_v42 = vmul.f32 %v6207_v36, %v6207_v36 }
 0x346   :  { %v3488_v33 = vpop.f32.mrb[184].mxu1 }
 0x347   :  { %v2930_v34 = vadd.f32 %v2929_v10, %v6198_v24  ;;  %v3063_v5 = vadd.f32 %v3062_v55, %v3000_v2  ;;  %v2242_v41 = vpop.f32.mrb[120].mxu0  ;;  %v6222_v3 = vadd.f32 %v3584_v26, %v3488_v33  ;;  %v2515_v1 = vpop.f32.mrb[185].mxu1  ;;  %v7102_v55 = vld [vmem:[#allocation35_spill] sm:$0xff] }
 0x348   :  { %v3586_v11 = vadd.f32 %v2242_v41, %v7099_v12  ;;  %v2244_v56 = vpop.f32.mrb[121].mxu0  ;;  %v6225_v16 = vadd.f32 %v3582_v0, %v2515_v1  ;;  %v3489_v29 = vpop.f32.mrb[186].mxu1 }
 0x349   :  { %7098 = vst [vmem:[#allocation34_spill] sm:$0xff] %v6222_v3  ;;  %v3064_v27 = vadd.f32 %v3063_v5, %v3001_v62  ;;  %v2931_v21 = vadd.f32 %v2930_v34, %v6207_v36  ;;  %v2245_v53 = vpop.f32.mrb[122].mxu0  ;;  %v6230_v54 = vadd.f32 %v3585_v32, %v3489_v29  ;;  %v2518_v2 = vpop.f32.mrb[187].mxu1  ;;  %v3005_v32 = vmul.f32 %v6222_v3, %v6222_v3 }
 0x34a   :  { %7100 = vst [vmem:[#allocation17_spill] sm:$0xff] %v6225_v16  ;;  %v3003_v26 = vmul.f32 %v6225_v16, %v6225_v16  ;;  %v3587_v10 = vadd.f32 %v2245_v53, %v7102_v55  ;;  %v2247_v33 = vpop.f32.mrb[123].mxu0  ;;  %v6235_v41 = vadd.f32 %v3583_v39, %v2518_v2  ;;  %v7104_v39 = vld [vmem:[#allocation18_spill] sm:$0xff] }
 0x34b   :  { %7101 = vst [vmem:[#allocation20_spill] sm:$0xff] %v6230_v54  ;;  %v2932_v0 = vadd.f32 %v2931_v21, %v6225_v16  ;;  %v3065_v1 = vadd.f32 %v3064_v27, %v3002_v42  ;;  %v3006_v27 = vmul.f32 %v6230_v54, %v6230_v54 }
 0x34c   :  { %7103 = vst [vmem:[#allocation36_spill] sm:$0xff] %v6235_v41  ;;  %v3004_v62 = vmul.f32 %v6235_v41, %v6235_v41 }
 0x34d   :  { %v3066_v5 = vadd.f32 %v3065_v1, %v3003_v26  ;;  %v2933_v34 = vadd.f32 %v2932_v0, %v6235_v41 }
 0x34e   :  { %v3492_v29 = vpop.f32.mrb[188].mxu1 }
 0x34f   :  { %v2934_v12 = vadd.f32 %v2933_v34, %v6222_v3  ;;  %v3067_v56 = vadd.f32 %v3066_v5, %v3004_v62  ;;  %v2250_v53 = vpop.f32.mrb[124].mxu0  ;;  %v2531_v55 = vpop.f32.mrb[189].mxu1  ;;  %v7107_v5 = vld [vmem:[#allocation43_spill] sm:$0xff] }
 0x350   :  { %v3588_v2 = vadd.f32 %v2250_v53, %v7104_v39  ;;  %v2252_v33 = vpop.f32.mrb[125].mxu0  ;;  %v6245_v21 = vadd.f32 %v3586_v11, %v2531_v55  ;;  %v3493_v42 = vpop.f32.mrb[190].mxu1 }
 0x351   :  { %v3068_v26 = vadd.f32 %v3067_v56, %v3005_v32  ;;  %v2935_v0 = vadd.f32 %v2934_v12, %v6230_v54  ;;  %v2253_v1 = vpop.f32.mrb[126].mxu0  ;;  %v2534_v41 = vpop.f32.mrb[191].mxu1 }
 0x352   :  { %7105 = vst [vmem:[#allocation22_spill] sm:$0xff] %v6245_v21  ;;  %v6250_v16 = vadd.f32 %v3588_v2, %v3492_v29  ;;  %v3007_v62 = vmul.f32 %v6245_v21, %v6245_v21  ;;  %v3589_v34 = vadd.f32 %v2253_v1, %v7107_v5  ;;  %v2255_v53 = vpop.f32.mrb[127].mxu0  ;;  %v2535_v39 = vadd.f32 %v3587_v10, %v2534_v41 }
 0x353   :  { %v2936_v11 = vadd.f32 %v2935_v0, %v6245_v21  ;;  %v3069_v55 = vadd.f32 %v3068_v26, %v3006_v27 }
 0x354   :  { %7106 = vst [vmem:[#allocation38_spill] sm:$0xff] %v6250_v16  ;;  %v6256_v33 = vadd.f32 %v3589_v34, %v3493_v42  ;;  %v3008_v3 = vmul.f32 %v2535_v39, %v2535_v39  ;;  %v3009_v12 = vmul.f32 %v6250_v16, %v6250_v16 }
 0x355   :  { %v3070_v32 = vadd.f32 %v3069_v55, %v3007_v62  ;;  %v2937_v56 = vadd.f32 %v2936_v11, %v2535_v39 }
 0x356   :  { %v3010_v54 = vmul.f32 %v6256_v33, %v6256_v33 }
 0x357   :  { %v2938_v29 = vadd.f32 %v2937_v56, %v6250_v16  ;;  %v3071_v2 = vadd.f32 %v3070_v32, %v3008_v3 }
 0x359   :  { %v2939_v1 = vadd.f32 %v2938_v29, %v6256_v33  ;;  %v3072_v10 = vadd.f32 %v3071_v2, %v3009_v12  ;;  %v3091_v12 = vlaneseq }
 0x35b   :  { %v2940_v41 = vrot.slane %v2939_v1, 4  ;;  %v3073_v0 = vadd.f32 %v3072_v10, %v3010_v54  ;;  %v3092_v29 = vshrl.u32 %v3091_v12, 7  ;;  %v3083_v54 = vld [vmem:[%s6864_s2] sm:$0x1]  ;;  %v7111_v12 = vld [vmem:[#allocation16_spill] sm:$0xff]  ;;  %s3877_s2 = smov [#allocation2]  }
 0x35d   :  { %v2941_v27 = vadd.f32 %v2940_v41, %v2939_v1  ;;  %v3074_v42 = vrot.slane %v3073_v0, 4  ;;  %v3093_v2 = vsub.s32 0, %v3092_v29  ;;  %v3087_v41 = vld [vmem:[%s6865_s3] sm:$0x1]  ;;  %v7112_v29 = vld [vmem:[#allocation19_spill] sm:$0xff]  ;;  %s3363_s3 = sshll.u32 %s3877_s2, 4  ;;  %s6841_s3 = int_to_ptr.vmem [resolvable:$true] %s3363_s3 }
 0x35e   :  { %s3852_s27 = scalar_lea.vmem %s6841_s3, 8192  ;;  %p3857_p1 = scmp.lt.s32.totalorder %s6841_s3, %s6841_s3 }
 0x35f   :  { %v2942_v26 = vrot.slane %v2941_v27, 2  ;;  %v3075_v5 = vadd.f32 %v3074_v42, %v3073_v0  ;;  %v7109_v42 = vld [vmem:[#allocation46_spill] sm:$0xff]  ;;  %p3853_p0 = scmp.ne.s32.totalorder %s6841_s3, %s3852_s27  ;;  %p3858_p2 = scmp.lt.s32.totalorder %s3852_s27, %s3852_s27 }
 0x361   :  { %v2943_v62 = vadd.f32 %v2942_v26, %v2941_v27  ;;  %v3076_v34 = vrot.slane %v3075_v5, 2  ;;  %p3859_p3 = por %p3858_p2, %p3857_p1 }
 0x363   :  { %v2944_v53 = vrot.slane %v2943_v62, 1  ;;  %v3077_v11 = vadd.f32 %v3076_v34, %v3075_v5  ;;  %v7110_v5 = vld [vmem:[#allocation13_spill] sm:$0xff]  ;;  %p3860_p4 = pnand %p3859_p3, %p3853_p0 }
 0x365   :  { %v2945_v55 = vadd.f32 %v2944_v53, %v2943_v62  ;;  %v3078_v21 = vrot.slane %v3077_v11, 1 }
 0x367   :  { %v2946_v56 = vmul.f32 0.001953125, %v2945_v55  ;;  %v3079_v3 = vadd.f32 %v3078_v21, %v3077_v11 }
 0x369   :  { %v3080_v32 = vmul.f32 0.001953125, %v3079_v3  ;;  %v3081_v16 = vmul.f32 %v2946_v56, %v2946_v56 }
 0x36b   :  { %v3082_v36 = vsub.f32 %v3080_v32, %v3081_v16 }
 0x36d   :  { %v3084_v24 = vadd.f32 1e-05, %v3082_v36 }
 0x36f   :  { %3850 = vrsqrt.f32 %v3084_v24  ;;  %v7108_v24 = vld [vmem:[#allocation37_spill] sm:$0xff] }
 0x379   :  { %v3851_v1 = vpop.eup %3850 }
 0x37a   :  { %v3086_v10 = vmul.f32 %v3851_v1, %v3083_v54  ;;  %v7113_v54 = vld [vmem:[#allocation23_spill] sm:$0xff] }
 0x37c   :  { %v3088_v0 = vmul.f32 %v3086_v10, %v2946_v56  ;;  %v6270_v21 = vrot.slane %v3086_v10, %v3093_v2  ;;  %v7115_v10 = vld [vmem:[#allocation26_spill] sm:$0xff] }
 0x37e   :  { %v3089_v27 = vsub.f32 %v3087_v41, %v3088_v0  ;;  %v3157_v36 = vmul.f32 %v6270_v21, %v2535_v39  ;;  %v6275_v16 = vmul.f32 %v6270_v21, %v7108_v24  ;;  %v6279_v26 = vmul.f32 %v6270_v21, %v7109_v42  ;;  %v7116_v0 = vld [vmem:[#allocation25_spill] sm:$0xff] }
 0x37f   :  { %v6283_v62 = vmul.f32 %v6270_v21, %v7110_v5  ;;  %v6287_v34 = vmul.f32 %v6270_v21, %v5829_v4  ;;  %v6291_v53 = vmul.f32 %v6270_v21, %v5856_v8  ;;  %v6295_v39 = vmul.f32 %v6270_v21, %v5868_v51  ;;  %v7118_v5 = vld [vmem:[#allocation27_spill] sm:$0xff] }
 0x380   :  { %v6297_v11 = vrot.slane %v3089_v27, %v3093_v2  ;;  %v6301_v55 = vmul.f32 %v6270_v21, %v5849_v19  ;;  %v6305_v56 = vmul.f32 %v6270_v21, %v5859_v46  ;;  %v6309_v4 = vmul.f32 %v6270_v21, %v5883_v59  ;;  %v7114_v2 = vld [vmem:[#allocation24_spill] sm:$0xff] }
 0x381   :  { %v6313_v8 = vmul.f32 %v6270_v21, %v5897_v30  ;;  %v6317_v51 = vmul.f32 %v6270_v21, %v5877_v28  ;;  %v6321_v19 = vmul.f32 %v6270_v21, %v5889_v44  ;;  %v6325_v46 = vmul.f32 %v6270_v21, %v5913_v57 }
 0x382   :  { %v3227_v3 = vadd.f32 %v6297_v11, %v3157_v36  ;;  %v6330_v59 = vmul.f32 %v6270_v21, %v5927_v22  ;;  %v6334_v30 = vmul.f32 %v6270_v21, %v5907_v13  ;;  %v6338_v28 = vmul.f32 %v6270_v21, %v5919_v58  ;;  %v7117_v36 = vld [vmem:[#allocation28_spill] sm:$0xff] }
 0x383   :  { %v6342_v44 = vmul.f32 %v6270_v21, %v5943_v52  ;;  %v6346_v57 = vmul.f32 %v6270_v21, %v5957_v9  ;;  %v6350_v22 = vmul.f32 %v6270_v21, %v5937_v60  ;;  %v6354_v13 = vmul.f32 %v6270_v21, %v5949_v7 }
 0x384   :  { %v3291_v32 = vmax.f32 %v3227_v3, 0.0  ;;  %v6358_v58 = vmul.f32 %v6270_v21, %v5973_v17  ;;  %v6362_v52 = vmul.f32 %v6270_v21, %v5987_v49  ;;  %v6366_v9 = vmul.f32 %v6270_v21, %v5967_v20  ;;  %v7119_v3 = vld [vmem:[#allocation29_spill] sm:$0xff] }
 0x385   :  { %v6370_v60 = vmul.f32 %v6270_v21, %v5979_v63  ;;  %v6374_v7 = vmul.f32 %v6270_v21, %v6003_v15  ;;  %v6378_v17 = vmul.f32 %v6270_v21, %v6017_v31  ;;  %v6382_v49 = vmul.f32 %v6270_v21, %v5997_v61 }
 0x386   :  { %3355 = vst [vmem:[#allocation2 + $0x1e8] sm:$0xff] %v3291_v32  ;;  %v6386_v20 = vmul.f32 %v6270_v21, %v6009_v48  ;;  %v6390_v63 = vmul.f32 %v6270_v21, %v6033_v43  ;;  %v6394_v15 = vmul.f32 %v6270_v21, %v6047_v40  ;;  %v6398_v31 = vmul.f32 %v6270_v21, %v6027_v45 }
 0x387   :  { %v6402_v61 = vmul.f32 %v6270_v21, %v6039_v50  ;;  %v6406_v48 = vmul.f32 %v6270_v21, %v6063_v38  ;;  %v6410_v43 = vmul.f32 %v6270_v21, %v6077_v37  ;;  %v6414_v40 = vmul.f32 %v6270_v21, %v6057_v35 }
 0x388   :  { %v6418_v45 = vmul.f32 %v6270_v21, %v7111_v12  ;;  %v6422_v50 = vmul.f32 %v6270_v21, %v6093_v18  ;;  %v6426_v38 = vmul.f32 %v6270_v21, %v7112_v29  ;;  %v6430_v37 = vmul.f32 %v6270_v21, %v6087_v14  ;;  %v7120_v12 = vld [vmem:[#allocation40_spill] sm:$0xff] }
 0x389   :  { %v6434_v35 = vmul.f32 %v6270_v21, %v7113_v54  ;;  %v6438_v1 = vmul.f32 %v6270_v21, %v7114_v2  ;;  %v6442_v18 = vmul.f32 %v6270_v21, %v7115_v10  ;;  %v6446_v41 = vmul.f32 %v6270_v21, %v6117_v25  ;;  %v7122_v54 = vld [vmem:[#allocation30_spill] sm:$0xff]  ;;  %v7124_v2 = vld [vmem:[#allocation33_spill] sm:$0xff] }
 0x38a   :  { %v6450_v14 = vmul.f32 %v6270_v21, %v7116_v0  ;;  %v6454_v27 = vmul.f32 %v6270_v21, %v6151_v6  ;;  %v6458_v24 = vmul.f32 %v6270_v21, %v7117_v36  ;;  %v6462_v42 = vmul.f32 %v6270_v21, %v6147_v23  ;;  %v7126_v0 = vld [vmem:[#allocation14_spill] sm:$0xff] }
 0x38b   :  { %v6466_v25 = vmul.f32 %v6270_v21, %v7118_v5  ;;  %v6470_v32 = vmul.f32 %v6270_v21, %v7119_v3  ;;  %v6474_v6 = vmul.f32 %v6270_v21, %v7120_v12  ;;  %v6478_v29 = vmul.f32 %v6270_v21, %v6173_v47  ;;  %v7128_v5 = vld [vmem:[#allocation8_spill] sm:$0xff]  ;;  %v7130_v12 = vld [vmem:[#allocation11_spill] sm:$0xff] }
 0x38c   :  { %v6482_v23 = vmul.f32 %v6270_v21, %v7122_v54  ;;  %v6486_v10 = vmul.f32 %v6270_v21, %v7124_v2  ;;  %v6490_v36 = vmul.f32 %v6270_v21, %v7126_v0  ;;  %v6494_v3 = vmul.f32 %v6270_v21, %v7128_v5 }
 0x38d   :  { %7121 = vst [vmem:[#allocation39_spill] sm:$0xff] %v6478_v29  ;;  %v6498_v47 = vmul.f32 %v6270_v21, %v7130_v12  ;;  %v7132_v29 = vld [vmem:[#allocation17_spill] sm:$0xff] }
 0x38e   :  { %7123 = vst [vmem:[#allocation44_spill] sm:$0xff] %v6482_v23  ;;  %7125 = vst [vmem:[#allocation45_spill] sm:$0xff] %v6486_v10  ;;  %v6502_v54 = vmul.f32 %v6270_v21, %v7132_v29  ;;  %v7133_v23 = vld [vmem:[#allocation36_spill] sm:$0xff]  ;;  %v7134_v10 = vld [vmem:[#allocation34_spill] sm:$0xff] }
 0x38f   :  { %7127 = vst [vmem:[#allocation47_spill] sm:$0xff] %v6490_v36  ;;  %7129 = vst [vmem:[#allocation48_spill] sm:$0xff] %v6494_v3  ;;  %v6506_v2 = vmul.f32 %v6270_v21, %v7133_v23  ;;  %v6510_v0 = vmul.f32 %v6270_v21, %v7134_v10  ;;  %v7135_v36 = vld [vmem:[#allocation20_spill] sm:$0xff]  ;;  %v7136_v3 = vld [vmem:[#allocation22_spill] sm:$0xff]  ;;  %v6526_v23 = vmul.f32 %v6270_v21, %v6256_v33 }
 0x390   :  { %7131 = vst [vmem:[#allocation49_spill] sm:$0xff] %v6498_v47  ;;  %v6514_v5 = vmul.f32 %v6270_v21, %v7135_v36  ;;  %v6518_v12 = vmul.f32 %v6270_v21, %v7136_v3  ;;  %v7137_v47 = vld [vmem:[#allocation38_spill] sm:$0xff]  ;;  %v6530_v10 = vadd.f32 %v6297_v11, %v6275_v16  ;;  %v6534_v36 = vadd.f32 %v6297_v11, %v6279_v26 }
 0x391   :  { %v6522_v29 = vmul.f32 %v6270_v21, %v7137_v47  ;;  %v6538_v3 = vadd.f32 %v6297_v11, %v6283_v62  ;;  %v6542_v47 = vadd.f32 %v6297_v11, %v6287_v34  ;;  %v6546_v33 = vadd.f32 %v6297_v11, %v6291_v53 }
 0x392   :  { %v6550_v21 = vadd.f32 %v6297_v11, %v6295_v39  ;;  %v6554_v16 = vadd.f32 %v6297_v11, %v6301_v55  ;;  %v6558_v26 = vadd.f32 %v6297_v11, %v6305_v56  ;;  %v6562_v62 = vadd.f32 %v6297_v11, %v6309_v4 }
 0x393   :  { %v6566_v34 = vadd.f32 %v6297_v11, %v6313_v8  ;;  %v6570_v53 = vadd.f32 %v6297_v11, %v6317_v51  ;;  %v6574_v39 = vadd.f32 %v6297_v11, %v6321_v19  ;;  %v6578_v55 = vadd.f32 %v6297_v11, %v6325_v46 }
 0x394   :  { %v6582_v56 = vadd.f32 %v6297_v11, %v6330_v59  ;;  %v6586_v4 = vadd.f32 %v6297_v11, %v6334_v30  ;;  %v6590_v8 = vadd.f32 %v6297_v11, %v6338_v28  ;;  %v6594_v51 = vadd.f32 %v6297_v11, %v6342_v44 }
 0x395   :  { %v6598_v19 = vadd.f32 %v6297_v11, %v6346_v57  ;;  %v6602_v46 = vadd.f32 %v6297_v11, %v6350_v22  ;;  %v6606_v59 = vadd.f32 %v6297_v11, %v6354_v13  ;;  %v6610_v30 = vadd.f32 %v6297_v11, %v6358_v58 }
 0x396   :  { %v6614_v28 = vadd.f32 %v6297_v11, %v6362_v52  ;;  %v6618_v44 = vadd.f32 %v6297_v11, %v6366_v9  ;;  %v6622_v57 = vadd.f32 %v6297_v11, %v6370_v60  ;;  %v6626_v22 = vadd.f32 %v6297_v11, %v6374_v7 }
 0x397   :  { %v6630_v13 = vadd.f32 %v6297_v11, %v6378_v17  ;;  %v6634_v58 = vadd.f32 %v6297_v11, %v6382_v49  ;;  %v6638_v52 = vadd.f32 %v6297_v11, %v6386_v20  ;;  %v6642_v9 = vadd.f32 %v6297_v11, %v6390_v63 }
 0x398   :  { %v6646_v60 = vadd.f32 %v6297_v11, %v6394_v15  ;;  %v6650_v7 = vadd.f32 %v6297_v11, %v6398_v31  ;;  %v6654_v17 = vadd.f32 %v6297_v11, %v6402_v61  ;;  %v6658_v49 = vadd.f32 %v6297_v11, %v6406_v48 }
 0x399   :  { %v6662_v20 = vadd.f32 %v6297_v11, %v6410_v43  ;;  %v6666_v63 = vadd.f32 %v6297_v11, %v6414_v40  ;;  %v6670_v15 = vadd.f32 %v6297_v11, %v6418_v45  ;;  %v6674_v31 = vadd.f32 %v6297_v11, %v6422_v50 }
 0x39a   :  { %v6678_v61 = vadd.f32 %v6297_v11, %v6426_v38  ;;  %v6682_v48 = vadd.f32 %v6297_v11, %v6430_v37  ;;  %v6686_v43 = vadd.f32 %v6297_v11, %v6434_v35  ;;  %v6690_v40 = vadd.f32 %v6297_v11, %v6438_v1 }
 0x39b   :  { %v6694_v45 = vadd.f32 %v6297_v11, %v6442_v18  ;;  %v6698_v50 = vadd.f32 %v6297_v11, %v6446_v41  ;;  %v6702_v38 = vadd.f32 %v6297_v11, %v6450_v14  ;;  %v6706_v37 = vadd.f32 %v6297_v11, %v6454_v27  ;;  %v7143_v27 = vld [vmem:[#allocation39_spill] sm:$0xff] }
 0x39c   :  { %v6710_v35 = vadd.f32 %v6297_v11, %v6458_v24  ;;  %v6714_v1 = vadd.f32 %v6297_v11, %v6462_v42  ;;  %v6718_v18 = vadd.f32 %v6297_v11, %v6466_v25  ;;  %v6722_v41 = vadd.f32 %v6297_v11, %v6470_v32 }
 0x39d   :  { %v6726_v14 = vadd.f32 %v6297_v11, %v6474_v6  ;;  %v6730_v24 = vadd.f32 %v6297_v11, %v7143_v27 }
 0x39e   :  { %7138 = vst [vmem:[#allocation50_spill] sm:$0xff] %v6710_v35  ;;  %7139 = vst [vmem:[#allocation51_spill] sm:$0xff] %v6714_v1  ;;  %v7144_v35 = vld [vmem:[#allocation44_spill] sm:$0xff]  ;;  %v7145_v1 = vld [vmem:[#allocation45_spill] sm:$0xff] }
 0x39f   :  { %7140 = vst [vmem:[#allocation52_spill] sm:$0xff] %v6718_v18  ;;  %7141 = vst [vmem:[#allocation53_spill] sm:$0xff] %v6722_v41  ;;  %v6734_v42 = vadd.f32 %v6297_v11, %v7144_v35  ;;  %v6738_v25 = vadd.f32 %v6297_v11, %v7145_v1  ;;  %v7146_v18 = vld [vmem:[#allocation47_spill] sm:$0xff]  ;;  %v7147_v41 = vld [vmem:[#allocation48_spill] sm:$0xff]  ;;  %v6754_v35 = vadd.f32 %v6297_v11, %v6502_v54 }
 0x3a0   :  { %7142 = vst [vmem:[#allocation54_spill] sm:$0xff] %v6726_v14  ;;  %v6742_v32 = vadd.f32 %v6297_v11, %v7146_v18  ;;  %v6746_v6 = vadd.f32 %v6297_v11, %v7147_v41  ;;  %v7148_v14 = vld [vmem:[#allocation49_spill] sm:$0xff]  ;;  %v6758_v1 = vadd.f32 %v6297_v11, %v6506_v2  ;;  %v6762_v18 = vadd.f32 %v6297_v11, %v6510_v0 }
 0x3a1   :  { %v6750_v27 = vadd.f32 %v6297_v11, %v7148_v14  ;;  %v6766_v41 = vadd.f32 %v6297_v11, %v6514_v5  ;;  %v6770_v14 = vadd.f32 %v6297_v11, %v6518_v12  ;;  %v6774_v54 = vadd.f32 %v6297_v11, %v6522_v29 }
 0x3a2   :  { %7149 = vst [vmem:[#allocation55_spill] sm:$0xff] %v6758_v1  ;;  %7150 = vst [vmem:[#allocation56_spill] sm:$0xff] %v6762_v18  ;;  %v6778_v2 = vadd.f32 %v6297_v11, %v6526_v23  ;;  %v3230_v1 = vmax.f32 %v6530_v10, 0.0  ;;  %v3231_v0 = vmax.f32 %v6534_v36, 0.0  ;;  %v3232_v18 = vmax.f32 %v6538_v3, 0.0 }
 0x3a3   :  { %7151 = vst [vmem:[#allocation57_spill] sm:$0xff] %v6766_v41  ;;  %7152 = vst [vmem:[#allocation58_spill] sm:$0xff] %v6770_v14  ;;  %v3233_v5 = vmax.f32 %v6542_v47, 0.0  ;;  %v3234_v41 = vmax.f32 %v6546_v33, 0.0  ;;  %v3235_v12 = vmax.f32 %v6550_v21, 0.0  ;;  %v3236_v14 = vmax.f32 %v6554_v16, 0.0 }
 0x3a4   :  { %7153 = vst [vmem:[#allocation59_spill] sm:$0xff] %v6774_v54  ;;  %v3237_v29 = vmax.f32 %v6558_v26, 0.0  ;;  %v3238_v54 = vmax.f32 %v6562_v62, 0.0  ;;  %3294 = vst [vmem:[#allocation2] sm:$0xff] %v3230_v1  ;;  %v3239_v11 = vmax.f32 %v6566_v34, 0.0  ;;  %v3240_v23 = vmax.f32 %v6570_v53, 0.0 }
 0x3a5   :  { %v3241_v10 = vmax.f32 %v6574_v39, 0.0  ;;  %v3242_v36 = vmax.f32 %v6578_v55, 0.0  ;;  %3295 = vst [vmem:[#allocation2 + $0x8] sm:$0xff] %v3231_v0  ;;  %3296 = vst [vmem:[#allocation2 + $0x10] sm:$0xff] %v3232_v18  ;;  %v3243_v3 = vmax.f32 %v6582_v56, 0.0  ;;  %v3244_v47 = vmax.f32 %v6586_v4, 0.0 }
 0x3a6   :  { %3297 = vst [vmem:[#allocation2 + $0x18] sm:$0xff] %v3233_v5  ;;  %3298 = vst [vmem:[#allocation2 + $0x20] sm:$0xff] %v3234_v41  ;;  %v3245_v33 = vmax.f32 %v6590_v8, 0.0  ;;  %v3246_v21 = vmax.f32 %v6594_v51, 0.0  ;;  %v3247_v16 = vmax.f32 %v6598_v19, 0.0  ;;  %v3248_v26 = vmax.f32 %v6602_v46, 0.0 }
 0x3a7   :  { %3299 = vst [vmem:[#allocation2 + $0x28] sm:$0xff] %v3235_v12  ;;  %3300 = vst [vmem:[#allocation2 + $0x30] sm:$0xff] %v3236_v14  ;;  %v3249_v62 = vmax.f32 %v6606_v59, 0.0  ;;  %v3250_v34 = vmax.f32 %v6610_v30, 0.0  ;;  %v3251_v53 = vmax.f32 %v6614_v28, 0.0  ;;  %v3252_v39 = vmax.f32 %v6618_v44, 0.0 }
 0x3a8   :  { %3301 = vst [vmem:[#allocation2 + $0x38] sm:$0xff] %v3237_v29  ;;  %3302 = vst [vmem:[#allocation2 + $0x40] sm:$0xff] %v3238_v54  ;;  %v3253_v55 = vmax.f32 %v6622_v57, 0.0  ;;  %v3254_v56 = vmax.f32 %v6626_v22, 0.0  ;;  %v3255_v4 = vmax.f32 %v6630_v13, 0.0  ;;  %v3256_v8 = vmax.f32 %v6634_v58, 0.0 }
 0x3a9   :  { %3303 = vst [vmem:[#allocation2 + $0x48] sm:$0xff] %v3239_v11  ;;  %3304 = vst [vmem:[#allocation2 + $0x50] sm:$0xff] %v3240_v23  ;;  %v3257_v51 = vmax.f32 %v6638_v52, 0.0  ;;  %v3258_v19 = vmax.f32 %v6642_v9, 0.0  ;;  %v3259_v46 = vmax.f32 %v6646_v60, 0.0  ;;  %v3260_v59 = vmax.f32 %v6650_v7, 0.0 }
 0x3aa   :  { %3305 = vst [vmem:[#allocation2 + $0x58] sm:$0xff] %v3241_v10  ;;  %3306 = vst [vmem:[#allocation2 + $0x60] sm:$0xff] %v3242_v36  ;;  %v3261_v30 = vmax.f32 %v6654_v17, 0.0  ;;  %v3262_v28 = vmax.f32 %v6658_v49, 0.0  ;;  %v3263_v44 = vmax.f32 %v6662_v20, 0.0  ;;  %v3264_v57 = vmax.f32 %v6666_v63, 0.0 }
 0x3ab   :  { %3307 = vst [vmem:[#allocation2 + $0x68] sm:$0xff] %v3243_v3  ;;  %3308 = vst [vmem:[#allocation2 + $0x70] sm:$0xff] %v3244_v47  ;;  %v3265_v22 = vmax.f32 %v6670_v15, 0.0  ;;  %v3266_v13 = vmax.f32 %v6674_v31, 0.0  ;;  %v3267_v58 = vmax.f32 %v6678_v61, 0.0  ;;  %v3268_v52 = vmax.f32 %v6682_v48, 0.0 }
 0x3ac   :  { %3309 = vst [vmem:[#allocation2 + $0x78] sm:$0xff] %v3245_v33  ;;  %3310 = vst [vmem:[#allocation2 + $0x80] sm:$0xff] %v3246_v21  ;;  %v3269_v9 = vmax.f32 %v6686_v43, 0.0  ;;  %v3270_v60 = vmax.f32 %v6690_v40, 0.0  ;;  %v3271_v7 = vmax.f32 %v6694_v45, 0.0  ;;  %v3272_v17 = vmax.f32 %v6698_v50, 0.0 }
 0x3ad   :  { %3311 = vst [vmem:[#allocation2 + $0x88] sm:$0xff] %v3247_v16  ;;  %3312 = vst [vmem:[#allocation2 + $0x90] sm:$0xff] %v3248_v26  ;;  %v3273_v49 = vmax.f32 %v6702_v38, 0.0  ;;  %v3274_v20 = vmax.f32 %v6706_v37, 0.0  ;;  %v7154_v63 = vld [vmem:[#allocation50_spill] sm:$0xff]  ;;  %v7155_v31 = vld [vmem:[#allocation51_spill] sm:$0xff] }
 0x3ae   :  { %3313 = vst [vmem:[#allocation2 + $0x98] sm:$0xff] %v3249_v62  ;;  %3314 = vst [vmem:[#allocation2 + $0xa0] sm:$0xff] %v3250_v34  ;;  %v3275_v15 = vmax.f32 %v7154_v63, 0.0  ;;  %v3276_v61 = vmax.f32 %v7155_v31, 0.0  ;;  %v7156_v48 = vld [vmem:[#allocation52_spill] sm:$0xff]  ;;  %v7157_v40 = vld [vmem:[#allocation53_spill] sm:$0xff] }
 0x3af   :  { %3315 = vst [vmem:[#allocation2 + $0xa8] sm:$0xff] %v3251_v53  ;;  %3316 = vst [vmem:[#allocation2 + $0xb0] sm:$0xff] %v3252_v39  ;;  %v3277_v43 = vmax.f32 %v7156_v48, 0.0  ;;  %v3278_v1 = vmax.f32 %v7157_v40, 0.0  ;;  %v7158_v45 = vld [vmem:[#allocation54_spill] sm:$0xff]  ;;  %v3280_v38 = vmax.f32 %v6730_v24, 0.0 }
 0x3b0   :  { %3317 = vst [vmem:[#allocation2 + $0xb8] sm:$0xff] %v3253_v55  ;;  %3318 = vst [vmem:[#allocation2 + $0xc0] sm:$0xff] %v3254_v56  ;;  %v3279_v50 = vmax.f32 %v7158_v45, 0.0  ;;  %v3281_v37 = vmax.f32 %v6734_v42, 0.0  ;;  %v3282_v18 = vmax.f32 %v6738_v25, 0.0  ;;  %v3283_v41 = vmax.f32 %v6742_v32, 0.0 }
 0x3b1   :  { %3319 = vst [vmem:[#allocation2 + $0xc8] sm:$0xff] %v3255_v4  ;;  %3320 = vst [vmem:[#allocation2 + $0xd0] sm:$0xff] %v3256_v8  ;;  %v3284_v14 = vmax.f32 %v6746_v6, 0.0  ;;  %v3285_v54 = vmax.f32 %v6750_v27, 0.0  ;;  %v3286_v0 = vmax.f32 %v6754_v35, 0.0  ;;  %v7159_v24 = vld [vmem:[#allocation55_spill] sm:$0xff] }
 0x3b2   :  { %3321 = vst [vmem:[#allocation2 + $0xd8] sm:$0xff] %v3257_v51  ;;  %3322 = vst [vmem:[#allocation2 + $0xe0] sm:$0xff] %v3258_v19  ;;  %v3287_v42 = vmax.f32 %v7159_v24, 0.0  ;;  %v7160_v5 = vld [vmem:[#allocation56_spill] sm:$0xff]  ;;  %v7161_v12 = vld [vmem:[#allocation57_spill] sm:$0xff]  ;;  %v3293_v27 = vmax.f32 %v6778_v2, 0.0 }
 0x3b3   :  { %3323 = vst [vmem:[#allocation2 + $0xe8] sm:$0xff] %v3259_v46  ;;  %3324 = vst [vmem:[#allocation2 + $0xf0] sm:$0xff] %v3260_v59  ;;  %v3288_v25 = vmax.f32 %v7160_v5, 0.0  ;;  %v3289_v29 = vmax.f32 %v7161_v12, 0.0  ;;  %v7162_v11 = vld [vmem:[#allocation58_spill] sm:$0xff]  ;;  %v7163_v32 = vld [vmem:[#allocation59_spill] sm:$0xff] }
 0x3b4   :  { %3325 = vst [vmem:[#allocation2 + $0xf8] sm:$0xff] %v3261_v30  ;;  %3326 = vst [vmem:[#allocation2 + $0x100] sm:$0xff] %v3262_v28  ;;  %v3290_v23 = vmax.f32 %v7162_v11, 0.0  ;;  %v3292_v6 = vmax.f32 %v7163_v32, 0.0 }
 0x3b5   :  { %3327 = vst [vmem:[#allocation2 + $0x108] sm:$0xff] %v3263_v44  ;;  %3328 = vst [vmem:[#allocation2 + $0x110] sm:$0xff] %v3264_v57 }
 0x3b6   :  { %3329 = vst [vmem:[#allocation2 + $0x118] sm:$0xff] %v3265_v22  ;;  %3330 = vst [vmem:[#allocation2 + $0x120] sm:$0xff] %v3266_v13 }
 0x3b7   :  { %3331 = vst [vmem:[#allocation2 + $0x128] sm:$0xff] %v3267_v58  ;;  %3332 = vst [vmem:[#allocation2 + $0x130] sm:$0xff] %v3268_v52 }
 0x3b8   :  { %3333 = vst [vmem:[#allocation2 + $0x138] sm:$0xff] %v3269_v9  ;;  %3334 = vst [vmem:[#allocation2 + $0x140] sm:$0xff] %v3270_v60 }
 0x3b9   :  { %3335 = vst [vmem:[#allocation2 + $0x148] sm:$0xff] %v3271_v7  ;;  %3336 = vst [vmem:[#allocation2 + $0x150] sm:$0xff] %v3272_v17 }
 0x3ba   :  { %3337 = vst [vmem:[#allocation2 + $0x158] sm:$0xff] %v3273_v49  ;;  %3338 = vst [vmem:[#allocation2 + $0x160] sm:$0xff] %v3274_v20 }
 0x3bb   :  { %3339 = vst [vmem:[#allocation2 + $0x168] sm:$0xff] %v3275_v15  ;;  %3340 = vst [vmem:[#allocation2 + $0x170] sm:$0xff] %v3276_v61 }
 0x3bc   :  { %3341 = vst [vmem:[#allocation2 + $0x178] sm:$0xff] %v3277_v43  ;;  %3342 = vst [vmem:[#allocation2 + $0x180] sm:$0xff] %v3278_v1 }
 0x3bd   :  { %3343 = vst [vmem:[#allocation2 + $0x188] sm:$0xff] %v3279_v50  ;;  %3344 = vst [vmem:[#allocation2 + $0x190] sm:$0xff] %v3280_v38 }
 0x3be   :  { %3345 = vst [vmem:[#allocation2 + $0x198] sm:$0xff] %v3281_v37  ;;  %3346 = vst [vmem:[#allocation2 + $0x1a0] sm:$0xff] %v3282_v18 }
 0x3bf   :  { %3347 = vst [vmem:[#allocation2 + $0x1a8] sm:$0xff] %v3283_v41  ;;  %3348 = vst [vmem:[#allocation2 + $0x1b0] sm:$0xff] %v3284_v14 }
 0x3c0   :  { %3349 = vst [vmem:[#allocation2 + $0x1b8] sm:$0xff] %v3285_v54  ;;  %3350 = vst [vmem:[#allocation2 + $0x1c0] sm:$0xff] %v3286_v0 }
 0x3c1   :  { %3351 = vst [vmem:[#allocation2 + $0x1c8] sm:$0xff] %v3287_v42  ;;  %3352 = vst [vmem:[#allocation2 + $0x1d0] sm:$0xff] %v3288_v25 }
 0x3c2   :  { %3353 = vst [vmem:[#allocation2 + $0x1d8] sm:$0xff] %v3289_v29  ;;  %3354 = vst [vmem:[#allocation2 + $0x1e0] sm:$0xff] %v3290_v23 }
 0x3c3   :  { %3356 = vst [vmem:[#allocation2 + $0x1f0] sm:$0xff] %v3292_v6  ;;  %3357 = vst [vmem:[#allocation2 + $0x1f8] sm:$0xff] %v3293_v27 }
 0x3c4   :  { %3863 = shalt.err (!%p3860_p4)
}
 0x3c5   :  { %s3864_s30 = scalar_lea.hbm %s6866_s4, 8192 }
 0x3c6   :  { %p3865_p5 = scmp.ne.s32.totalorder %s6866_s4, %s3864_s30  ;;  %p3868_p6 = scmp.lt.u32.totalorder %s3864_s30, %s6866_s4 }
 0x3c8   :  { %p3870_p7 = pnand %p3868_p6, %p3865_p5 }
 0x3ca   :  { %3873 = shalt.err (!%p3870_p7)
}
 0x3cb   :  { %s3878_s9 = smov 128   ;;  %s3879_s10 = smov 8  }
 0x3cc   :  { %3369 = dma.vmem_to_hbm [thread:$0]  %s6841_s3, 8192, %s6866_s4, [#allocation3], %s3878_s9, %s3878_s9, %s3879_s10  }
 0x3cd   :  { %3874 = dma.done.wait [#allocation3], 8192  }
 0x3ce   :  { %3875 = vsyncadd [#allocation3], 4294959104 }
 0x3cf   :  { %3373 = vsyncpa [#allocation3], 1 }

</bundles_post_ra>
